<compile_context>
chip_gen: v5e
topology: v5e:2x2
jax: 0.10.0
libtpu: 0.0.40
codegen_flags: <defaults>
</compile_context>

<pallas_src>
import jax
import jax.numpy as jnp
from jax.experimental import pallas as pl
from jax.experimental.pallas import tpu as pltpu


def _round_up(x, m):
    return (x + m - 1) // m * m


def rhyming_kernel(a_ref, b_ref,
                   w1_ref, b1_ref,
                   w2a_ref, w2b_ref, b2_ref,
                   w3_ref, b3_ref,
                   w4_ref, b4_ref,
                   o_ref):
    # Shared first layer on both inputs: bf16 operands, f32 MXU accumulation.
    v_a = jnp.maximum(
        jnp.dot(a_ref[...], w1_ref[...], preferred_element_type=jnp.float32)
        + b1_ref[...], 0.0)
    v_b = jnp.maximum(
        jnp.dot(b_ref[...], w1_ref[...], preferred_element_type=jnp.float32)
        + b1_ref[...], 0.0)

    # layer2 (512 -> 128): concat([v_a, v_b], 1) @ W2 == v_a @ W2a + v_b @ W2b.
    # Splitting W2 avoids materializing a (tile_b, 512) lane-concat in VMEM.
    x = jnp.dot(v_a.astype(jnp.bfloat16), w2a_ref[...],
                preferred_element_type=jnp.float32)
    x += jnp.dot(v_b.astype(jnp.bfloat16), w2b_ref[...],
                 preferred_element_type=jnp.float32)
    x = jnp.maximum(x + b2_ref[...], 0.0)
    # (dropout == identity at inference)

    # layer3: 128 -> 64, ReLU.
    x = jnp.maximum(
        jnp.dot(x.astype(jnp.bfloat16), w3_ref[...],
                preferred_element_type=jnp.float32)
        + b3_ref[...], 0.0)

    # lout: 64 -> 1.  Done on the VPU + XLU lane reduction instead of an N=1
    # MXU matmul (an N=1 matmul wastes 255/256 of the MXU width and its drain).
    logit = jnp.sum(x * w4_ref[...], axis=-1, keepdims=True) + b4_ref[...]
    o_ref[...] = jax.nn.sigmoid(logit)


def rhyming_classifier(a, b, params, *, tile_b=None):
    """a, b: (B, 390) float32.  Returns (B, 1) float32 probabilities."""
    B, F = a.shape
    w1, b1, w2, b2, w3, b3, w4, b4 = params

    # Tile the batch so the grid has several steps (pipelined input DMA +
    # megacore sharding).  Cap at 256 rows/step so even v5e's 16 MiB scoped
    # VMEM easily holds double-buffered bf16 input tiles + resident weights.
    if tile_b is None:
        tile_b = min(256, _round_up(B, 8))
    B_pad = _round_up(B, tile_b)
    if B_pad != B:
        pad = B_pad - B
        a = jnp.pad(a, ((0, pad), (0, 0)))
        b = jnp.pad(b, ((0, pad), (0, 0)))

    # bf16 operands for the MXU; biases and accumulation stay f32.
    a16 = a.astype(jnp.bfloat16)
    b16 = b.astype(jnp.bfloat16)
    w1_16 = w1.astype(jnp.bfloat16)
    w2a = w2[:256].astype(jnp.bfloat16)
    w2b = w2[256:].astype(jnp.bfloat16)
    w3_16 = w3.astype(jnp.bfloat16)
    w4_row = w4.reshape(1, 64).astype(jnp.float32)   # (64, 1) -> (1, 64) row

    in_tile = pl.BlockSpec((tile_b, F), lambda i: (i, 0))

    def resident(arr):
        # Whole-array block with a grid-invariant index_map: fetched once and
        # kept resident in VMEM across all grid steps.
        return pl.BlockSpec(arr.shape, lambda i: (0,) * arr.ndim)

    out = pl.pallas_call(
        rhyming_kernel,
        out_shape=jax.ShapeDtypeStruct((B_pad, 1), jnp.float32),
        grid_spec=pltpu.PrefetchScalarGridSpec(
            num_scalar_prefetch=0,
            grid=(B_pad // tile_b,),
            in_specs=[
                in_tile,                     # a tile
                in_tile,                     # b tile
                resident(w1_16), resident(b1),
                resident(w2a), resident(w2b), resident(b2),
                resident(w3_16), resident(b3),
                resident(w4_row), resident(b4),
            ],
            out_specs=pl.BlockSpec((tile_b, 1), lambda i: (i, 0)),
        ),
        compiler_params=pltpu.CompilerParams(
            dimension_semantics=("parallel",)),
    )(a16, b16, w1_16, b1, w2a, w2b, b2, w3_16, b3, w4_row, b4)

    return out[:B]


def init_params(key):
    """Deterministic parameter init. Weights stored as (in, out), f32."""
    dims = [(390, 256), (512, 128), (128, 64), (64, 1)]
    params = []
    for idx, (fin, fout) in enumerate(dims):
        kw, kb = jax.random.split(jax.random.fold_in(key, idx))
        scale = 1.0 / jnp.sqrt(fin)
        w = jax.random.uniform(kw, (fin, fout), jnp.float32, -scale, scale)
        bias = jax.random.uniform(kb, (1, fout), jnp.float32, -scale, scale)
        params += [w, bias]
    return tuple(params)


def reference_forward(a, b, params):
    w1, b1, w2, b2, w3, b3, w4, b4 = params
    va = jax.nn.relu(a @ w1 + b1)
    vb = jax.nn.relu(b @ w1 + b1)
    x = jnp.concatenate([va, vb], axis=1)
    x = jax.nn.relu(x @ w2 + b2)
    x = jax.nn.relu(x @ w3 + b3)
    return jax.nn.sigmoid(x @ w4 + b4)


if __name__ == "__main__":
    key = jax.random.PRNGKey(0)
    k_a, k_b, k_p = jax.random.split(key, 3)

    FEAT = 390
    params = init_params(k_p)

    # Main check: multi-step grid (4 "parallel" steps -> pipelined DMA, both
    # v7x TensorCores used).
    BATCH = 512
    a = jax.random.normal(k_a, (BATCH, FEAT), jnp.float32)
    b = jax.random.normal(k_b, (BATCH, FEAT), jnp.float32)

    out = rhyming_classifier(a, b, params, tile_b=128)
    out = jax.block_until_ready(out)

    ref = reference_forward(a, b, params)
    assert out.shape == (BATCH, 1), out.shape
    max_err = float(jnp.max(jnp.abs(out - ref)))
    # bf16 matmuls vs f32 reference -> relaxed tolerance.
    assert max_err < 3e-2, max_err

    # Ragged-batch check: batch 20 is padded to a tile multiple and sliced back.
    a_s = a[:20]
    b_s = b[:20]
    out_s = jax.block_until_ready(rhyming_classifier(a_s, b_s, params))
    ref_s = reference_forward(a_s, b_s, params)
    assert out_s.shape == (20, 1), out_s.shape
    assert float(jnp.max(jnp.abs(out_s - ref_s))) < 3e-2

    print("KERNEL_OK")
</pallas_src>

<mosaic_0001>
module attributes {stable_mosaic.version = 11 : i64} {
  func.func @rhyming_kernel(%arg0: i32, %arg1: memref<128x390xbf16, #tpu.memory_space<vmem>>, %arg2: memref<128x390xbf16, #tpu.memory_space<vmem>>, %arg3: memref<390x256xbf16, #tpu.memory_space<vmem>>, %arg4: memref<1x256xf32, #tpu.memory_space<vmem>>, %arg5: memref<256x128xbf16, #tpu.memory_space<vmem>>, %arg6: memref<256x128xbf16, #tpu.memory_space<vmem>>, %arg7: memref<1x128xf32, #tpu.memory_space<vmem>>, %arg8: memref<128x64xbf16, #tpu.memory_space<vmem>>, %arg9: memref<1x64xf32, #tpu.memory_space<vmem>>, %arg10: memref<1x64xf32, #tpu.memory_space<vmem>>, %arg11: memref<1x1xf32, #tpu.memory_space<vmem>>, %arg12: memref<128x1xf32, #tpu.memory_space<vmem>>) attributes {dimension_semantics = [#tpu.dimension_semantics<parallel>], iteration_bounds = array<i64: 4>, scalar_prefetch = 0 : i64, scratch_operands = 0 : i64, tpu.core_type = #tpu.core_type<tc>, window_params = [{transform_indices = @transform_0, window_bounds = array<i64: 128, 390>}, {transform_indices = @transform_1, window_bounds = array<i64: 128, 390>}, {pipeline_mode = #tpu.pipeline_mode<synchronous>, transform_indices = @transform_2, window_bounds = array<i64: 390, 256>}, {pipeline_mode = #tpu.pipeline_mode<synchronous>, transform_indices = @transform_3, window_bounds = array<i64: 1, 256>}, {pipeline_mode = #tpu.pipeline_mode<synchronous>, transform_indices = @transform_4, window_bounds = array<i64: 256, 128>}, {pipeline_mode = #tpu.pipeline_mode<synchronous>, transform_indices = @transform_5, window_bounds = array<i64: 256, 128>}, {pipeline_mode = #tpu.pipeline_mode<synchronous>, transform_indices = @transform_6, window_bounds = array<i64: 1, 128>}, {pipeline_mode = #tpu.pipeline_mode<synchronous>, transform_indices = @transform_7, window_bounds = array<i64: 128, 64>}, {pipeline_mode = #tpu.pipeline_mode<synchronous>, transform_indices = @transform_8, window_bounds = array<i64: 1, 64>}, {pipeline_mode = #tpu.pipeline_mode<synchronous>, transform_indices = @transform_9, window_bounds = array<i64: 1, 64>}, {pipeline_mode = #tpu.pipeline_mode<synchronous>, transform_indices = @transform_10, window_bounds = array<i64: 1, 1>}, {transform_indices = @transform_11, window_bounds = array<i64: 128, 1>}]} {
    %c0 = arith.constant 0 : index
    %c0_0 = arith.constant 0 : index
    %0 = vector.load %arg1[%c0, %c0_0] : memref<128x390xbf16, #tpu.memory_space<vmem>>, vector<128x390xbf16>
    %c0_1 = arith.constant 0 : index
    %c0_2 = arith.constant 0 : index
    %1 = vector.load %arg3[%c0_1, %c0_2] : memref<390x256xbf16, #tpu.memory_space<vmem>>, vector<390x256xbf16>
    %cst = arith.constant dense<0.000000e+00> : vector<128x256xf32>
    %2 = tpu.matmul %0, %1, %cst {dimension_numbers = #tpu.dot_dimension_numbers<[1], [0], [0], [1], [0, 0, 1, 1], [], []>} : vector<128x390xbf16>, vector<390x256xbf16>, vector<128x256xf32> -> vector<128x256xf32>
    %c0_3 = arith.constant 0 : index
    %c0_4 = arith.constant 0 : index
    %3 = vector.load %arg4[%c0_3, %c0_4] : memref<1x256xf32, #tpu.memory_space<vmem>>, vector<1x256xf32>
    %4 = vector.broadcast %3 : vector<1x256xf32> to vector<128x256xf32>
    %5 = arith.addf %2, %4 : vector<128x256xf32>
    %cst_5 = arith.constant 0.000000e+00 : f32
    %6 = vector.broadcast %cst_5 : f32 to vector<128x256xf32>
    %7 = arith.maximumf %5, %6 : vector<128x256xf32>
    %c0_6 = arith.constant 0 : index
    %c0_7 = arith.constant 0 : index
    %8 = vector.load %arg2[%c0_6, %c0_7] : memref<128x390xbf16, #tpu.memory_space<vmem>>, vector<128x390xbf16>
    %c0_8 = arith.constant 0 : index
    %c0_9 = arith.constant 0 : index
    %9 = vector.load %arg3[%c0_8, %c0_9] : memref<390x256xbf16, #tpu.memory_space<vmem>>, vector<390x256xbf16>
    %cst_10 = arith.constant dense<0.000000e+00> : vector<128x256xf32>
    %10 = tpu.matmul %8, %9, %cst_10 {dimension_numbers = #tpu.dot_dimension_numbers<[1], [0], [0], [1], [0, 0, 1, 1], [], []>} : vector<128x390xbf16>, vector<390x256xbf16>, vector<128x256xf32> -> vector<128x256xf32>
    %c0_11 = arith.constant 0 : index
    %c0_12 = arith.constant 0 : index
    %11 = vector.load %arg4[%c0_11, %c0_12] : memref<1x256xf32, #tpu.memory_space<vmem>>, vector<1x256xf32>
    %12 = vector.broadcast %11 : vector<1x256xf32> to vector<128x256xf32>
    %13 = arith.addf %10, %12 : vector<128x256xf32>
    %cst_13 = arith.constant 0.000000e+00 : f32
    %14 = vector.broadcast %cst_13 : f32 to vector<128x256xf32>
    %15 = arith.maximumf %13, %14 : vector<128x256xf32>
    %16 = arith.truncf %7 : vector<128x256xf32> to vector<128x256xbf16>
    %c0_14 = arith.constant 0 : index
    %c0_15 = arith.constant 0 : index
    %17 = vector.load %arg5[%c0_14, %c0_15] : memref<256x128xbf16, #tpu.memory_space<vmem>>, vector<256x128xbf16>
    %cst_16 = arith.constant dense<0.000000e+00> : vector<128x128xf32>
    %18 = tpu.matmul %16, %17, %cst_16 {dimension_numbers = #tpu.dot_dimension_numbers<[1], [0], [0], [1], [0, 0, 1, 1], [], []>} : vector<128x256xbf16>, vector<256x128xbf16>, vector<128x128xf32> -> vector<128x128xf32>
    %19 = arith.truncf %15 : vector<128x256xf32> to vector<128x256xbf16>
    %c0_17 = arith.constant 0 : index
    %c0_18 = arith.constant 0 : index
    %20 = vector.load %arg6[%c0_17, %c0_18] : memref<256x128xbf16, #tpu.memory_space<vmem>>, vector<256x128xbf16>
    %cst_19 = arith.constant dense<0.000000e+00> : vector<128x128xf32>
    %21 = tpu.matmul %19, %20, %cst_19 {dimension_numbers = #tpu.dot_dimension_numbers<[1], [0], [0], [1], [0, 0, 1, 1], [], []>} : vector<128x256xbf16>, vector<256x128xbf16>, vector<128x128xf32> -> vector<128x128xf32>
    %22 = arith.addf %18, %21 : vector<128x128xf32>
    %c0_20 = arith.constant 0 : index
    %c0_21 = arith.constant 0 : index
    %23 = vector.load %arg7[%c0_20, %c0_21] : memref<1x128xf32, #tpu.memory_space<vmem>>, vector<1x128xf32>
    %24 = vector.broadcast %23 : vector<1x128xf32> to vector<128x128xf32>
    %25 = arith.addf %22, %24 : vector<128x128xf32>
    %cst_22 = arith.constant 0.000000e+00 : f32
    %26 = vector.broadcast %cst_22 : f32 to vector<128x128xf32>
    %27 = arith.maximumf %25, %26 : vector<128x128xf32>
    %28 = arith.truncf %27 : vector<128x128xf32> to vector<128x128xbf16>
    %c0_23 = arith.constant 0 : index
    %c0_24 = arith.constant 0 : index
    %29 = vector.load %arg8[%c0_23, %c0_24] : memref<128x64xbf16, #tpu.memory_space<vmem>>, vector<128x64xbf16>
    %cst_25 = arith.constant dense<0.000000e+00> : vector<128x64xf32>
    %30 = tpu.matmul %28, %29, %cst_25 {dimension_numbers = #tpu.dot_dimension_numbers<[1], [0], [0], [1], [0, 0, 1, 1], [], []>} : vector<128x128xbf16>, vector<128x64xbf16>, vector<128x64xf32> -> vector<128x64xf32>
    %c0_26 = arith.constant 0 : index
    %c0_27 = arith.constant 0 : index
    %31 = vector.load %arg9[%c0_26, %c0_27] : memref<1x64xf32, #tpu.memory_space<vmem>>, vector<1x64xf32>
    %32 = vector.broadcast %31 : vector<1x64xf32> to vector<128x64xf32>
    %33 = arith.addf %30, %32 : vector<128x64xf32>
    %cst_28 = arith.constant 0.000000e+00 : f32
    %34 = vector.broadcast %cst_28 : f32 to vector<128x64xf32>
    %35 = arith.maximumf %33, %34 : vector<128x64xf32>
    %c0_29 = arith.constant 0 : index
    %c0_30 = arith.constant 0 : index
    %36 = vector.load %arg10[%c0_29, %c0_30] : memref<1x64xf32, #tpu.memory_space<vmem>>, vector<1x64xf32>
    %37 = vector.broadcast %36 : vector<1x64xf32> to vector<128x64xf32>
    %38 = arith.mulf %35, %37 : vector<128x64xf32>
    %cst_31 = arith.constant dense<0.000000e+00> : vector<128xf32>
    %39 = vector.multi_reduction <add>, %38, %cst_31 [1] : vector<128x64xf32> to vector<128xf32>
    %40 = vector.shape_cast %39 : vector<128xf32> to vector<128x1xf32>
    %c0_32 = arith.constant 0 : index
    %c0_33 = arith.constant 0 : index
    %41 = vector.load %arg11[%c0_32, %c0_33] : memref<1x1xf32, #tpu.memory_space<vmem>>, vector<1x1xf32>
    %42 = vector.broadcast %41 : vector<1x1xf32> to vector<128x1xf32>
    %43 = arith.addf %40, %42 : vector<128x1xf32>
    %44 = arith.negf %43 : vector<128x1xf32>
    %45 = math.exp %44 : vector<128x1xf32>
    %cst_34 = arith.constant 1.000000e+00 : f32
    %46 = vector.broadcast %cst_34 : f32 to vector<128x1xf32>
    %47 = arith.addf %46, %45 : vector<128x1xf32>
    %48 = arith.divf %46, %47 : vector<128x1xf32>
    %c0_35 = arith.constant 0 : index
    %c0_36 = arith.constant 0 : index
    %49 = vector.load %arg12[%c0_35, %c0_36] : memref<128x1xf32, #tpu.memory_space<vmem>>, vector<128x1xf32>
    tpu.vector_store %arg12[%c0_35, %c0_36], %48 {strides = array<i32>} : memref<128x1xf32, #tpu.memory_space<vmem>>, vector<128x1xf32>,
    return
  }
  func.func @transform_0(%arg0: i32) -> (i32, i32) {
    %c0_i32 = arith.constant 0 : i32
    %c0_i32_0 = arith.constant 0 : i32
    return %arg0, %c0_i32 : i32, i32
  }
  func.func @transform_1(%arg0: i32) -> (i32, i32) {
    %c0_i32 = arith.constant 0 : i32
    %c0_i32_0 = arith.constant 0 : i32
    return %arg0, %c0_i32 : i32, i32
  }
  func.func @transform_2(%arg0: i32) -> (i32, i32) {
    %c0_i32 = arith.constant 0 : i32
    %c0_i32_0 = arith.constant 0 : i32
    %c0_i32_1 = arith.constant 0 : i32
    return %c0_i32, %c0_i32_0 : i32, i32
  }
  func.func @transform_3(%arg0: i32) -> (i32, i32) {
    %c0_i32 = arith.constant 0 : i32
    %c0_i32_0 = arith.constant 0 : i32
    %c0_i32_1 = arith.constant 0 : i32
    return %c0_i32, %c0_i32_0 : i32, i32
  }
  func.func @transform_4(%arg0: i32) -> (i32, i32) {
    %c0_i32 = arith.constant 0 : i32
    %c0_i32_0 = arith.constant 0 : i32
    %c0_i32_1 = arith.constant 0 : i32
    return %c0_i32, %c0_i32_0 : i32, i32
  }
  func.func @transform_5(%arg0: i32) -> (i32, i32) {
    %c0_i32 = arith.constant 0 : i32
    %c0_i32_0 = arith.constant 0 : i32
    %c0_i32_1 = arith.constant 0 : i32
    return %c0_i32, %c0_i32_0 : i32, i32
  }
  func.func @transform_6(%arg0: i32) -> (i32, i32) {
    %c0_i32 = arith.constant 0 : i32
    %c0_i32_0 = arith.constant 0 : i32
    %c0_i32_1 = arith.constant 0 : i32
    return %c0_i32, %c0_i32_0 : i32, i32
  }
  func.func @transform_7(%arg0: i32) -> (i32, i32) {
    %c0_i32 = arith.constant 0 : i32
    %c0_i32_0 = arith.constant 0 : i32
    %c0_i32_1 = arith.constant 0 : i32
    return %c0_i32, %c0_i32_0 : i32, i32
  }
  func.func @transform_8(%arg0: i32) -> (i32, i32) {
    %c0_i32 = arith.constant 0 : i32
    %c0_i32_0 = arith.constant 0 : i32
    %c0_i32_1 = arith.constant 0 : i32
    return %c0_i32, %c0_i32_0 : i32, i32
  }
  func.func @transform_9(%arg0: i32) -> (i32, i32) {
    %c0_i32 = arith.constant 0 : i32
    %c0_i32_0 = arith.constant 0 : i32
    %c0_i32_1 = arith.constant 0 : i32
    return %c0_i32, %c0_i32_0 : i32, i32
  }
  func.func @transform_10(%arg0: i32) -> (i32, i32) {
    %c0_i32 = arith.constant 0 : i32
    %c0_i32_0 = arith.constant 0 : i32
    %c0_i32_1 = arith.constant 0 : i32
    return %c0_i32, %c0_i32_0 : i32, i32
  }
  func.func @transform_11(%arg0: i32) -> (i32, i32) {
    %c0_i32 = arith.constant 0 : i32
    %c0_i32_0 = arith.constant 0 : i32
    return %arg0, %c0_i32 : i32, i32
  }
}

</mosaic_0001>

<bundles_post_ra>
// kernel: tpu_custom_call.1
= control target key start
LH: loop header
LB: loop body
LE: loop exit
PB: predicated region body
PF: predicated region fallthrough
CT: control target
= control target key end

     0   :  { %s4114_s19 = smov 0   ;;  %s5599_s0 = inlined_call_operand.vmem [shape: bf16[512,390], index: 0, kind: input, shape index: {}]   ;;  %s5600_s1 = inlined_call_operand.vmem [shape: bf16[512,390], index: 1, kind: input, shape index: {}]   ;;  %s5601_s2 = inlined_call_operand.vmem [shape: bf16[390,256], index: 2, kind: input, shape index: {}]   ;;  %s5602_s3 = inlined_call_operand.vmem [shape: f32[1,256], index: 3, kind: input, shape index: {}]   ;;  %s5603_s4 = inlined_call_operand.vmem [shape: bf16[256,128], index: 4, kind: input, shape index: {}]   ;;  %s5604_s5 = inlined_call_operand.vmem [shape: bf16[256,128], index: 5, kind: input, shape index: {}]   ;;  %s5605_s6 = inlined_call_operand.vmem [shape: f32[1,128], index: 6, kind: input, shape index: {}]   ;;  %s5606_s7 = inlined_call_operand.vmem [shape: bf16[128,64], index: 7, kind: input, shape index: {}]   ;;  %s5607_s8 = inlined_call_operand.vmem [shape: f32[1,64], index: 8, kind: input, shape index: {}]   ;;  %s5608_s9 = inlined_call_operand.vmem [shape: f32[1,64], index: 9, kind: input, shape index: {}]   ;;  %s5609_s10 = inlined_call_operand.<no memory space> [shape: f32[1,1], index: 10, kind: input, shape index: {}]   ;;  %s5610_s11 = inlined_call_operand.vmem [shape: f32[512,1], index: 11, kind: output, shape index: {}]  }
   0x1   :  { %v16_v0 = vstv %s5609_s10 }
   0x2   :  { %17 = vst [vmem:[#allocation2] sm:$0x1] %v16_v0 }
   0x3 LB: > { %s3132_s20 = sadd.s32 4294967295, %s4049_s19   ;;  %p3136_p0 = scmp.ge.s32.totalorder %s4049_s19, 1  ;;  %s4049_s19 = sphi %s4114_s19, %s23_s19  }
   0x4   : > { %p353_p1 = scmp.lt.s32.totalorder %s4049_s19, 5 }
   0x6   : > { %p354_p2 = pnand %p3136_p0, %p353_p1 }
   0x8   : > { %357 = sbr.rel (%p354_p2) target bundleno = 1164 (0x48c), region = 64 }
   0xd   : > { %v3331_v1 = vld [vmem:[%s5601_s2 + $0x70] sm:$0xf]  ;;  %v3852_v2 = vld [vmem:[%s5601_s2 + $0x74] sm:$0xf0]  ;;  %v3323_v6 = vld [vmem:[%s5601_s2 + $0x60] sm:$0xf] }
   0xe   : > { %v3459_v3 = vld [vmem:[%s5601_s2 + $0x170] sm:$0xf]  ;;  %v4131_v4 = vor.u32 %v3852_v2, %v3331_v1  ;;  %v3884_v5 = vld [vmem:[%s5601_s2 + $0x174] sm:$0xf0]  ;;  %v3850_v7 = vld [vmem:[%s5601_s2 + $0x64] sm:$0xf0] }
   0xf   : > { %v4142_v8 = vor.u32 %v3884_v5, %v3459_v3  ;;  %v3451_v9 = vld [vmem:[%s5601_s2 + $0x160] sm:$0xf]  ;;  %v3882_v10 = vld [vmem:[%s5601_s2 + $0x164] sm:$0xf0]  ;;  %v4152_v11 = vor.u32 %v3850_v7, %v3323_v6  ;;  %v3315_v13 = vld [vmem:[%s5601_s2 + $0x50] sm:$0xf] }
  0x10   : > { %937 = vmatpush.bf16.msra.mxu0 %v4131_v4  ;;  %3957 = vmatpush.bf16.msra.mxu1 %v4131_v4  ;;  %v4155_v12 = vor.u32 %v3882_v10, %v3451_v9  ;;  %v3848_v14 = vld [vmem:[%s5601_s2 + $0x54] sm:$0xf0]  ;;  %v3443_v15 = vld [vmem:[%s5601_s2 + $0x150] sm:$0xf]  ;;  %v3307_v19 = vld [vmem:[%s5601_s2 + $0x40] sm:$0xf] }
  0x11   : > { %1035 = vmatpush.bf16.msra.mxu2 %v4142_v8  ;;  %v3880_v16 = vld [vmem:[%s5601_s2 + $0x154] sm:$0xf0]  ;;  %v4171_v17 = vor.u32 %v3848_v14, %v3315_v13  ;;  %v3846_v20 = vld [vmem:[%s5601_s2 + $0x44] sm:$0xf0]  ;;  %v3435_v21 = vld [vmem:[%s5601_s2 + $0x140] sm:$0xf] }
  0x12   : > { %v4174_v18 = vor.u32 %v3880_v16, %v3443_v15  ;;  %v3878_v22 = vld [vmem:[%s5601_s2 + $0x144] sm:$0xf0]  ;;  %s3137_s15 = sshll.u32 %s3132_s20, 4  ;;  %v4192_v23 = vor.u32 %v3846_v20, %v3307_v19  ;;  %v4197_v24 = vld [vmem:[%s5601_s2 + $0x180] sm:$0x77]  ;;  %vm930_vm0 = vcmask 1042432  }
  0x13   : > { %p401_p3 = scmp.lt.s32.totalorder %s3137_s15, 63  ;;  %v4200_v25 = vor.u32 %v3878_v22, %v3435_v21  ;;  %v3299_v26 = vld [vmem:[%s5601_s2 + $0x30] sm:$0xf]  ;;  %v3844_v27 = vld [vmem:[%s5601_s2 + $0x34] sm:$0xf0]  ;;  %v805_v28 = vunpack.c.l.b16 %v4197_v24  ;;  %vm905_vm1 = vcmask 48128  }
  0x14   : > { %938 = vmatpush.bf16.msra.mxu0 %v4152_v11  ;;  %3958 = vmatpush.bf16.msra.mxu1 %v4152_v11  ;;  %v3427_v29 = vld [vmem:[%s5601_s2 + $0x130] sm:$0xf]  ;;  %v3876_v30 = vld [vmem:[%s5601_s2 + $0x134] sm:$0xf0]  ;;  %v4219_v32 = vor.u32 %v3844_v27, %v3299_v26  ;;  %v3291_v33 = vld [vmem:[%s5601_s2 + $0x20] sm:$0xf] }
  0x15   : > { %1036 = vmatpush.bf16.msra.mxu2 %v4155_v12  ;;  %s5632_s15 = smov (!%p401_p3, %s3137_s15), 63  ;;  %v855_v31 = vpack.c.b16 %v805_v28, %v805_v28  ;;  %v4225_v34 = vor.u32 %v3876_v30, %v3427_v29  ;;  %v3842_v35 = vld [vmem:[%s5601_s2 + $0x24] sm:$0xf0]  ;;  %v3419_v37 = vld [vmem:[%s5601_s2 + $0x120] sm:$0xf]  ;;  %vm2674_vm2 = vcmask 523264  }
  0x16   : > { %v3874_v38 = vld [vmem:[%s5601_s2 + $0x124] sm:$0xf0]  ;;  %s3803_s16 = sshll.u32 %s5632_s15, 4  ;;  %v4243_v39 = vor.u32 %v3842_v35, %v3291_v33  ;;  %v3283_v41 = vld [vmem:[%s5601_s2 + $0x10] sm:$0xf]  ;;  %s3144_s20 = sshll.u32 %s5632_s15, 3 }
  0x17   : > { %v4231_v36 = vsel %vm930_vm0, %v855_v31, 0  ;;  %v4246_v40 = vor.u32 %v3874_v38, %v3419_v37  ;;  %v3840_v42 = vld [vmem:[%s5601_s2 + $0x14] sm:$0xf0]  ;;  %s4259_s23 = scalar_lea.vmem %s5599_s0, %s3803_s16  ;;  %v3411_v43 = vld [vmem:[%s5601_s2 + $0x110] sm:$0xf]  ;;  %s5550_s22 = scalar_lea.vmem %s5610_s11, %s3144_s20  ;;  %vm3047_vm5 = vcmask 7168  }
  0x18   : > { %939 = vmatpush.bf16.msra.mxu0 %v4171_v17  ;;  %3959 = vmatpush.bf16.msra.mxu1 %v4171_v17  ;;  %v3872_v44 = vld [vmem:[%s5601_s2 + $0x114] sm:$0xf0]  ;;  %v3830_v45 = vld [vmem:[%s4259_s23 + $0xcc] sm:$0xf]  ;;  %v3253_v46 = vld [vmem:[%s4259_s23 + $0xd8] sm:$0xf0]  ;;  %v4274_v48 = vor.u32 %v3840_v42, %v3283_v41 }
  0x19   : > { %1037 = vmatpush.bf16.msra.mxu2 %v4174_v18  ;;  %3966 = vmatpush.bf16.msra.mxu3 %v4231_v36  ;;  %v3851_v47 = vld [vmem:[%s5601_s2 + $0x74] sm:$0xf]  ;;  %v3275_v49 = vld [vmem:[%s5601_s2] sm:$0xf]  ;;  %v3838_v50 = vld [vmem:[%s5601_s2 + $0x4] sm:$0xf0]  ;;  %v4282_v51 = vor.u32 %v3830_v45, %v3253_v46  ;;  %v4288_v53 = vor.u32 %v3872_v44, %v3411_v43 }
  0x1a   : > { %v3333_v52 = vld [vmem:[%s5601_s2 + $0x78] sm:$0xf0]  ;;  %v3403_v54 = vld [vmem:[%s5601_s2 + $0x100] sm:$0xf]  ;;  %v3849_v56 = vld [vmem:[%s5601_s2 + $0x64] sm:$0xf]  ;;  %v4319_v0 = vor.u32 %v3838_v50, %v3275_v49 }
  0x1b   : > { %v4293_v55 = vor.u32 %v3851_v47, %v3333_v52  ;;  %v3325_v57 = vld [vmem:[%s5601_s2 + $0x68] sm:$0xf0]  ;;  %v3870_v58 = vld [vmem:[%s5601_s2 + $0x104] sm:$0xf0]  ;;  %v3395_v59 = vld [vmem:[%s5601_s2 + $0xf0] sm:$0xf] }
  0x1c   : > { %940 = vmatpush.bf16.msra.mxu0 %v4192_v23  ;;  %3960 = vmatpush.bf16.msra.mxu1 %v4192_v23  ;;  %v3868_v60 = vld [vmem:[%s5601_s2 + $0xf4] sm:$0xf0]  ;;  %v3147_v61 = vld [vmem:[%s4259_s23] sm:$0xf]  ;;  %v3807_v62 = vld [vmem:[%s4259_s23 + $0xc] sm:$0xf0]  ;;  %v4315_v63 = vor.u32 %v3849_v56, %v3325_v57  ;;  %v4325_v5 = vor.u32 %v3870_v58, %v3403_v54 }
  0x1d   : > { %1038 = vmatpush.bf16.msra.mxu2 %v4200_v25  ;;  %3471 = vmatmul.msk.bf16.vlgmr.msra.gmra.mxu3 %vm905_vm1, %v4282_v51  ;;  %v3243_v1 = vld [vmem:[%s4259_s23 + $0xc0] sm:$0xf]  ;;  %v3831_v2 = vld [vmem:[%s4259_s23 + $0xcc] sm:$0xf0]  ;;  %v3155_v3 = vld [vmem:[%s4259_s23 + $0x8] sm:$0xf]  ;;  %v4328_v7 = vor.u32 %v3868_v60, %v3395_v59  ;;  %v4342_v15 = vor.u32 %v3807_v62, %v3147_v61 }
  0x1e   : > { %1133 = vmatpush.bf16.msrb.mxu3 %v4293_v55  ;;  %v3808_v6 = vld [vmem:[%s4259_s23 + $0x14] sm:$0xf0]  ;;  %v3847_v9 = vld [vmem:[%s5601_s2 + $0x54] sm:$0xf]  ;;  %v3317_v10 = vld [vmem:[%s5601_s2 + $0x58] sm:$0xf0]  ;;  %v4344_v16 = vor.u32 %v3831_v2, %v3243_v1 }
  0x1f   : > { %v3387_v13 = vld [vmem:[%s5601_s2 + $0xe0] sm:$0xf]  ;;  %v3866_v14 = vld [vmem:[%s5601_s2 + $0xe4] sm:$0xf0]  ;;  %v4349_v19 = vor.u32 %v3808_v6, %v3155_v3  ;;  %v4351_v20 = vor.u32 %v3847_v9, %v3317_v10  ;;  %v3845_v22 = vld [vmem:[%s5601_s2 + $0x44] sm:$0xf] }
  0x20   : > { %941 = vmatpush.bf16.msra.mxu0 %v4219_v32  ;;  %3961 = vmatpush.bf16.msra.mxu1 %v4219_v32  ;;  %v4355_v21 = vor.u32 %v3866_v14, %v3387_v13  ;;  %v3309_v26 = vld [vmem:[%s5601_s2 + $0x48] sm:$0xf0]  ;;  %v3379_v27 = vld [vmem:[%s5601_s2 + $0xd0] sm:$0xf]  ;;  %v3864_v28 = vld [vmem:[%s5601_s2 + $0xd4] sm:$0xf0] }
  0x21   : > { %1039 = vmatpush.bf16.msra.mxu2 %v4225_v34  ;;  %v3834_v29 = vld [vmem:[%s4259_s23 + $0xec] sm:$0xf]  ;;  %v3269_v30 = vld [vmem:[%s4259_s23 + $0xf8] sm:$0xf0]  ;;  %v4377_v31 = vor.u32 %v3845_v22, %v3309_v26  ;;  %v4380_v33 = vor.u32 %v3864_v28, %v3379_v27  ;;  %v3843_v35 = vld [vmem:[%s5601_s2 + $0x34] sm:$0xf] }
  0x22   : > { %1134 = vmatpush.bf16.msrb.mxu3 %v4315_v63  ;;  %v3301_v37 = vld [vmem:[%s5601_s2 + $0x38] sm:$0xf0]  ;;  %v3371_v38 = vld [vmem:[%s5601_s2 + $0xc0] sm:$0xf]  ;;  %v3862_v41 = vld [vmem:[%s5601_s2 + $0xc4] sm:$0xf0]  ;;  %v4394_v42 = vor.u32 %v3834_v29, %v3269_v30 }
  0x23   : > { %v4397_v43 = vor.u32 %v3843_v35, %v3301_v37  ;;  %v4400_v44 = vor.u32 %v3862_v41, %v3371_v38  ;;  %v3841_v45 = vld [vmem:[%s5601_s2 + $0x24] sm:$0xf]  ;;  %v3293_v46 = vld [vmem:[%s5601_s2 + $0x28] sm:$0xf0]  ;;  %v3363_v47 = vld [vmem:[%s5601_s2 + $0xb0] sm:$0xf] }
  0x24   : > { %942 = vmatpush.bf16.msra.mxu0 %v4243_v39  ;;  %3962 = vmatpush.bf16.msra.mxu1 %v4243_v39  ;;  %5613 = vst [vmem:[#allocation3_spill] sm:$0xff] %v4394_v42  ;;  %v3860_v49 = vld [vmem:[%s5601_s2 + $0xb4] sm:$0xf0]  ;;  %v3163_v50 = vld [vmem:[%s4259_s23 + $0x20] sm:$0xf]  ;;  %v4422_v58 = vor.u32 %v3841_v45, %v3293_v46 }
  0x25   : > { %1040 = vmatpush.bf16.msra.mxu2 %v4246_v40  ;;  %v3811_v52 = vld [vmem:[%s4259_s23 + $0x2c] sm:$0xf0]  ;;  %v3259_v54 = vld [vmem:[%s4259_s23 + $0xe0] sm:$0xf]  ;;  %v3171_v57 = vld [vmem:[%s4259_s23 + $0x28] sm:$0xf]  ;;  %v4426_v60 = vor.u32 %v3860_v49, %v3363_v47 }
  0x26   : > { %1135 = vmatpush.bf16.msrb.mxu3 %v4351_v20  ;;  %v3835_v56 = vld [vmem:[%s4259_s23 + $0xec] sm:$0xf0]  ;;  %v3812_v59 = vld [vmem:[%s4259_s23 + $0x34] sm:$0xf0]  ;;  %v3839_v61 = vld [vmem:[%s5601_s2 + $0x14] sm:$0xf]  ;;  %v3164_v3 = vor.u32 %v3811_v52, %v3163_v50 }
  0x27   : > { %v3285_v62 = vld [vmem:[%s5601_s2 + $0x18] sm:$0xf0]  ;;  %v3355_v1 = vld [vmem:[%s5601_s2 + $0xa0] sm:$0xf]  ;;  %v3858_v2 = vld [vmem:[%s5601_s2 + $0xa4] sm:$0xf0]  ;;  %v4440_v6 = vor.u32 %v3835_v56, %v3259_v54  ;;  %v4442_v9 = vor.u32 %v3812_v59, %v3171_v57 }
  0x28   : > { %943 = vmatpush.bf16.msra.mxu0 %v4274_v48  ;;  %3963 = vmatpush.bf16.msra.mxu1 %v4274_v48  ;;  %v4445_v10 = vor.u32 %v3839_v61, %v3285_v62  ;;  %v4448_v13 = vor.u32 %v3858_v2, %v3355_v1  ;;  %v3837_v14 = vld [vmem:[%s5601_s2 + $0x4] sm:$0xf]  ;;  %v3277_v22 = vld [vmem:[%s5601_s2 + $0x8] sm:$0xf0]  ;;  %v3347_v26 = vld [vmem:[%s5601_s2 + $0x90] sm:$0xf] }
  0x29   : > { %1041 = vmatpush.bf16.msra.mxu2 %v4288_v53  ;;  %v3856_v27 = vld [vmem:[%s5601_s2 + $0x94] sm:$0xf0]  ;;  %v4465_v28 = vor.u32 %v3837_v14, %v3277_v22  ;;  %v3339_v30 = vld [vmem:[%s5601_s2 + $0x80] sm:$0xf]  ;;  %v3854_v35 = vld [vmem:[%s5601_s2 + $0x84] sm:$0xf0] }
  0x2a   : > { %1136 = vmatpush.bf16.msrb.mxu3 %v4377_v31  ;;  %v4468_v29 = vor.u32 %v3856_v27, %v3347_v26  ;;  %v3883_v37 = vld [vmem:[%s5601_s2 + $0x174] sm:$0xf]  ;;  %v3461_v38 = vld [vmem:[%s5601_s2 + $0x178] sm:$0xf0]  ;;  %v4484_v41 = vor.u32 %v3854_v35, %v3339_v30  ;;  %v3179_v46 = vld [vmem:[%s4259_s23 + $0x40] sm:$0xf] }
  0x2b   : > { %v4487_v45 = vor.u32 %v3883_v37, %v3461_v38  ;;  %v3881_v47 = vld [vmem:[%s5601_s2 + $0x164] sm:$0xf]  ;;  %v3453_v49 = vld [vmem:[%s5601_s2 + $0x168] sm:$0xf0]  ;;  %v3815_v50 = vld [vmem:[%s4259_s23 + $0x4c] sm:$0xf0] }
  0x2c   : > { %944 = vmatpush.bf16.msra.mxu0 %v4319_v0  ;;  %3964 = vmatpush.bf16.msra.mxu1 %v4319_v0  ;;  %v3805_v52 = vld [vmem:[%s4259_s23 + $0x4] sm:$0xf]  ;;  %v3149_v54 = vld [vmem:[%s4259_s23 + $0x10] sm:$0xf0]  ;;  %v3187_v56 = vld [vmem:[%s4259_s23 + $0x48] sm:$0xf]  ;;  %v3180_v57 = vor.u32 %v3815_v50, %v3179_v46 }
  0x2d   : > { %1042 = vmatpush.bf16.msra.mxu2 %v4325_v5  ;;  %3472 = vmatmul.msk.bf16.gmra.mxu3 %vm905_vm1, %v4394_v42  ;;  %v4507_v59 = vor.u32 %v3805_v52, %v3149_v54  ;;  %v3445_v62 = vld [vmem:[%s5601_s2 + $0x158] sm:$0xf0]  ;;  %v3819_v2 = vld [vmem:[%s4259_s23 + $0x6c] sm:$0xf0]  ;;  %v3809_v14 = vld [vmem:[%s4259_s23 + $0x24] sm:$0xf] }
  0x2e   : > { %1137 = vmatpush.bf16.msrb.mxu3 %v4397_v43  ;;  %v3165_v22 = vld [vmem:[%s4259_s23 + $0x30] sm:$0xf0]  ;;  %v3203_v26 = vld [vmem:[%s4259_s23 + $0x68] sm:$0xf]  ;;  %v3820_v27 = vld [vmem:[%s4259_s23 + $0x74] sm:$0xf0] }
  0x2f   : > { %945 = vmatmul.bf16.vlgmr.msra.gmra.mxu0 %v4342_v15  ;;  %975 = vmatmul.bf16.vlgmr.msra.gmra.mxu1 %v4344_v16  ;;  %v4533_v35 = vor.u32 %v3809_v14, %v3165_v22  ;;  %v3823_v37 = vld [vmem:[%s4259_s23 + $0x8c] sm:$0xf0]  ;;  %v3813_v38 = vld [vmem:[%s4259_s23 + $0x44] sm:$0xf]  ;;  %v3181_v46 = vld [vmem:[%s4259_s23 + $0x50] sm:$0xf0] }
  0x30   : > { %986 = vmatpush.bf16.msrb.mxu1 %v4328_v7  ;;  %1091 = vmatpush.bf16.msrb.mxu0 %v4231_v36  ;;  %v4559_v52 = vor.u32 %v3813_v38, %v3181_v46  ;;  %v3197_v14 = vld [vmem:[%s4259_s23 + $0x70] sm:$0xf0]  ;;  %v3235_v22 = vld [vmem:[%s4259_s23 + $0xa8] sm:$0xf] }
  0x31   : > { %3965 = vmatpush.bf16.msrb.mxu2 %v4231_v36 }
  0x32   : > { %1043 = vmatmul.bf16.vlgmr.msra.gmra.mxu2 %v4349_v19  ;;  %1138 = vmatpush.bf16.msrb.mxu3 %v4422_v58 }
  0x34   : > { %987 = vmatpush.bf16.msrb.mxu1 %v4355_v21 }
  0x36   : > { %1139 = vmatpush.bf16.msrb.mxu3 %v4445_v10 }
  0x38   : > { %988 = vmatpush.bf16.msrb.mxu1 %v4380_v33 }
  0x3a   : > { %1140 = vmatpush.bf16.msrb.mxu3 %v4465_v28 }
  0x3c   : > { %989 = vmatpush.bf16.msrb.mxu1 %v4400_v44 }
  0x3d   : > { %1141 = vmatmul.bf16.vlgmr.msrb.gmra.mxu3 %v4342_v15  ;;  %v4505_v15 = vor.u32 %v3881_v47, %v3453_v49  ;;  %v3219_v47 = vld [vmem:[%s4259_s23 + $0x88] sm:$0xf]  ;;  %v3824_v49 = vld [vmem:[%s4259_s23 + $0x94] sm:$0xf0] }
  0x3e   : > { %1569 = vmatpush.bf16.msra.mxu3 %v4131_v4  ;;  %v3816_v4 = vld [vmem:[%s4259_s23 + $0x54] sm:$0xf0]  ;;  %v4561_v54 = vor.u32 %v3824_v49, %v3219_v47  ;;  %v3821_v47 = vld [vmem:[%s4259_s23 + $0x84] sm:$0xf]  ;;  %v3213_v49 = vld [vmem:[%s4259_s23 + $0x90] sm:$0xf0] }
  0x3f   : > { %950 = vmatmul.bf16.gmra.mxu0 %v3164_v3  ;;  %980 = vmatmul.bf16.gmra.mxu1 %v4440_v6  ;;  %v4509_v61 = vor.u32 %v3816_v4, %v3187_v56  ;;  %v3865_v56 = vld [vmem:[%s5601_s2 + $0xe4] sm:$0xf]  ;;  %v3389_v4 = vld [vmem:[%s5601_s2 + $0xe8] sm:$0xf0] }
  0x40   : > { %990 = vmatpush.bf16.msrb.mxu1 %v4426_v60 }
  0x42   : > { %1048 = vmatmul.bf16.gmra.mxu2 %v4442_v9  ;;  %1570 = vmatpush.bf16.msra.mxu3 %v4152_v11  ;;  %v3879_v11 = vld [vmem:[%s5601_s2 + $0x154] sm:$0xf] }
  0x43   : > { %v4521_v1 = vor.u32 %v3879_v11, %v3445_v62  ;;  %v4590_v11 = vor.u32 %v3865_v56, %v3389_v4  ;;  %v3227_v62 = vld [vmem:[%s4259_s23 + $0xa0] sm:$0xf]  ;;  %v4642_v56 = vor.u32 %v3821_v47, %v3213_v49  ;;  %v3229_v47 = vld [vmem:[%s4259_s23 + $0xb0] sm:$0xf0]  ;;  %v3810_v49 = vld [vmem:[%s4259_s23 + $0x2c] sm:$0xf] }
  0x44   : > { %991 = vmatpush.bf16.msrb.mxu1 %v4448_v13 }
  0x46   : > { %1571 = vmatpush.bf16.msra.mxu3 %v4171_v17  ;;  %v3195_v17 = vld [vmem:[%s4259_s23 + $0x60] sm:$0xf] }
  0x47   : > { %v3196_v30 = vor.u32 %v3819_v2, %v3195_v17  ;;  %v3827_v17 = vld [vmem:[%s4259_s23 + $0xac] sm:$0xf0]  ;;  %v3817_v2 = vld [vmem:[%s4259_s23 + $0x64] sm:$0xf] }
  0x48   : > { %992 = vmatpush.bf16.msrb.mxu1 %v4468_v29 }
  0x4a   : > { %1572 = vmatpush.bf16.msra.mxu3 %v4192_v23  ;;  %v4535_v23 = vor.u32 %v3820_v27, %v3203_v26  ;;  %v3828_v26 = vld [vmem:[%s4259_s23 + $0xb4] sm:$0xf0]  ;;  %v4602_v27 = vor.u32 %v3817_v2, %v3197_v14  ;;  %v3365_v2 = vld [vmem:[%s5601_s2 + $0xb8] sm:$0xf0] }
  0x4c   : > { %993 = vmatpush.bf16.msrb.mxu1 %v4484_v41 }
  0x4d   : > { %1146 = vmatmul.bf16.gmra.mxu3 %v3164_v3 }
  0x4e   : > { %1573 = vmatpush.bf16.msra.mxu3 %v4219_v32  ;;  %v3877_v32 = vld [vmem:[%s5601_s2 + $0x144] sm:$0xf] }
  0x4f   : > { %955 = vmatmul.bf16.gmra.mxu0 %v3180_v57  ;;  %994 = vmatmul.bf16.vlgmr.msrb.gmra.mxu1 %v4507_v59 }
  0x50   : > { %1231 = vmatpush.bf16.msra.mxu1 %v4487_v45 }
  0x52   : > { %1053 = vmatmul.bf16.gmra.mxu2 %v4509_v61  ;;  %1574 = vmatpush.bf16.msra.mxu3 %v4243_v39  ;;  %v3437_v39 = vld [vmem:[%s5601_s2 + $0x148] sm:$0xf0] }
  0x53   : > { %v4546_v3 = vor.u32 %v3877_v32, %v3437_v39  ;;  %v4604_v32 = vor.u32 %v3828_v26, %v3235_v22  ;;  %v3421_v39 = vld [vmem:[%s5601_s2 + $0x128] sm:$0xf0]  ;;  %v3413_v26 = vld [vmem:[%s5601_s2 + $0x118] sm:$0xf0] }
  0x54   : > { %1232 = vmatpush.bf16.msra.mxu1 %v4505_v15 }
  0x56   : > { %1575 = vmatpush.bf16.msra.mxu3 %v4274_v48  ;;  %v3211_v48 = vld [vmem:[%s4259_s23 + $0x80] sm:$0xf] }
  0x57   : > { %v3212_v50 = vor.u32 %v3823_v37, %v3211_v48  ;;  %v3861_v48 = vld [vmem:[%s5601_s2 + $0xc4] sm:$0xf]  ;;  %v3373_v37 = vld [vmem:[%s5601_s2 + $0xc8] sm:$0xf0] }
  0x58   : > { %1233 = vmatpush.bf16.msra.mxu1 %v4521_v1  ;;  %v4632_v46 = vor.u32 %v3861_v48, %v3373_v37  ;;  %v3825_v37 = vld [vmem:[%s4259_s23 + $0xa4] sm:$0xf] }
  0x5a   : > { %1576 = vmatpush.bf16.msra.mxu3 %v4319_v0  ;;  %v3875_v0 = vld [vmem:[%s5601_s2 + $0x134] sm:$0xf] }
  0x5c   : > { %1234 = vmatpush.bf16.msra.mxu1 %v4546_v3 }
  0x5d   : > { %1151 = vmatmul.bf16.gmra.mxu3 %v3180_v57 }
  0x5e   : > { %1765 = vmatpush.bf16.msrb.mxu3 %v4293_v55  ;;  %v3867_v55 = vld [vmem:[%s5601_s2 + $0xf4] sm:$0xf] }
  0x5f   : > { %960 = vmatmul.bf16.gmra.mxu0 %v3196_v30  ;;  %999 = vmatmul.bf16.gmra.mxu1 %v4533_v35 }
  0x62   : > { %1058 = vmatmul.bf16.gmra.mxu2 %v4535_v23  ;;  %1766 = vmatpush.bf16.msrb.mxu3 %v4315_v63  ;;  %v3397_v63 = vld [vmem:[%s5601_s2 + $0xf8] sm:$0xf0] }
  0x66   : > { %1767 = vmatpush.bf16.msrb.mxu3 %v4351_v20  ;;  %v4575_v20 = vor.u32 %v3867_v55, %v3397_v63  ;;  %v3806_v55 = vld [vmem:[%s4259_s23 + $0xc] sm:$0xf]  ;;  %v3157_v63 = vld [vmem:[%s4259_s23 + $0x18] sm:$0xf0] }
  0x67   : > { %v4644_v4 = vor.u32 %v3806_v55, %v3157_v63  ;;  %v3173_v55 = vld [vmem:[%s4259_s23 + $0x38] sm:$0xf0]  ;;  %v3267_v63 = vld [vmem:[%s4259_s23 + $0xe8] sm:$0xf] }
  0x68   : > { %1182 = vmatpush.bf16.msra.mxu0 %v4575_v20 }
  0x6a   : > { %1768 = vmatpush.bf16.msrb.mxu3 %v4377_v31  ;;  %v3429_v31 = vld [vmem:[%s5601_s2 + $0x138] sm:$0xf0] }
  0x6b   : > { %v4586_v57 = vor.u32 %v3875_v0, %v3429_v31  ;;  %v3251_v0 = vld [vmem:[%s4259_s23 + $0xc8] sm:$0xf]  ;;  %v3832_v31 = vld [vmem:[%s4259_s23 + $0xd4] sm:$0xf0] }
  0x6c   : > { %1183 = vmatpush.bf16.msra.mxu0 %v4590_v11 }
  0x6d   : > { %1235 = vmatpush.bf16.msra.mxu1 %v4586_v57  ;;  %1156 = vmatmul.bf16.gmra.mxu3 %v3196_v30 }
  0x6e   : > { %1769 = vmatpush.bf16.msrb.mxu3 %v4397_v43  ;;  %v3228_v43 = vor.u32 %v3827_v17, %v3227_v62  ;;  %v4646_v62 = vor.u32 %v3832_v31, %v3251_v0  ;;  %v3859_v17 = vld [vmem:[%s5601_s2 + $0xb4] sm:$0xf]  ;;  %v3836_v0 = vld [vmem:[%s4259_s23 + $0xf4] sm:$0xf0]  ;;  %v4690_v31 = vor.u32 %v3825_v37, %v3229_v47  ;;  %v3341_v37 = vld [vmem:[%s5601_s2 + $0x88] sm:$0xf0] }
  0x6f   : > { %965 = vmatmul.bf16.gmra.mxu0 %v3212_v50  ;;  %1004 = vmatmul.bf16.gmra.mxu1 %v4559_v52  ;;  %v4659_v14 = vor.u32 %v3859_v17, %v3365_v2  ;;  %v4694_v17 = vor.u32 %v3836_v0, %v3267_v63  ;;  %v3349_v2 = vld [vmem:[%s5601_s2 + $0x98] sm:$0xf0]  ;;  %v3814_v63 = vld [vmem:[%s4259_s23 + $0x4c] sm:$0xf] }
  0x70   : > { %v3189_v0 = vld [vmem:[%s4259_s23 + $0x58] sm:$0xf0] }
  0x71   : > { %5614 = vst [vmem:[#allocation4_spill] sm:$0xff] %v4694_v17 }
  0x72   : > { %1063 = vmatmul.bf16.gmra.mxu2 %v4561_v54  ;;  %1770 = vmatpush.bf16.msrb.mxu3 %v4422_v58  ;;  %v3863_v58 = vld [vmem:[%s5601_s2 + $0xd4] sm:$0xf] }
  0x76   : > { %1771 = vmatpush.bf16.msrb.mxu3 %v4445_v10  ;;  %v3381_v10 = vld [vmem:[%s5601_s2 + $0xd8] sm:$0xf0] }
  0x77   : > { %v4618_v30 = vor.u32 %v3863_v58, %v3381_v10 }
  0x79   : > { %1184 = vmatpush.bf16.msra.mxu0 %v4618_v30 }
  0x7a   : > { %1772 = vmatpush.bf16.msrb.mxu3 %v4465_v28  ;;  %v3873_v28 = vld [vmem:[%s5601_s2 + $0x124] sm:$0xf] }
  0x7b   : > { %v4629_v38 = vor.u32 %v3873_v28, %v3421_v39  ;;  %v3857_v28 = vld [vmem:[%s5601_s2 + $0xa4] sm:$0xf]  ;;  %v3357_v39 = vld [vmem:[%s5601_s2 + $0xa8] sm:$0xf0] }
  0x7c   : > { %v4681_v48 = vor.u32 %v3857_v28, %v3357_v39  ;;  %v3853_v39 = vld [vmem:[%s5601_s2 + $0x84] sm:$0xf] }
  0x7d   : > { %1236 = vmatpush.bf16.msra.mxu1 %v4629_v38  ;;  %1161 = vmatmul.bf16.gmra.mxu3 %v3212_v50  ;;  %v806_v50 = vunpack.c.h.b16 %v4197_v24  ;;  %v3871_v24 = vld [vmem:[%s5601_s2 + $0x114] sm:$0xf]  ;;  %v4724_v47 = vor.u32 %v3853_v39, %v3341_v37  ;;  %v4740_v39 = vor.u32 %v3814_v63, %v3189_v0  ;;  %v3818_v63 = vld [vmem:[%s4259_s23 + $0x6c] sm:$0xf]  ;;  %v3205_v0 = vld [vmem:[%s4259_s23 + $0x78] sm:$0xf0] }
  0x7e   : > { %1185 = vmatpush.bf16.msra.mxu0 %v4632_v46  ;;  %v4671_v10 = vor.u32 %v3871_v24, %v3413_v26  ;;  %v3869_v24 = vld [vmem:[%s5601_s2 + $0x104] sm:$0xf]  ;;  %v3405_v26 = vld [vmem:[%s5601_s2 + $0x108] sm:$0xf0] }
  0x7f   : > { %970 = vmatmul.bf16.gmra.mxu0 %v3228_v43  ;;  %1009 = vmatmul.bf16.gmra.mxu1 %v4602_v27  ;;  %v856_v22 = vpack.c.b16 %v806_v50, %v806_v50  ;;  %v4692_v50 = vor.u32 %v3810_v49, %v3173_v55  ;;  %v4715_v28 = vor.u32 %v3869_v24, %v3405_v26  ;;  %v3829_v49 = vld [vmem:[%s4259_s23 + $0xc4] sm:$0xf]  ;;  %v3245_v55 = vld [vmem:[%s4259_s23 + $0xd0] sm:$0xf0] }
  0x80   : > { %v4738_v26 = vor.u32 %v3829_v49, %v3245_v55  ;;  %v3833_v55 = vld [vmem:[%s4259_s23 + $0xe4] sm:$0xf] }
  0x81   : > { %v4669_v58 = vsel %vm930_vm0, %v856_v22, 0  ;;  %1237 = vmatpush.bf16.msra.mxu1 %v4671_v10 }
  0x82   : > { %1068 = vmatmul.bf16.gmra.mxu2 %v4604_v32  ;;  %1186 = vmatpush.bf16.msra.mxu0 %v4659_v14 }
  0x83   : > { %1287 = vmatpush.bf16.msra.mxu2 %v4669_v58 }
  0x85   : > { %1238 = vmatpush.bf16.msra.mxu1 %v4715_v28 }
  0x86   : > { %1187 = vmatpush.bf16.msra.mxu0 %v4681_v48 }
  0x89   : > { %1667 = vmatpush.bf16.msrb.mxu1 %v4142_v8 }
  0x8d   : > { %1166 = vmatmul.bf16.gmra.mxu3 %v3228_v43  ;;  %v3855_v43 = vld [vmem:[%s5601_s2 + $0x94] sm:$0xf]  ;;  %1668 = vmatpush.bf16.msrb.mxu1 %v4155_v12 }
  0x8e   : > { %v4706_v22 = vor.u32 %v3855_v43, %v3349_v2  ;;  %v3822_v43 = vld [vmem:[%s4259_s23 + $0x8c] sm:$0xf]  ;;  %v3221_v2 = vld [vmem:[%s4259_s23 + $0x98] sm:$0xf0] }
  0x8f   : > { %1014 = vmatmul.bf16.gmra.mxu1 %v4642_v56  ;;  %3465 = vmatmul.msk.bf16.vlgmr.msrb.gmra.mxu0 %vm905_vm1, %v4644_v4  ;;  %v4745_v37 = vor.u32 %v3822_v43, %v3221_v2  ;;  %v3237_v43 = vld [vmem:[%s4259_s23 + $0xb8] sm:$0xf0] }
  0x90   : > { %1188 = vmatpush.bf16.msra.mxu0 %v4706_v22 }
  0x91   : > { %1669 = vmatpush.bf16.msrb.mxu1 %v4174_v18  ;;  %v3261_v18 = vld [vmem:[%s4259_s23 + $0xf0] sm:$0xf0] }
  0x92   : > { %1073 = vmatmul.bf16.gmra.mxu2 %v4646_v62  ;;  %v4773_v42 = vor.u32 %v3833_v55, %v3261_v18 }
  0x94   : > { %1189 = vmatpush.bf16.msra.mxu0 %v4724_v47 }
  0x95   : > { %1670 = vmatpush.bf16.msrb.mxu1 %v4200_v25  ;;  %v4775_v25 = vor.u32 %v3818_v63, %v3205_v0 }
  0x98   : > { %1618 = vmatpush.bf16.msrb.mxu0 %v4328_v7 }
  0x99   : > { %1671 = vmatpush.bf16.msrb.mxu1 %v4225_v34 }
  0x9c   : > { %1619 = vmatpush.bf16.msrb.mxu0 %v4355_v21 }
  0x9d   : > { %1171 = vmatmul.bf16.gmra.mxu3 %v4344_v16  ;;  %1672 = vmatpush.bf16.msrb.mxu1 %v4246_v40 }
  0x9f   : > { %1019 = vmatmul.bf16.gmra.mxu1 %v4690_v31  ;;  %3466 = vmatmul.msk.bf16.gmra.mxu0 %vm905_vm1, %v4692_v50 }
  0xa0   : > { %v4735_v24 = vpop.f32.mrf.mxu3  ;;  %1620 = vmatpush.bf16.msrb.mxu0 %v4380_v33 }
  0xa1   : > { %1673 = vmatpush.bf16.msrb.mxu1 %v4288_v53 }
  0xa2   : > { %1078 = vmatmul.bf16.gmra.mxu2 %v4694_v17 }
  0xa4   : > { %1621 = vmatpush.bf16.msrb.mxu0 %v4400_v44 }
  0xa5   : > { %1674 = vmatpush.bf16.msrb.mxu1 %v4325_v5 }
  0xa8   : > { %v4754_v12 = vpop.f32.mrf.mxu3  ;;  %1622 = vmatpush.bf16.msrb.mxu0 %v4426_v60 }
  0xac   : > { %v946_v16 = vpop.f32.mrf.mxu0  ;;  %v4743_v8 = vpop.f32.mrf.mxu1  ;;  %1623 = vmatpush.bf16.msrb.mxu0 %v4448_v13  ;;  %v4806_v13 = vld [vmem:[%s5602_s3] sm:$0x3] }
  0xad   : > { %1176 = vmatmul.bf16.gmra.mxu3 %v4440_v6  ;;  %v4813_v53 = vperm.slane %v4806_v13, 0 }
  0xaf   : > { %1024 = vmatmul.bf16.gmra.mxu1 %v4738_v26  ;;  %3467 = vmatmul.msk.bf16.gmra.mxu0 %vm905_vm1, %v4740_v39 }
  0xb0   : > { %v4770_v33 = vpop.f32.mrf.mxu3  ;;  %1624 = vmatpush.bf16.msrb.mxu0 %v4468_v29  ;;  %v947_v29 = vadd.f32 %v946_v16, %v4813_v53 }
  0xb1   : > { %5615 = vst [vmem:[#allocation5_spill] sm:$0xff] %v4770_v33 }
  0xb2   : > { %3469 = vmatmul.msk.bf16.vlgmr.msrb.gmra.mxu2 %vm905_vm1, %v4745_v37 }
  0xb3   : > { %1723 = vmatpush.bf16.msrb.mxu2 %v4231_v36  ;;  %v3826_v36 = vld [vmem:[%s4259_s23 + $0xac] sm:$0xf]  ;;  %s4787_s23 = scalar_lea.vmem %s5600_s1, %s3803_s16 }
  0xb4   : > { %v948_v21 = vpop.f32.mrf.mxu0  ;;  %v4758_v49 = vpop.f32.mrf.mxu1  ;;  %v4779_v6 = vor.u32 %v3826_v36, %v3237_v43  ;;  %v3483_v34 = vld [vmem:[%s4787_s23] sm:$0xf]  ;;  %v3887_v40 = vld [vmem:[%s4787_s23 + $0xc] sm:$0xf0]  ;;  %1625 = vmatpush.bf16.msrb.mxu0 %v4484_v41 }
  0xb5   : > { %v1044_v7 = vpop.f32.mrf.mxu2  ;;  %v4801_v18 = vor.u32 %v3887_v40, %v3483_v34  ;;  %v3499_v41 = vld [vmem:[%s4787_s23 + $0x20] sm:$0xf]  ;;  %v3891_v33 = vld [vmem:[%s4787_s23 + $0x2c] sm:$0xf0]  ;;  %v949_v16 = vadd.f32 %v948_v21, %v4813_v53 }
  0xb8   : > { %v4798_v60 = vpop.f32.mrf.mxu3 }
  0xb9   : > { %5616 = vst [vmem:[#allocation6_spill] sm:$0xff] %v4798_v60 }
  0xbc   : > { %v951_v44 = vpop.f32.mrf.mxu0  ;;  %v4777_v17 = vpop.f32.mrf.mxu1 }
  0xbd   : > { %v1046_v2 = vpop.f32.mrf.mxu2  ;;  %1577 = vmatmul.bf16.vlgmr.msra.gmra.mxu3 %v4801_v18 }
  0xbf   : > { %1029 = vmatmul.bf16.gmra.mxu1 %v4773_v42  ;;  %3468 = vmatmul.msk.bf16.gmra.mxu0 %vm905_vm1, %v4775_v25 }
  0xc0   : > { %v4817_v43 = vpop.f32.mrf.mxu3 }
  0xc2   : > { %3470 = vmatmul.msk.bf16.gmra.mxu2 %vm905_vm1, %v4779_v6 }
  0xc4   : > { %v953_v63 = vpop.f32.mrf.mxu0  ;;  %v4808_v0 = vpop.f32.mrf.mxu1 }
  0xc5   : > { %v1049_v55 = vpop.f32.mrf.mxu2 }
  0xcc   : > { %v956_v34 = vpop.f32.mrf.mxu0  ;;  %v995_v40 = vpop.f32.mrf.mxu1 }
  0xcd   : > { %v1051_v36 = vpop.f32.mrf.mxu2  ;;  %v996_v60 = vadd.f32 %v995_v40, %v947_v29  ;;  %v4831_v40 = vor.u32 %v3891_v33, %v3499_v41 }
  0xcf   : > { %1190 = vmatmul.bf16.vlgmr.msra.gmra.mxu0 %v4507_v59  ;;  %1239 = vmatmul.bf16.vlgmr.msra.gmra.mxu1 %v4349_v19  ;;  %v4821_v5 = vadd.f32 %v1044_v7, %v996_v60  ;;  %v4834_v60 = vpop.f32.mrf.mxu3 }
  0xd0   : > { %1814 = vmatpush.bf16.msra.mxu0 %v4575_v20  ;;  %1863 = vmatpush.bf16.msra.mxu1 %v4487_v45  ;;  %v952_v45 = vadd.f32 %v951_v44, %v4813_v53 }
  0xd1   : > { %1582 = vmatmul.bf16.gmra.mxu3 %v4831_v40 }
  0xd2   : > { %3473 = vmatmul.msk.bf16.vlgmr.msra.gmra.mxu2 %vm905_vm1, %v4644_v4 }
  0xd3   : > { %1919 = vmatpush.bf16.msra.mxu2 %v4669_v58 }
  0xd4   : > { %v958_v59 = vpop.f32.mrf.mxu0  ;;  %v997_v19 = vpop.f32.mrf.mxu1  ;;  %1815 = vmatpush.bf16.msra.mxu0 %v4590_v11  ;;  %1864 = vmatpush.bf16.msra.mxu1 %v4505_v15 }
  0xd5   : > { %v1054_v29 = vpop.f32.mrf.mxu2  ;;  %v998_v7 = vadd.f32 %v997_v19, %v949_v16 }
  0xd7   : > { %v4838_v20 = vadd.f32 %v1046_v2, %v998_v7  ;;  %v4847_v15 = vpop.f32.mrf.mxu3 }
  0xd8   : > { %1816 = vmatpush.bf16.msra.mxu0 %v4618_v30  ;;  %1865 = vmatpush.bf16.msra.mxu1 %v4521_v1  ;;  %v3515_v1 = vld [vmem:[%s4787_s23 + $0x40] sm:$0xf]  ;;  %v3895_v30 = vld [vmem:[%s4787_s23 + $0x4c] sm:$0xf0] }
  0xd9   : > { %v4858_v2 = vor.u32 %v3895_v30, %v3515_v1  ;;  %v3547_v1 = vld [vmem:[%s4787_s23 + $0x80] sm:$0xf] }
  0xdc   : > { %v961_v58 = vpop.f32.mrf.mxu0  ;;  %v1000_v11 = vpop.f32.mrf.mxu1  ;;  %1817 = vmatpush.bf16.msra.mxu0 %v4632_v46  ;;  %1866 = vmatpush.bf16.msra.mxu1 %v4546_v3  ;;  %v954_v46 = vadd.f32 %v953_v63, %v4813_v53 }
  0xdd   : > { %v1056_v4 = vpop.f32.mrf.mxu2  ;;  %v1001_v21 = vadd.f32 %v1000_v11, %v952_v45 }
  0xdf   : > { %1195 = vmatmul.bf16.gmra.mxu0 %v4533_v35  ;;  %1244 = vmatmul.bf16.gmra.mxu1 %v4442_v9  ;;  %v4849_v33 = vadd.f32 %v1049_v55, %v1001_v21 }
  0xe0   : > { %1818 = vmatpush.bf16.msra.mxu0 %v4659_v14  ;;  %1867 = vmatpush.bf16.msra.mxu1 %v4586_v57  ;;  %v4866_v57 = vpop.f32.mrf.mxu3  ;;  %v957_v14 = vadd.f32 %v956_v34, %v4813_v53  ;;  %v959_v34 = vadd.f32 %v958_v59, %v4813_v53 }
  0xe1   : > { %1587 = vmatmul.bf16.gmra.mxu3 %v4858_v2 }
  0xe2   : > { %3474 = vmatmul.msk.bf16.gmra.mxu2 %vm905_vm1, %v4692_v50 }
  0xe4   : > { %v963_v35 = vpop.f32.mrf.mxu0  ;;  %v1002_v9 = vpop.f32.mrf.mxu1  ;;  %1819 = vmatpush.bf16.msra.mxu0 %v4681_v48  ;;  %1868 = vmatpush.bf16.msra.mxu1 %v4629_v38 }
  0xe5   : > { %v1059_v3 = vpop.f32.mrf.mxu2  ;;  %v1003_v44 = vadd.f32 %v1002_v9, %v954_v46  ;;  %v964_v30 = vadd.f32 %v963_v35, %v4813_v53 }
  0xe7   : > { %v4863_v50 = vadd.f32 %v1051_v36, %v1003_v44 }
  0xe8   : > { %1820 = vmatpush.bf16.msra.mxu0 %v4706_v22  ;;  %1869 = vmatpush.bf16.msra.mxu1 %v4671_v10  ;;  %v3531_v10 = vld [vmem:[%s4787_s23 + $0x60] sm:$0xf]  ;;  %v3899_v22 = vld [vmem:[%s4787_s23 + $0x6c] sm:$0xf0]  ;;  %v4881_v16 = vpop.f32.mrf.mxu3 }
  0xec   : > { %v966_v63 = vpop.f32.mrf.mxu0  ;;  %v1005_v48 = vpop.f32.mrf.mxu1  ;;  %1821 = vmatpush.bf16.msra.mxu0 %v4724_v47  ;;  %1870 = vmatpush.bf16.msra.mxu1 %v4715_v28  ;;  %v4883_v47 = vor.u32 %v3899_v22, %v3531_v10 }
  0xed   : > { %v1061_v55 = vpop.f32.mrf.mxu2  ;;  %v1006_v38 = vadd.f32 %v1005_v48, %v957_v14 }
  0xef   : > { %1200 = vmatmul.bf16.gmra.mxu0 %v4559_v52  ;;  %1249 = vmatmul.bf16.gmra.mxu1 %v4509_v61  ;;  %v4874_v36 = vadd.f32 %v1054_v29, %v1006_v38 }
  0xf0   : > { %v4889_v11 = vpop.f32.mrf.mxu3 }
  0xf1   : > { %1592 = vmatmul.bf16.gmra.mxu3 %v4883_v47 }
  0xf2   : > { %3475 = vmatmul.msk.bf16.gmra.mxu2 %vm905_vm1, %v4740_v39  ;;  %v962_v39 = vadd.f32 %v961_v58, %v4813_v53 }
  0xf4   : > { %v968_v28 = vpop.f32.mrf.mxu0  ;;  %v1007_v52 = vpop.f32.mrf.mxu1 }
  0xf5   : > { %v1064_v41 = vpop.f32.mrf.mxu2  ;;  %v1008_v19 = vadd.f32 %v1007_v52, %v959_v34  ;;  %v3563_v34 = vld [vmem:[%s4787_s23 + $0xa0] sm:$0xf]  ;;  %v3907_v52 = vld [vmem:[%s4787_s23 + $0xac] sm:$0xf0] }
  0xf7   : > { %v4886_v61 = vadd.f32 %v1056_v4, %v1008_v19  ;;  %v3903_v4 = vld [vmem:[%s4787_s23 + $0x8c] sm:$0xf0] }
  0xf8   : > { %v4900_v46 = vor.u32 %v3903_v4, %v3547_v1 }
  0xfc   : > { %v971_v7 = vpop.f32.mrf.mxu0  ;;  %v1010_v45 = vpop.f32.mrf.mxu1 }
  0xfd   : > { %v1066_v29 = vpop.f32.mrf.mxu2  ;;  %v1011_v59 = vadd.f32 %v1010_v45, %v962_v39  ;;  %v4918_v39 = vor.u32 %v3907_v52, %v3563_v34  ;;  %v972_v4 = vadd.f32 %v971_v7, %v4813_v53 }
  0xff   : > { %1205 = vmatmul.bf16.gmra.mxu0 %v4602_v27  ;;  %1254 = vmatmul.bf16.gmra.mxu1 %v4535_v23  ;;  %v4893_v21 = vadd.f32 %v1059_v3, %v1011_v59  ;;  %v4902_v27 = vpop.f32.mrf.mxu3 }
 0x101   : > { %1597 = vmatmul.bf16.gmra.mxu3 %v4900_v46 }
 0x102   : > { %3476 = vmatmul.msk.bf16.gmra.mxu2 %vm905_vm1, %v4775_v25  ;;  %v967_v25 = vadd.f32 %v966_v63, %v4813_v53  ;;  %v969_v63 = vadd.f32 %v968_v28, %v4813_v53 }
 0x104   : > { %v973_v9 = vpop.f32.mrf.mxu0  ;;  %v1012_v44 = vpop.f32.mrf.mxu1 }
 0x105   : > { %v1069_v58 = vpop.f32.mrf.mxu2  ;;  %v1013_v14 = vadd.f32 %v1012_v44, %v964_v30  ;;  %v974_v7 = vadd.f32 %v973_v9, %v4813_v53  ;;  %v977_v9 = vadd.f32 %v4743_v8, %v4813_v53  ;;  %v979_v8 = vadd.f32 %v4758_v49, %v4813_v53 }
 0x107   : > { %v4905_v23 = vadd.f32 %v1061_v55, %v1013_v14  ;;  %v4915_v55 = vpop.f32.mrf.mxu3 }
 0x10c   : > { %v1015_v48 = vpop.f32.mrf.mxu1  ;;  %v1093_v38 = vpop.f32.mrf.mxu0 }
 0x10d   : > { %v1071_v3 = vpop.f32.mrf.mxu2  ;;  %v1016_v35 = vadd.f32 %v1015_v48, %v967_v25  ;;  %v1094_v10 = vadd.f32 %v1093_v38, %v4821_v5  ;;  %v3911_v38 = vld [vmem:[%s4787_s23 + $0xcc] sm:$0xf0] }
 0x10f   : > { %1210 = vmatmul.bf16.gmra.mxu0 %v4642_v56  ;;  %1259 = vmatmul.bf16.gmra.mxu1 %v4561_v54  ;;  %v1065_v22 = vadd.f32 %v1064_v41, %v1016_v35  ;;  %v1329_v1 = vmax.f32 %v1094_v10, 0.0  ;;  %v4925_v30 = vpop.f32.mrf.mxu3 }
 0x111   : > { %1602 = vmatmul.bf16.gmra.mxu3 %v4918_v39 }
 0x112   : > { %3477 = vmatmul.msk.bf16.gmra.mxu2 %vm905_vm1, %v4745_v37 }
 0x114   : > { %v1017_v45 = vpop.f32.mrf.mxu1  ;;  %v1095_v59 = vpop.f32.mrf.mxu0 }
 0x115   : > { %v1074_v19 = vpop.f32.mrf.mxu2  ;;  %v1018_v5 = vadd.f32 %v1017_v45, %v969_v63  ;;  %v1096_v56 = vadd.f32 %v1095_v59, %v4838_v20 }
 0x117   : > { %v1331_v54 = vmax.f32 %v1096_v56, 0.0  ;;  %v1067_v37 = vadd.f32 %v1066_v29, %v1018_v5  ;;  %v3579_v29 = vld [vmem:[%s4787_s23 + $0xc0] sm:$0xf] }
 0x118   : > { %v4937_v10 = vor.u32 %v3911_v38, %v3579_v29 }
 0x119   : > { %v4922_v41 = vpack.c.bf16 %v1331_v54, %v1329_v1 }
 0x11c   : > { %v1020_v44 = vpop.f32.mrf.mxu1  ;;  %v1098_v14 = vpop.f32.mrf.mxu0 }
 0x11d   : > { %v1076_v28 = vpop.f32.mrf.mxu2  ;;  %v1021_v25 = vadd.f32 %v1020_v44, %v972_v4  ;;  %v1099_v48 = vadd.f32 %v1098_v14, %v4849_v33  ;;  %v3915_v44 = vld [vmem:[%s4787_s23 + $0xec] sm:$0xf0] }
 0x11f   : > { %1215 = vmatmul.bf16.gmra.mxu0 %v4690_v31  ;;  %1264 = vmatmul.bf16.gmra.mxu1 %v4604_v32  ;;  %v4930_v20 = vadd.f32 %v1069_v58, %v1021_v25  ;;  %v4940_v31 = vpop.f32.mrf.mxu3  ;;  %v1333_v32 = vmax.f32 %v1099_v48, 0.0 }
 0x121   : > { %1607 = vmatmul.bf16.gmra.mxu3 %v4937_v10 }
 0x122   : > { %3478 = vmatmul.msk.bf16.gmra.mxu2 %vm905_vm1, %v4779_v6 }
 0x124   : > { %v1022_v34 = vpop.f32.mrf.mxu1  ;;  %v1100_v52 = vpop.f32.mrf.mxu0 }
 0x125   : > { %v1079_v35 = vpop.f32.mrf.mxu2  ;;  %v1023_v63 = vadd.f32 %v1022_v34, %v974_v7  ;;  %v1101_v33 = vadd.f32 %v1100_v52, %v4863_v50 }
 0x127   : > { %v1335_v58 = vmax.f32 %v1101_v33, 0.0  ;;  %v4943_v6 = vadd.f32 %v1071_v3, %v1023_v63  ;;  %v4952_v4 = vpop.f32.mrf.mxu3  ;;  %v3595_v3 = vld [vmem:[%s4787_s23 + $0xe0] sm:$0xf] }
 0x128   : > { %v4960_v25 = vor.u32 %v3915_v44, %v3595_v3 }
 0x129   : > { %v4945_v45 = vpack.c.bf16 %v1335_v58, %v1333_v32 }
 0x12c   : > { %v1025_v5 = vpop.f32.mrf.mxu1  ;;  %v1103_v56 = vpop.f32.mrf.mxu0 }
 0x12d   : > { %v1081_v59 = vpop.f32.mrf.mxu2  ;;  %v1026_v1 = vadd.f32 %v1025_v5, %v977_v9  ;;  %v1104_v50 = vadd.f32 %v1103_v56, %v4874_v36 }
 0x12f   : > { %v1075_v54 = vadd.f32 %v1074_v19, %v1026_v1  ;;  %1220 = vmatmul.bf16.gmra.mxu0 %v4738_v26  ;;  %1269 = vmatmul.bf16.gmra.mxu1 %v4646_v62  ;;  %v1337_v38 = vmax.f32 %v1104_v50, 0.0  ;;  %v4966_v52 = vpop.f32.mrf.mxu3  ;;  %v5618_v50 = vld [vmem:[#allocation4_spill] sm:$0xff] }
 0x131   : > { %v1124_v62 = vadd.f32 %v4735_v24, %v1075_v54  ;;  %1612 = vmatmul.bf16.gmra.mxu3 %v4960_v25  ;;  %v5619_v54 = vld [vmem:[#allocation3_spill] sm:$0xff] }
 0x132   : > { %3479 = vmatmul.msk.bf16.gmra.mxu2 %vm905_vm1, %v4282_v51 }
 0x133   : > { %v1353_v63 = vmax.f32 %v1124_v62, 0.0  ;;  %v3885_v62 = vld [vmem:[%s4787_s23 + $0x4] sm:$0xf] }
 0x134   : > { %v1027_v36 = vpop.f32.mrf.mxu1  ;;  %v1105_v19 = vpop.f32.mrf.mxu0 }
 0x135   : > { %v1113_v14 = vpop.f32.mrf.mxu2  ;;  %v1028_v29 = vadd.f32 %v1027_v36, %v979_v8  ;;  %v1106_v26 = vadd.f32 %v1105_v19, %v4886_v61  ;;  %v4987_v8 = vperm.slane %v4806_v13, 1  ;;  %v5620_v36 = vld [vmem:[#allocation5_spill] sm:$0xff] }
 0x136   : > { %v1114_v48 = vadd.f32 %v1113_v14, %v1065_v22  ;;  %v982_v22 = vadd.f32 %v4777_v17, %v4813_v53 }
 0x137   : > { %v1077_v7 = vadd.f32 %v1076_v28, %v1028_v29  ;;  %v1339_v34 = vmax.f32 %v1106_v26, 0.0  ;;  %v4983_v3 = vpop.f32.mrf.mxu3 }
 0x138   : > { %v1345_v56 = vmax.f32 %v1114_v48, 0.0 }
 0x139   : > { %v1126_v51 = vadd.f32 %v4754_v12, %v1077_v7  ;;  %v4968_v49 = vpack.c.bf16 %v1339_v34, %v1337_v38  ;;  %v3485_v38 = vld [vmem:[%s4787_s23 + $0x10] sm:$0xf0]  ;;  %v3888_v7 = vld [vmem:[%s4787_s23 + $0x14] sm:$0xf0]  ;;  %v1143_v34 = vadd.f32 %v4817_v43, %v4987_v8 }
 0x13b   : > { %v1355_v32 = vmax.f32 %v1126_v51, 0.0  ;;  %v5621_v51 = vld [vmem:[#allocation6_spill] sm:$0xff] }
 0x13c   : > { %v1030_v58 = vpop.f32.mrf.mxu1  ;;  %v1108_v24 = vpop.f32.mrf.mxu0 }
 0x13d   : > { %v1115_v33 = vpop.f32.mrf.mxu2  ;;  %v1031_v9 = vadd.f32 %v1030_v58, %v982_v22  ;;  %v1109_v28 = vadd.f32 %v1108_v24, %v4893_v21  ;;  %v4973_v5 = vpack.c.bf16 %v1355_v32, %v1353_v63  ;;  %v3886_v22 = vld [vmem:[%s4787_s23 + $0xc] sm:$0xf]  ;;  %v3493_v63 = vld [vmem:[%s4787_s23 + $0x18] sm:$0xf0] }
 0x13e   : > { %v1116_v61 = vadd.f32 %v1115_v33, %v1067_v37  ;;  %v984_v37 = vadd.f32 %v4808_v0, %v4813_v53 }
 0x13f   : > { %5617 = vst [vmem:[#allocation7_spill] sm:$0xff] %v4973_v5  ;;  %v1080_v1 = vadd.f32 %v1079_v35, %v1031_v9  ;;  %1225 = vmatmul.bf16.gmra.mxu0 %v4773_v42  ;;  %1274 = vmatmul.bf16.gmra.mxu1 %v5618_v50  ;;  %v1341_v0 = vmax.f32 %v1109_v28, 0.0  ;;  %v5008_v28 = vor.u32 %v3886_v22, %v3493_v63  ;;  %v5010_v43 = vpop.f32.mrf.mxu3 }
 0x140   : > { %v1347_v12 = vmax.f32 %v1116_v61, 0.0  ;;  %v5003_v61 = vor.u32 %v3885_v62, %v3485_v38  ;;  %v1148_v62 = vadd.f32 %v4847_v15, %v4987_v8  ;;  %v3890_v38 = vld [vmem:[%s4787_s23 + $0x2c] sm:$0xf] }
 0x141   : > { %v1129_v19 = vadd.f32 %v5620_v36, %v1080_v1  ;;  %1773 = vmatmul.bf16.vlgmr.msrb.gmra.mxu3 %v4801_v18 }
 0x142   : > { %3480 = vmatmul.msk.bf16.gmra.mxu2 %vm905_vm1, %v5619_v54  ;;  %v4979_v17 = vpack.c.bf16 %v1347_v12, %v1345_v56 }
 0x144   : > { %v1032_v42 = vpop.f32.mrf.mxu1  ;;  %v1110_v44 = vpop.f32.mrf.mxu0 }
 0x145   : > { %v1118_v21 = vpop.f32.mrf.mxu2  ;;  %v1033_v14 = vadd.f32 %v1032_v42, %v984_v37  ;;  %v1111_v48 = vadd.f32 %v1110_v44, %v4905_v23  ;;  %v1357_v23 = vmax.f32 %v1129_v19, 0.0  ;;  %v1145_v37 = vadd.f32 %v4834_v60, %v4987_v8  ;;  %v3889_v19 = vld [vmem:[%s4787_s23 + $0x24] sm:$0xf] }
 0x146   : > { %v1119_v35 = vadd.f32 %v1118_v21, %v4930_v20  ;;  %v3491_v20 = vld [vmem:[%s4787_s23 + $0x8] sm:$0xf] }
 0x147   : > { %v1082_v29 = vadd.f32 %v1081_v59, %v1033_v14  ;;  %v1343_v26 = vmax.f32 %v1111_v48, 0.0  ;;  %v5005_v59 = vor.u32 %v3888_v7, %v3491_v20  ;;  %v5022_v48 = vpop.f32.mrf.mxu3  ;;  %v3509_v20 = vld [vmem:[%s4787_s23 + $0x38] sm:$0xf0] }
 0x148   : > { %v1349_v1 = vmax.f32 %v1119_v35, 0.0  ;;  %v5037_v63 = vor.u32 %v3890_v38, %v3509_v20 }
 0x149   : > { %v1131_v13 = vadd.f32 %v5621_v51, %v1082_v29  ;;  %v5001_v33 = vpack.c.bf16 %v1343_v26, %v1341_v0  ;;  %v3501_v0 = vld [vmem:[%s4787_s23 + $0x30] sm:$0xf0]  ;;  %v3507_v29 = vld [vmem:[%s4787_s23 + $0x28] sm:$0xf]  ;;  %v3892_v26 = vld [vmem:[%s4787_s23 + $0x34] sm:$0xf0] }
 0x14a   : > { %v5033_v7 = vor.u32 %v3889_v19, %v3501_v0  ;;  %v3525_v19 = vld [vmem:[%s4787_s23 + $0x58] sm:$0xf0] }
 0x14b   : > { %v1359_v58 = vmax.f32 %v1131_v13, 0.0 }
 0x14c   : > { %v1191_v24 = vpop.f32.mrf.mxu0  ;;  %v1240_v9 = vpop.f32.mrf.mxu1 }
 0x14d   : > { %v1120_v32 = vpop.f32.mrf.mxu2  ;;  %v1192_v56 = vadd.f32 %v1191_v24, %v1143_v34  ;;  %v5012_v12 = vpack.c.bf16 %v1359_v58, %v1357_v23  ;;  %v5035_v34 = vor.u32 %v3892_v26, %v3507_v29  ;;  %v1150_v24 = vadd.f32 %v4866_v57, %v4987_v8 }
 0x14e   : > { %v1121_v18 = vadd.f32 %v1120_v32, %v4943_v6 }
 0x14f   : > { %5622 = vst [vmem:[#allocation4_spill] sm:$0xff] %v5012_v12  ;;  %v1241_v54 = vadd.f32 %v1240_v9, %v1192_v56  ;;  %1626 = vmatmul.bf16.vlgmr.msrb.gmra.mxu0 %v5003_v61  ;;  %1675 = vmatmul.bf16.vlgmr.msrb.gmra.mxu1 %v5005_v59 }
 0x150   : > { %v1351_v50 = vmax.f32 %v1121_v18, 0.0  ;;  %v5045_v18 = vpop.f32.mrf.mxu3 }
 0x151   : > { %1778 = vmatmul.bf16.gmra.mxu3 %v4831_v40 }
 0x152   : > { %3609 = vmatmul.msk.bf16.vlgmr.msrb.gmra.mxu2 %vm905_vm1, %v5008_v28  ;;  %v5018_v6 = vpack.c.bf16 %v1351_v50, %v1349_v1 }
 0x154   : > { %5623 = vst [vmem:[#allocation3_spill] sm:$0xff] %v5018_v6  ;;  %v1193_v42 = vpop.f32.mrf.mxu0  ;;  %v1242_v44 = vpop.f32.mrf.mxu1 }
 0x155   : > { %v1289_v21 = vpop.f32.mrf.mxu2  ;;  %v1194_v14 = vadd.f32 %v1193_v42, %v1145_v37  ;;  %v3523_v42 = vld [vmem:[%s4787_s23 + $0x48] sm:$0xf] }
 0x156   : > { %v1290_v35 = vadd.f32 %v1289_v21, %v1241_v54  ;;  %v3893_v21 = vld [vmem:[%s4787_s23 + $0x44] sm:$0xf] }
 0x157   : > { %v1243_v36 = vadd.f32 %v1242_v44, %v1194_v14  ;;  %v3896_v44 = vld [vmem:[%s4787_s23 + $0x54] sm:$0xf0]  ;;  %v1153_v14 = vadd.f32 %v4881_v16, %v4987_v8 }
 0x158   : > { %v1330_v40 = vmax.f32 %v1290_v35, 0.0  ;;  %v3517_v35 = vld [vmem:[%s4787_s23 + $0x50] sm:$0xf0]  ;;  %v5058_v0 = vpop.f32.mrf.mxu3  ;;  %v5062_v26 = vor.u32 %v3896_v44, %v3523_v42  ;;  %v3898_v42 = vld [vmem:[%s4787_s23 + $0x6c] sm:$0xf] }
 0x159   : > { %v5060_v29 = vor.u32 %v3893_v21, %v3517_v35  ;;  %v3900_v21 = vld [vmem:[%s4787_s23 + $0x74] sm:$0xf0]  ;;  %v1158_v35 = vadd.f32 %v4902_v27, %v4987_v8  ;;  %v3541_v44 = vld [vmem:[%s4787_s23 + $0x78] sm:$0xf0] }
 0x15c   : > { %v1196_v13 = vpop.f32.mrf.mxu0  ;;  %v1245_v22 = vpop.f32.mrf.mxu1 }
 0x15d   : > { %v1291_v60 = vpop.f32.mrf.mxu2  ;;  %v1197_v23 = vadd.f32 %v1196_v13, %v1148_v62 }
 0x15e   : > { %v1292_v51 = vadd.f32 %v1291_v60, %v1243_v36  ;;  %v3894_v36 = vld [vmem:[%s4787_s23 + $0x4c] sm:$0xf] }
 0x15f   : > { %v1246_v58 = vadd.f32 %v1245_v22, %v1197_v23  ;;  %1631 = vmatmul.bf16.gmra.mxu0 %v5033_v7  ;;  %1680 = vmatmul.bf16.gmra.mxu1 %v5035_v34  ;;  %v5064_v60 = vor.u32 %v3894_v36, %v3525_v19  ;;  %v1155_v23 = vadd.f32 %v4889_v11, %v4987_v8 }
 0x160   : > { %v1332_v32 = vmax.f32 %v1292_v51, 0.0 }
 0x161   : > { %1783 = vmatmul.bf16.gmra.mxu3 %v4858_v2 }
 0x162   : > { %v5041_v15 = vpack.c.bf16 %v1332_v32, %v1330_v40  ;;  %3610 = vmatmul.msk.bf16.gmra.mxu2 %vm905_vm1, %v5037_v63 }
 0x164   : > { %v1198_v1 = vpop.f32.mrf.mxu0  ;;  %v1247_v50 = vpop.f32.mrf.mxu1 }
 0x165   : > { %v1294_v9 = vpop.f32.mrf.mxu2  ;;  %v1199_v54 = vadd.f32 %v1198_v1, %v1150_v24 }
 0x166   : > { %v1295_v56 = vadd.f32 %v1294_v9, %v1246_v58  ;;  %v5074_v9 = vpop.f32.mrf.mxu3 }
 0x167   : > { %v1248_v37 = vadd.f32 %v1247_v50, %v1199_v54  ;;  %v3897_v50 = vld [vmem:[%s4787_s23 + $0x64] sm:$0xf]  ;;  %v3533_v54 = vld [vmem:[%s4787_s23 + $0x70] sm:$0xf0] }
 0x168   : > { %v1334_v51 = vmax.f32 %v1295_v56, 0.0 }
 0x16c   : > { %v1201_v38 = vpop.f32.mrf.mxu0  ;;  %v1250_v20 = vpop.f32.mrf.mxu1 }
 0x16d   : > { %v1296_v57 = vpop.f32.mrf.mxu2  ;;  %v1202_v2 = vadd.f32 %v1201_v38, %v1153_v14  ;;  %v5085_v14 = vor.u32 %v3897_v50, %v3533_v54  ;;  %v5089_v38 = vor.u32 %v3898_v42, %v3541_v44  ;;  %v3549_v50 = vld [vmem:[%s4787_s23 + $0x90] sm:$0xf0]  ;;  %v3555_v54 = vld [vmem:[%s4787_s23 + $0x88] sm:$0xf]  ;;  %v3902_v42 = vld [vmem:[%s4787_s23 + $0x8c] sm:$0xf] }
 0x16e   : > { %v1297_v62 = vadd.f32 %v1296_v57, %v1248_v37  ;;  %v3539_v37 = vld [vmem:[%s4787_s23 + $0x68] sm:$0xf]  ;;  %v3557_v44 = vld [vmem:[%s4787_s23 + $0x98] sm:$0xf0] }
 0x16f   : > { %v1251_v16 = vadd.f32 %v1250_v20, %v1202_v2  ;;  %1636 = vmatmul.bf16.gmra.mxu0 %v5060_v29  ;;  %1685 = vmatmul.bf16.gmra.mxu1 %v5062_v26  ;;  %v5087_v36 = vor.u32 %v3900_v21, %v3539_v37  ;;  %v3904_v37 = vld [vmem:[%s4787_s23 + $0x94] sm:$0xf0]  ;;  %v1163_v21 = vadd.f32 %v4925_v30, %v4987_v8 }
 0x170   : > { %v1336_v13 = vmax.f32 %v1297_v62, 0.0 }
 0x171   : > { %1788 = vmatmul.bf16.gmra.mxu3 %v4883_v47 }
 0x172   : > { %3611 = vmatmul.msk.bf16.gmra.mxu2 %vm905_vm1, %v5064_v60  ;;  %v5070_v22 = vpack.c.bf16 %v1336_v13, %v1334_v51  ;;  %v5091_v51 = vpop.f32.mrf.mxu3 }
 0x174   : > { %v1203_v58 = vpop.f32.mrf.mxu0  ;;  %v1252_v24 = vpop.f32.mrf.mxu1 }
 0x175   : > { %v1299_v40 = vpop.f32.mrf.mxu2  ;;  %v1204_v56 = vadd.f32 %v1203_v58, %v1155_v23 }
 0x176   : > { %v1300_v32 = vadd.f32 %v1299_v40, %v1251_v16  ;;  %v1160_v16 = vadd.f32 %v4915_v55, %v4987_v8 }
 0x177   : > { %v1253_v1 = vadd.f32 %v1252_v24, %v1204_v56 }
 0x178   : > { %v1338_v47 = vmax.f32 %v1300_v32, 0.0 }
 0x17c   : > { %v1206_v57 = vpop.f32.mrf.mxu0  ;;  %v1255_v62 = vpop.f32.mrf.mxu1 }
 0x17d   : > { %v1301_v11 = vpop.f32.mrf.mxu2  ;;  %v1207_v20 = vadd.f32 %v1206_v57, %v1158_v35  ;;  %v5108_v35 = vpop.f32.mrf.mxu3 }
 0x17e   : > { %v1302_v19 = vadd.f32 %v1301_v11, %v1253_v1  ;;  %v3901_v1 = vld [vmem:[%s4787_s23 + $0x84] sm:$0xf] }
 0x17f   : > { %v1256_v27 = vadd.f32 %v1255_v62, %v1207_v20  ;;  %1641 = vmatmul.bf16.gmra.mxu0 %v5085_v14  ;;  %1690 = vmatmul.bf16.gmra.mxu1 %v5087_v36  ;;  %v5112_v11 = vor.u32 %v3901_v1, %v3549_v50 }
 0x180   : > { %v1340_v2 = vmax.f32 %v1302_v19, 0.0  ;;  %v5114_v19 = vor.u32 %v3904_v37, %v3555_v54  ;;  %v3905_v54 = vld [vmem:[%s4787_s23 + $0xa4] sm:$0xf]  ;;  %v3565_v37 = vld [vmem:[%s4787_s23 + $0xb0] sm:$0xf0] }
 0x181   : > { %1793 = vmatmul.bf16.gmra.mxu3 %v4900_v46 }
 0x182   : > { %3612 = vmatmul.msk.bf16.gmra.mxu2 %vm905_vm1, %v5089_v38  ;;  %v5097_v13 = vpack.c.bf16 %v1340_v2, %v1338_v47  ;;  %v5116_v47 = vor.u32 %v3902_v42, %v3557_v44  ;;  %v3908_v42 = vld [vmem:[%s4787_s23 + $0xb4] sm:$0xf0]  ;;  %v1168_v44 = vadd.f32 %v4952_v4, %v4987_v8 }
 0x184   : > { %v1208_v32 = vpop.f32.mrf.mxu0  ;;  %v1257_v58 = vpop.f32.mrf.mxu1 }
 0x185   : > { %v1304_v23 = vpop.f32.mrf.mxu2  ;;  %v1209_v24 = vadd.f32 %v1208_v32, %v1160_v16 }
 0x186   : > { %v1305_v40 = vadd.f32 %v1304_v23, %v1256_v27  ;;  %v1165_v23 = vadd.f32 %v4940_v31, %v4987_v8 }
 0x187   : > { %v1258_v56 = vadd.f32 %v1257_v58, %v1209_v24 }
 0x188   : > { %v1342_v2 = vmax.f32 %v1305_v40, 0.0  ;;  %v5126_v40 = vpop.f32.mrf.mxu3 }
 0x18c   : > { %v1211_v62 = vpop.f32.mrf.mxu0  ;;  %v1260_v20 = vpop.f32.mrf.mxu1 }
 0x18d   : > { %v1306_v55 = vpop.f32.mrf.mxu2  ;;  %v1212_v46 = vadd.f32 %v1211_v62, %v1163_v21  ;;  %v3571_v21 = vld [vmem:[%s4787_s23 + $0xa8] sm:$0xf]  ;;  %v5137_v62 = vor.u32 %v3905_v54, %v3565_v37 }
 0x18e   : > { %v1307_v57 = vadd.f32 %v1306_v55, %v1258_v56  ;;  %v3906_v55 = vld [vmem:[%s4787_s23 + $0xac] sm:$0xf] }
 0x18f   : > { %v1261_v30 = vadd.f32 %v1260_v20, %v1212_v46  ;;  %1646 = vmatmul.bf16.gmra.mxu0 %v5112_v11  ;;  %1695 = vmatmul.bf16.gmra.mxu1 %v5114_v19  ;;  %v5139_v20 = vor.u32 %v3908_v42, %v3571_v21 }
 0x190   : > { %v1344_v27 = vmax.f32 %v1307_v57, 0.0  ;;  %v3573_v57 = vld [vmem:[%s4787_s23 + $0xb8] sm:$0xf0] }
 0x191   : > { %1798 = vmatmul.bf16.gmra.mxu3 %v4918_v39 }
 0x192   : > { %3613 = vmatmul.msk.bf16.gmra.mxu2 %vm905_vm1, %v5116_v47  ;;  %v5122_v16 = vpack.c.bf16 %v1344_v27, %v1342_v2 }
 0x194   : > { %v1213_v24 = vpop.f32.mrf.mxu0  ;;  %v1262_v56 = vpop.f32.mrf.mxu1 }
 0x195   : > { %v1309_v32 = vpop.f32.mrf.mxu2  ;;  %v1214_v1 = vadd.f32 %v1213_v24, %v1165_v23  ;;  %v5143_v23 = vpop.f32.mrf.mxu3 }
 0x196   : > { %v1310_v58 = vadd.f32 %v1309_v32, %v1261_v30  ;;  %v5141_v30 = vor.u32 %v3906_v55, %v3573_v57 }
 0x197   : > { %v1263_v50 = vadd.f32 %v1262_v56, %v1214_v1  ;;  %v3940_v1 = vld [vmem:[%s5604_s5 + $0x38] sm:$0xff] }
 0x198   : > { %v1346_v32 = vmax.f32 %v1310_v58, 0.0  ;;  %v1170_v58 = vadd.f32 %v4966_v52, %v4987_v8  ;;  %2185 = vmatpush.bf16.msra.mxu3 %v3940_v1  ;;  %v3587_v52 = vld [vmem:[%s4787_s23 + $0xc8] sm:$0xf] }
 0x19c   : > { %v1216_v2 = vpop.f32.mrf.mxu0  ;;  %v1265_v27 = vpop.f32.mrf.mxu1 }
 0x19d   : > { %v1311_v31 = vpop.f32.mrf.mxu2  ;;  %v1217_v39 = vadd.f32 %v1216_v2, %v1168_v44  ;;  %v3939_v44 = vld [vmem:[%s5604_s5 + $0x30] sm:$0xff]  ;;  %v5159_v55 = vpop.f32.mrf.mxu3  ;;  %v3912_v2 = vld [vmem:[%s4787_s23 + $0xd4] sm:$0xf0] }
 0x19e   : > { %v1312_v46 = vadd.f32 %v1311_v31, %v1263_v50  ;;  %v3909_v31 = vld [vmem:[%s4787_s23 + $0xc4] sm:$0xf]  ;;  %2186 = vmatpush.bf16.msra.mxu3 %v3939_v44 }
 0x19f   : > { %v1266_v56 = vadd.f32 %v1265_v27, %v1217_v39  ;;  %1651 = vmatmul.bf16.gmra.mxu0 %v5137_v62  ;;  %1700 = vmatmul.bf16.gmra.mxu1 %v5139_v20  ;;  %v1173_v27 = vadd.f32 %v4983_v3, %v4987_v8  ;;  %v3910_v39 = vld [vmem:[%s4787_s23 + $0xcc] sm:$0xf]  ;;  %v3937_v3 = vld [vmem:[%s5604_s5 + $0x20] sm:$0xff] }
 0x1a0   : > { %v1348_v24 = vmax.f32 %v1312_v46, 0.0  ;;  %v3581_v46 = vld [vmem:[%s4787_s23 + $0xd0] sm:$0xf0] }
 0x1a1   : > { %1803 = vmatmul.bf16.gmra.mxu3 %v4937_v10  ;;  %v5173_v1 = vor.u32 %v3909_v31, %v3581_v46  ;;  %v1175_v46 = vadd.f32 %v5010_v43, %v4987_v8  ;;  %v1178_v43 = vadd.f32 %v5022_v48, %v4987_v8 }
 0x1a2   : > { %3614 = vmatmul.msk.bf16.gmra.mxu2 %vm905_vm1, %v5141_v30  ;;  %v5149_v4 = vpack.c.bf16 %v1348_v24, %v1346_v32  ;;  %v3589_v32 = vld [vmem:[%s4787_s23 + $0xd8] sm:$0xf0]  ;;  %v3938_v24 = vld [vmem:[%s5604_s5 + $0x28] sm:$0xff] }
 0x1a3   : > { %2187 = vmatpush.bf16.msra.mxu3 %v3938_v24 }
 0x1a4   : > { %5624 = vst [vmem:[#allocation5_spill] sm:$0xff] %v5149_v4  ;;  %v1218_v37 = vpop.f32.mrf.mxu0  ;;  %v1267_v21 = vpop.f32.mrf.mxu1 }
 0x1a5   : > { %v1314_v50 = vpop.f32.mrf.mxu2  ;;  %v1219_v42 = vadd.f32 %v1218_v37, %v1170_v58  ;;  %v5175_v58 = vor.u32 %v3912_v2, %v3587_v52  ;;  %v5188_v31 = vpop.f32.mrf.mxu3 }
 0x1a6   : > { %v1315_v54 = vadd.f32 %v1314_v50, %v1266_v56 }
 0x1a7   : > { %v1268_v57 = vadd.f32 %v1267_v21, %v1219_v42  ;;  %v5177_v21 = vor.u32 %v3910_v39, %v3589_v32  ;;  %2188 = vmatpush.bf16.msra.mxu3 %v3937_v3  ;;  %v3934_v3 = vld [vmem:[%s5604_s5 + $0x8] sm:$0xff] }
 0x1a8   : > { %v1350_v44 = vmax.f32 %v1315_v54, 0.0  ;;  %v3936_v54 = vld [vmem:[%s5604_s5 + $0x18] sm:$0xff] }
 0x1ab   : > { %2189 = vmatpush.bf16.msra.mxu3 %v3936_v54 }
 0x1ac   : > { %v1221_v10 = vpop.f32.mrf.mxu0  ;;  %v1270_v37 = vpop.f32.mrf.mxu1 }
 0x1ad   : > { %v1316_v56 = vpop.f32.mrf.mxu2  ;;  %v1222_v42 = vadd.f32 %v1221_v10, %v1173_v27  ;;  %v3603_v10 = vld [vmem:[%s4787_s23 + $0xe8] sm:$0xf] }
 0x1ae   : > { %v1317_v50 = vadd.f32 %v1316_v56, %v1268_v57  ;;  %v3913_v56 = vld [vmem:[%s4787_s23 + $0xe4] sm:$0xf] }
 0x1af   : > { %v1271_v5 = vadd.f32 %v1270_v37, %v1222_v42  ;;  %1656 = vmatmul.bf16.gmra.mxu0 %v5173_v1  ;;  %1705 = vmatmul.bf16.gmra.mxu1 %v5175_v58  ;;  %v3916_v37 = vld [vmem:[%s4787_s23 + $0xf4] sm:$0xf0]  ;;  %v3605_v42 = vld [vmem:[%s4787_s23 + $0xf8] sm:$0xf0] }
 0x1b0   : > { %v1352_v12 = vmax.f32 %v1317_v50, 0.0  ;;  %v3597_v50 = vld [vmem:[%s4787_s23 + $0xf0] sm:$0xf0] }
 0x1b1   : > { %1808 = vmatmul.bf16.gmra.mxu3 %v4960_v25 }
 0x1b2   : > { %3615 = vmatmul.msk.bf16.gmra.mxu2 %vm905_vm1, %v5177_v21  ;;  %v5186_v57 = vpack.c.bf16 %v1352_v12, %v1350_v44  ;;  %v3935_v12 = vld [vmem:[%s5604_s5 + $0x10] sm:$0xff]  ;;  %v5210_v44 = vpop.f32.mrf.mxu3 }
 0x1b3   : > { %2190 = vmatpush.bf16.msra.mxu3 %v3935_v12  ;;  %v3933_v12 = vld [vmem:[%s5604_s5] sm:$0xff] }
 0x1b4   : > { %5625 = vst [vmem:[#allocation6_spill] sm:$0xff] %v5186_v57  ;;  %v1223_v27 = vpop.f32.mrf.mxu0  ;;  %v1272_v39 = vpop.f32.mrf.mxu1 }
 0x1b5   : > { %v1319_v52 = vpop.f32.mrf.mxu2  ;;  %v1224_v32 = vadd.f32 %v1223_v27, %v1175_v46  ;;  %v5212_v46 = vor.u32 %v3913_v56, %v3597_v50  ;;  %v1180_v50 = vadd.f32 %v5045_v18, %v4987_v8  ;;  %v1579_v18 = vadd.f32 %v5058_v0, %v4813_v53  ;;  %v3947_v0 = vld [vmem:[%s5604_s5 + $0x70] sm:$0xff] }
 0x1b6   : > { %v1320_v2 = vadd.f32 %v1319_v52, %v1271_v5  ;;  %v3914_v5 = vld [vmem:[%s4787_s23 + $0xec] sm:$0xf]  ;;  %v5214_v52 = vor.u32 %v3916_v37, %v3603_v10 }
 0x1b7   : > { %v1273_v24 = vadd.f32 %v1272_v39, %v1224_v32  ;;  %v5216_v32 = vor.u32 %v3914_v5, %v3605_v42  ;;  %2191 = vmatpush.bf16.msra.mxu3 %v3934_v3 }
 0x1b8   : > { %v1354_v57 = vmax.f32 %v1320_v2, 0.0  ;;  %v3948_v2 = vld [vmem:[%s5604_s5 + $0x78] sm:$0xff] }
 0x1b9   : > { %2234 = vmatpush.bf16.msrb.mxu0 %v3948_v2 }
 0x1ba   : > { %v5235_v42 = vpop.f32.mrf.mxu3 }
 0x1bb   : > { %2192 = vmatpush.bf16.msra.mxu3 %v3933_v12 }
 0x1bc   : > { %v1226_v27 = vpop.f32.mrf.mxu0  ;;  %v1275_v39 = vpop.f32.mrf.mxu1 }
 0x1bd   : > { %v1321_v54 = vpop.f32.mrf.mxu2  ;;  %v1227_v48 = vadd.f32 %v1226_v27, %v1178_v43  ;;  %2235 = vmatpush.bf16.msrb.mxu0 %v3947_v0 }
 0x1be   : > { %v1322_v25 = vadd.f32 %v1321_v54, %v1273_v24  ;;  %v3932_v24 = vld [vmem:[%s5603_s4 + $0x78] sm:$0xff] }
 0x1bf   : > { %v1276_v4 = vadd.f32 %v1275_v39, %v1227_v48  ;;  %1661 = vmatmul.bf16.gmra.mxu0 %v5212_v46  ;;  %1710 = vmatmul.bf16.gmra.mxu1 %v5214_v52 }
 0x1c0   : > { %v1356_v6 = vmax.f32 %v1322_v25, 0.0  ;;  %2428 = vmatpush.bf16.msrb.mxu2 %v3932_v24  ;;  %v3931_v24 = vld [vmem:[%s5603_s4 + $0x70] sm:$0xff] }
 0x1c2   : > { %3616 = vmatmul.msk.bf16.gmra.mxu2 %vm905_vm1, %v5216_v32  ;;  %v5228_v56 = vpack.c.bf16 %v1356_v6, %v1354_v57  ;;  %v3924_v6 = vld [vmem:[%s5603_s4 + $0x38] sm:$0xff]  ;;  %v5242_v12 = vpop.f32.mrf.mxu3 }
 0x1c3   : > { %2379 = vmatpush.bf16.msrb.mxu1 %v3924_v6 }
 0x1c4   : > { %v1228_v43 = vpop.f32.mrf.mxu0  ;;  %v1277_v5 = vpop.f32.mrf.mxu1  ;;  %2429 = vmatpush.bf16.msrb.mxu2 %v3931_v24  ;;  %v3930_v24 = vld [vmem:[%s5603_s4 + $0x68] sm:$0xff] }
 0x1c5   : > { %v1324_v10 = vpop.f32.mrf.mxu2  ;;  %v1229_v3 = vadd.f32 %v1228_v43, %v1180_v50 }
 0x1c6   : > { %v1325_v37 = vadd.f32 %v1324_v10, %v1276_v4 }
 0x1c7   : > { %v1278_v57 = vadd.f32 %v1277_v5, %v1229_v3  ;;  %v3923_v5 = vld [vmem:[%s5603_s4 + $0x30] sm:$0xff] }
 0x1c8   : > { %v1358_v4 = vmax.f32 %v1325_v37, 0.0  ;;  %2380 = vmatpush.bf16.msrb.mxu1 %v3923_v5  ;;  %2430 = vmatpush.bf16.msrb.mxu2 %v3930_v24 }
 0x1ca   : > { %v5261_v3 = vpop.f32.mrf.mxu3 }
 0x1cc   : > { %v1627_v27 = vpop.f32.mrf.mxu0  ;;  %v1676_v39 = vpop.f32.mrf.mxu1 }
 0x1cd   : > { %v1326_v54 = vpop.f32.mrf.mxu2  ;;  %v1628_v50 = vadd.f32 %v1627_v27, %v1579_v18 }
 0x1ce   : > { %v1327_v25 = vadd.f32 %v1326_v54, %v1278_v57 }
 0x1cf   : > { %1822 = vmatmul.bf16.vlgmr.msra.gmra.mxu0 %v5003_v61  ;;  %1871 = vmatmul.bf16.vlgmr.msra.gmra.mxu1 %v5005_v59  ;;  %v1581_v61 = vadd.f32 %v5074_v9, %v4813_v53  ;;  %v1584_v9 = vadd.f32 %v5091_v51, %v4813_v53  ;;  %v3946_v51 = vld [vmem:[%s5604_s5 + $0x68] sm:$0xff] }
 0x1d0   : > { %v1360_v48 = vmax.f32 %v1327_v25, 0.0  ;;  %2236 = vmatpush.bf16.msrb.mxu0 %v3946_v51  ;;  %v3921_v51 = vld [vmem:[%s5603_s4 + $0x20] sm:$0xff] }
 0x1d2   : > { %3617 = vmatmul.msk.bf16.vlgmr.msra.gmra.mxu2 %vm905_vm1, %v5008_v28  ;;  %v5251_v2 = vpack.c.bf16 %v1360_v48, %v1358_v4  ;;  %v1677_v28 = vadd.f32 %v1676_v39, %v1628_v50  ;;  %v5275_v0 = vpop.f32.mrf.mxu3 }
 0x1d4   : > { %v1629_v59 = vpop.f32.mrf.mxu0  ;;  %v1678_v37 = vpop.f32.mrf.mxu1 }
 0x1d5   : > { %v1725_v10 = vpop.f32.mrf.mxu2  ;;  %v1630_v43 = vadd.f32 %v1629_v59, %v1581_v61 }
 0x1d6   : > { %v1726_v6 = vadd.f32 %v1725_v10, %v1677_v28 }
 0x1d7   : > { %v1679_v57 = vadd.f32 %v1678_v37, %v1630_v43  ;;  %v3922_v37 = vld [vmem:[%s5603_s4 + $0x28] sm:$0xff] }
 0x1d8   : > { %v1961_v4 = vmax.f32 %v1726_v6, 0.0  ;;  %2381 = vmatpush.bf16.msrb.mxu1 %v3922_v37 }
 0x1dc   : > { %v1632_v27 = vpop.f32.mrf.mxu0  ;;  %v1681_v18 = vpop.f32.mrf.mxu1  ;;  %2382 = vmatpush.bf16.msrb.mxu1 %v3921_v51 }
 0x1dd   : > { %v1727_v54 = vpop.f32.mrf.mxu2  ;;  %v1633_v50 = vadd.f32 %v1632_v27, %v1584_v9 }
 0x1de   : > { %v1728_v25 = vadd.f32 %v1727_v54, %v1679_v57 }
 0x1df   : > { %1827 = vmatmul.bf16.gmra.mxu0 %v5033_v7  ;;  %1876 = vmatmul.bf16.gmra.mxu1 %v5035_v34  ;;  %v1586_v34 = vadd.f32 %v5108_v35, %v4813_v53  ;;  %v1589_v35 = vadd.f32 %v5126_v40, %v4813_v53  ;;  %v3945_v40 = vld [vmem:[%s5604_s5 + $0x60] sm:$0xff] }
 0x1e0   : > { %v1963_v48 = vmax.f32 %v1728_v25, 0.0  ;;  %v5282_v25 = vpop.f32.mrf.mxu3  ;;  %2237 = vmatpush.bf16.msrb.mxu0 %v3945_v40 }
 0x1e2   : > { %v2041_v39 = vpack.c.bf16 %v1963_v48, %v1961_v4  ;;  %3618 = vmatmul.msk.bf16.gmra.mxu2 %vm905_vm1, %v5037_v63  ;;  %v1682_v63 = vadd.f32 %v1681_v18, %v1633_v50  ;;  %v3929_v4 = vld [vmem:[%s5603_s4 + $0x60] sm:$0xff] }
 0x1e3   : > { %2431 = vmatpush.bf16.msrb.mxu2 %v3929_v4 }
 0x1e4   : > { %2193 = vmatmul.bf16.vlgmr.msra.gmra.mxu3 %v2041_v39  ;;  %v1634_v10 = vpop.f32.mrf.mxu0  ;;  %v1683_v61 = vpop.f32.mrf.mxu1 }
 0x1e5   : > { %v1730_v7 = vpop.f32.mrf.mxu2  ;;  %v1635_v59 = vadd.f32 %v1634_v10, %v1586_v34 }
 0x1e6   : > { %v1731_v28 = vadd.f32 %v1730_v7, %v1682_v63 }
 0x1e7   : > { %v1684_v43 = vadd.f32 %v1683_v61, %v1635_v59 }
 0x1e8   : > { %v1965_v27 = vmax.f32 %v1731_v28, 0.0  ;;  %v5301_v7 = vpop.f32.mrf.mxu3 }
 0x1ec   : > { %v1637_v57 = vpop.f32.mrf.mxu0  ;;  %v1686_v54 = vpop.f32.mrf.mxu1 }
 0x1ed   : > { %v1732_v5 = vpop.f32.mrf.mxu2  ;;  %v1638_v48 = vadd.f32 %v1637_v57, %v1589_v35 }
 0x1ee   : > { %v1733_v6 = vadd.f32 %v1732_v5, %v1684_v43 }
 0x1ef   : > { %1832 = vmatmul.bf16.gmra.mxu0 %v5060_v29  ;;  %1881 = vmatmul.bf16.gmra.mxu1 %v5062_v26  ;;  %v1591_v29 = vadd.f32 %v5143_v23, %v4813_v53  ;;  %v1594_v23 = vadd.f32 %v5159_v55, %v4813_v53  ;;  %v3944_v55 = vld [vmem:[%s5604_s5 + $0x58] sm:$0xff] }
 0x1f0   : > { %v1967_v9 = vmax.f32 %v1733_v6, 0.0  ;;  %v3928_v6 = vld [vmem:[%s5603_s4 + $0x58] sm:$0xff]  ;;  %v5312_v57 = vpop.f32.mrf.mxu3  ;;  %2238 = vmatpush.bf16.msrb.mxu0 %v3944_v55 }
 0x1f1   : > { %2432 = vmatpush.bf16.msrb.mxu2 %v3928_v6 }
 0x1f2   : > { %3619 = vmatmul.msk.bf16.gmra.mxu2 %vm905_vm1, %v5064_v60  ;;  %v2043_v18 = vpack.c.bf16 %v1967_v9, %v1965_v27  ;;  %v1687_v60 = vadd.f32 %v1686_v54, %v1638_v48 }
 0x1f4   : > { %2198 = vmatmul.bf16.gmra.mxu3 %v2043_v18  ;;  %v1639_v26 = vpop.f32.mrf.mxu0  ;;  %v1688_v24 = vpop.f32.mrf.mxu1  ;;  %v3920_v18 = vld [vmem:[%s5603_s4 + $0x18] sm:$0xff] }
 0x1f5   : > { %v1735_v39 = vpop.f32.mrf.mxu2  ;;  %v1640_v50 = vadd.f32 %v1639_v26, %v1591_v29  ;;  %2383 = vmatpush.bf16.msrb.mxu1 %v3920_v18 }
 0x1f6   : > { %v1736_v34 = vadd.f32 %v1735_v39, %v1687_v60 }
 0x1f7   : > { %v1689_v10 = vadd.f32 %v1688_v24, %v1640_v50 }
 0x1f8   : > { %v1969_v28 = vmax.f32 %v1736_v34, 0.0  ;;  %v5322_v40 = vpop.f32.mrf.mxu3  ;;  %v3927_v34 = vld [vmem:[%s5603_s4 + $0x50] sm:$0xff] }
 0x1f9   : > { %2433 = vmatpush.bf16.msrb.mxu2 %v3927_v34 }
 0x1fc   : > { %v1642_v59 = vpop.f32.mrf.mxu0  ;;  %v1691_v37 = vpop.f32.mrf.mxu1 }
 0x1fd   : > { %v1737_v61 = vpop.f32.mrf.mxu2  ;;  %v1643_v54 = vadd.f32 %v1642_v59, %v1594_v23  ;;  %v3919_v23 = vld [vmem:[%s5603_s4 + $0x10] sm:$0xff] }
 0x1fe   : > { %v1738_v63 = vadd.f32 %v1737_v61, %v1689_v10  ;;  %2384 = vmatpush.bf16.msrb.mxu1 %v3919_v23 }
 0x1ff   : > { %1837 = vmatmul.bf16.gmra.mxu0 %v5085_v14  ;;  %1886 = vmatmul.bf16.gmra.mxu1 %v5087_v36  ;;  %v1596_v36 = vadd.f32 %v5188_v31, %v4813_v53  ;;  %v1692_v27 = vadd.f32 %v1691_v37, %v1643_v54  ;;  %v1599_v31 = vadd.f32 %v5210_v44, %v4813_v53  ;;  %v3943_v44 = vld [vmem:[%s5604_s5 + $0x50] sm:$0xff] }
 0x200   : > { %v1971_v43 = vmax.f32 %v1738_v63, 0.0  ;;  %2239 = vmatpush.bf16.msrb.mxu0 %v3943_v44 }
 0x202   : > { %3620 = vmatmul.msk.bf16.gmra.mxu2 %vm905_vm1, %v5089_v38  ;;  %v2045_v5 = vpack.c.bf16 %v1971_v43, %v1969_v28 }
 0x204   : > { %2203 = vmatmul.bf16.gmra.mxu3 %v2045_v5  ;;  %v1644_v35 = vpop.f32.mrf.mxu0  ;;  %v1693_v38 = vpop.f32.mrf.mxu1 }
 0x205   : > { %v1740_v14 = vpop.f32.mrf.mxu2  ;;  %v1645_v9 = vadd.f32 %v1644_v35, %v1596_v36 }
 0x206   : > { %v1741_v4 = vadd.f32 %v1740_v14, %v1692_v27  ;;  %v3926_v27 = vld [vmem:[%s5603_s4 + $0x48] sm:$0xff] }
 0x207   : > { %v1694_v48 = vadd.f32 %v1693_v38, %v1645_v9  ;;  %2434 = vmatpush.bf16.msrb.mxu2 %v3926_v27 }
 0x208   : > { %v1973_v60 = vmax.f32 %v1741_v4, 0.0 }
 0x20c   : > { %v1647_v26 = vpop.f32.mrf.mxu0  ;;  %v1696_v24 = vpop.f32.mrf.mxu1 }
 0x20d   : > { %v1742_v39 = vpop.f32.mrf.mxu2  ;;  %v1648_v10 = vadd.f32 %v1647_v26, %v1599_v31 }
 0x20e   : > { %v1743_v29 = vadd.f32 %v1742_v39, %v1694_v48  ;;  %v3918_v39 = vld [vmem:[%s5603_s4 + $0x8] sm:$0xff] }
 0x20f   : > { %1842 = vmatmul.bf16.gmra.mxu0 %v5112_v11  ;;  %1891 = vmatmul.bf16.gmra.mxu1 %v5114_v19  ;;  %v1601_v11 = vadd.f32 %v5235_v42, %v4813_v53  ;;  %v1697_v59 = vadd.f32 %v1696_v24, %v1648_v10  ;;  %v1604_v42 = vadd.f32 %v5242_v12, %v4813_v53  ;;  %v3942_v12 = vld [vmem:[%s5604_s5 + $0x48] sm:$0xff] }
 0x210   : > { %v1975_v50 = vmax.f32 %v1743_v29, 0.0  ;;  %2240 = vmatpush.bf16.msrb.mxu0 %v3942_v12  ;;  %2385 = vmatpush.bf16.msrb.mxu1 %v3918_v39  ;;  %v1609_v10 = vadd.f32 %v5275_v0, %v4813_v53  ;;  %v1611_v0 = vadd.f32 %v5282_v25, %v4813_v53  ;;  %v1616_v12 = vadd.f32 %v5312_v57, %v4813_v53 }
 0x212   : > { %3621 = vmatmul.msk.bf16.gmra.mxu2 %vm905_vm1, %v5116_v47  ;;  %v2047_v51 = vpack.c.bf16 %v1975_v50, %v1973_v60  ;;  %v5338_v47 = vpop.f32.mrf.mxu3  ;;  %v3917_v60 = vld [vmem:[%s5603_s4] sm:$0xff] }
 0x214   : > { %2208 = vmatmul.bf16.gmra.mxu3 %v2047_v51  ;;  %v1649_v19 = vpop.f32.mrf.mxu0  ;;  %v1698_v63 = vpop.f32.mrf.mxu1  ;;  %2386 = vmatpush.bf16.msrb.mxu1 %v3917_v60 }
 0x215   : > { %v1745_v61 = vpop.f32.mrf.mxu2  ;;  %v1650_v37 = vadd.f32 %v1649_v19, %v1601_v11 }
 0x216   : > { %v1746_v28 = vadd.f32 %v1745_v61, %v1697_v59 }
 0x217   : > { %v1699_v43 = vadd.f32 %v1698_v63, %v1650_v37  ;;  %v3941_v63 = vld [vmem:[%s5604_s5 + $0x40] sm:$0xff] }
 0x218   : > { %v1977_v14 = vmax.f32 %v1746_v28, 0.0  ;;  %2241 = vmatpush.bf16.msrb.mxu0 %v3941_v63 }
 0x21a   : > { %v5345_v35 = vpop.f32.mrf.mxu3 }
 0x21c   : > { %v1652_v54 = vpop.f32.mrf.mxu0  ;;  %v1701_v55 = vpop.f32.mrf.mxu1 }
 0x21d   : > { %v1747_v5 = vpop.f32.mrf.mxu2  ;;  %v1653_v9 = vadd.f32 %v1652_v54, %v1604_v42  ;;  %v1614_v42 = vadd.f32 %v5301_v7, %v4813_v53 }
 0x21e   : > { %v1748_v6 = vadd.f32 %v1747_v5, %v1699_v43 }
 0x21f   : > { %1847 = vmatmul.bf16.gmra.mxu0 %v5137_v62  ;;  %1896 = vmatmul.bf16.gmra.mxu1 %v5139_v20  ;;  %v1606_v62 = vadd.f32 %v5261_v3, %v4813_v53  ;;  %v3925_v3 = vld [vmem:[%s5603_s4 + $0x40] sm:$0xff] }
 0x220   : > { %v1979_v36 = vmax.f32 %v1748_v6, 0.0  ;;  %2435 = vmatpush.bf16.msrb.mxu2 %v3925_v3 }
 0x222   : > { %3622 = vmatmul.msk.bf16.gmra.mxu2 %vm905_vm1, %v5141_v30  ;;  %v2049_v38 = vpack.c.bf16 %v1979_v36, %v1977_v14  ;;  %v1702_v30 = vadd.f32 %v1701_v55, %v1653_v9  ;;  %v5362_v29 = vpop.f32.mrf.mxu3 }
 0x224   : > { %2213 = vmatmul.bf16.gmra.mxu3 %v2049_v38  ;;  %v1654_v20 = vpop.f32.mrf.mxu0  ;;  %v1703_v4 = vpop.f32.mrf.mxu1 }
 0x225   : > { %v1750_v18 = vpop.f32.mrf.mxu2  ;;  %v1655_v48 = vadd.f32 %v1654_v20, %v1606_v62 }
 0x226   : > { %v1751_v26 = vadd.f32 %v1750_v18, %v1702_v30 }
 0x227   : > { %v1704_v24 = vadd.f32 %v1703_v4, %v1655_v48 }
 0x228   : > { %v1981_v44 = vmax.f32 %v1751_v26, 0.0 }
 0x22a   : > { %v5379_v59 = vpop.f32.mrf.mxu3 }
 0x22c   : > { %v1657_v51 = vpop.f32.mrf.mxu0  ;;  %v1706_v34 = vpop.f32.mrf.mxu1 }
 0x22d   : > { %v1752_v31 = vpop.f32.mrf.mxu2  ;;  %v1658_v19 = vadd.f32 %v1657_v51, %v1609_v10 }
 0x22e   : > { %v1753_v50 = vadd.f32 %v1752_v31, %v1704_v24 }
 0x22f   : > { %1852 = vmatmul.bf16.gmra.mxu0 %v5173_v1  ;;  %1901 = vmatmul.bf16.gmra.mxu1 %v5175_v58  ;;  %v1707_v58 = vadd.f32 %v1706_v34, %v1658_v19 }
 0x230   : > { %v1983_v61 = vmax.f32 %v1753_v50, 0.0  ;;  %v1777_v50 = vadd.f32 %v5338_v47, %v4987_v8 }
 0x232   : > { %3623 = vmatmul.msk.bf16.gmra.mxu2 %vm905_vm1, %v5177_v21  ;;  %v2051_v11 = vpack.c.bf16 %v1983_v61, %v1981_v44  ;;  %v5385_v14 = vpop.f32.mrf.mxu3 }
 0x234   : > { %2218 = vmatmul.bf16.gmra.mxu3 %v2051_v11  ;;  %v1659_v23 = vpop.f32.mrf.mxu0  ;;  %v1708_v1 = vpop.f32.mrf.mxu1 }
 0x235   : > { %v1755_v37 = vpop.f32.mrf.mxu2  ;;  %v1660_v28 = vadd.f32 %v1659_v23, %v1611_v0 }
 0x236   : > { %v1756_v43 = vadd.f32 %v1755_v37, %v1707_v58  ;;  %v1780_v37 = vadd.f32 %v5345_v35, %v4987_v8  ;;  %v3955_v35 = vld [vmem:[%s5606_s7 + $0x30] sm:$0xff] }
 0x237   : > { %v1709_v21 = vadd.f32 %v1708_v1, %v1660_v28  ;;  %v1782_v28 = vadd.f32 %v5362_v29, %v4987_v8 }
 0x238   : > { %v1985_v36 = vmax.f32 %v1756_v43, 0.0 }
 0x23a   : > { %v5393_v4 = vpop.f32.mrf.mxu3 }
 0x23c   : > { %v1662_v54 = vpop.f32.mrf.mxu0  ;;  %v1711_v55 = vpop.f32.mrf.mxu1 }
 0x23d   : > { %v1757_v5 = vpop.f32.mrf.mxu2  ;;  %v1663_v27 = vadd.f32 %v1662_v54, %v1614_v42 }
 0x23e   : > { %v1758_v6 = vadd.f32 %v1757_v5, %v1709_v21 }
 0x23f   : > { %1857 = vmatmul.bf16.gmra.mxu0 %v5212_v46  ;;  %1906 = vmatmul.bf16.gmra.mxu1 %v5214_v52  ;;  %v1712_v62 = vadd.f32 %v1711_v55, %v1663_v27 }
 0x240   : > { %v1987_v38 = vmax.f32 %v1758_v6, 0.0 }
 0x242   : > { %3624 = vmatmul.msk.bf16.gmra.mxu2 %vm905_vm1, %v5216_v32  ;;  %v2053_v25 = vpack.c.bf16 %v1987_v38, %v1985_v36  ;;  %v1775_v32 = vadd.f32 %v5322_v40, %v4987_v8  ;;  %v5399_v57 = vpop.f32.mrf.mxu3  ;;  %v3956_v40 = vld [vmem:[%s5606_s7 + $0x38] sm:$0xff]  ;;  %v1785_v38 = vadd.f32 %v5379_v59, %v4987_v8  ;;  %v3954_v59 = vld [vmem:[%s5606_s7 + $0x28] sm:$0xff] }
 0x243   : > { %2589 = vmatpush.bf16.msrb.mxu3 %v3956_v40 }
 0x244   : > { %2223 = vmatmul.bf16.gmra.mxu3 %v2053_v25  ;;  %v1664_v18 = vpop.f32.mrf.mxu0  ;;  %v1713_v7 = vpop.f32.mrf.mxu1 }
 0x245   : > { %v1760_v9 = vpop.f32.mrf.mxu2  ;;  %v1665_v20 = vadd.f32 %v1664_v18, %v1616_v12 }
 0x246   : > { %v1761_v30 = vadd.f32 %v1760_v9, %v1712_v62 }
 0x247   : > { %v1714_v46 = vadd.f32 %v1713_v7, %v1665_v20  ;;  %2590 = vmatpush.bf16.msrb.mxu3 %v3955_v35  ;;  %v1787_v7 = vadd.f32 %v5385_v14, %v4987_v8 }
 0x248   : > { %v1989_v24 = vmax.f32 %v1761_v30, 0.0 }
 0x24a   : > { %v1794_v9 = vpop.f32.mrf.mxu3 }
 0x24b   : > { %2591 = vmatpush.bf16.msrb.mxu3 %v3954_v59 }
 0x24c   : > { %v1823_v39 = vpop.f32.mrf.mxu0  ;;  %v1872_v26 = vpop.f32.mrf.mxu1 }
 0x24d   : > { %v1762_v48 = vpop.f32.mrf.mxu2  ;;  %v1824_v60 = vadd.f32 %v1823_v39, %v1775_v32 }
 0x24e   : > { %v1763_v52 = vadd.f32 %v1762_v48, %v1714_v46 }
 0x24f   : > { %2387 = vmatmul.bf16.vlgmr.msrb.gmra.mxu1 %v4922_v41  ;;  %v1873_v10 = vadd.f32 %v1872_v26, %v1824_v60 }
 0x250   : > { %v1991_v31 = vmax.f32 %v1763_v52, 0.0 }
 0x252   : > { %2436 = vmatmul.bf16.vlgmr.msrb.gmra.mxu2 %v5041_v15  ;;  %v2055_v53 = vpack.c.bf16 %v1991_v31, %v1989_v24  ;;  %v1790_v24 = vadd.f32 %v5393_v4, %v4987_v8  ;;  %v3953_v4 = vld [vmem:[%s5606_s7 + $0x20] sm:$0xff] }
 0x253   : > { %2592 = vmatpush.bf16.msrb.mxu3 %v3953_v4 }
 0x254   : > { %2228 = vmatmul.bf16.gmra.mxu3 %v2055_v53  ;;  %v1825_v51 = vpop.f32.mrf.mxu0  ;;  %v1874_v34 = vpop.f32.mrf.mxu1 }
 0x255   : > { %v1921_v3 = vpop.f32.mrf.mxu2  ;;  %v1826_v44 = vadd.f32 %v1825_v51, %v1777_v50  ;;  %v1792_v50 = vadd.f32 %v5399_v57, %v4987_v8 }
 0x256   : > { %v1922_v41 = vadd.f32 %v1921_v3, %v1873_v10 }
 0x257   : > { %v1875_v15 = vadd.f32 %v1874_v34, %v1826_v44 }
 0x258   : > { %v1962_v0 = vmax.f32 %v1922_v41, 0.0 }
 0x25c   : > { %v1828_v19 = vpop.f32.mrf.mxu0  ;;  %v1877_v63 = vpop.f32.mrf.mxu1 }
 0x25d   : > { %v1923_v61 = vpop.f32.mrf.mxu2  ;;  %v1829_v1 = vadd.f32 %v1828_v19, %v1780_v37  ;;  %v1795_v19 = vadd.f32 %v1794_v9, %v4987_v8  ;;  %v5628_v9 = vld [vmem:[#allocation6_spill] sm:$0xff] }
 0x25e   : > { %v1924_v11 = vadd.f32 %v1923_v61, %v1875_v15 }
 0x25f   : > { %2392 = vmatmul.bf16.gmra.mxu1 %v4945_v45  ;;  %v1878_v5 = vadd.f32 %v1877_v63, %v1829_v1 }
 0x260   : > { %v1964_v47 = vmax.f32 %v1924_v11, 0.0 }
 0x262   : > { %v2042_v23 = vpack.c.bf16 %v1964_v47, %v1962_v0  ;;  %2441 = vmatmul.bf16.gmra.mxu2 %v5070_v22  ;;  %v5626_v0 = vld [vmem:[#allocation5_spill] sm:$0xff] }
 0x264   : > { %2242 = vmatmul.bf16.vlgmr.msrb.gmra.mxu0 %v2042_v23  ;;  %v1830_v43 = vpop.f32.mrf.mxu0  ;;  %v1879_v21 = vpop.f32.mrf.mxu1 }
 0x265   : > { %v1926_v58 = vpop.f32.mrf.mxu2  ;;  %v1831_v6 = vadd.f32 %v1830_v43, %v1782_v28 }
 0x266   : > { %v1927_v54 = vadd.f32 %v1926_v58, %v1878_v5 }
 0x267   : > { %v1880_v45 = vadd.f32 %v1879_v21, %v1831_v6  ;;  %v3952_v6 = vld [vmem:[%s5606_s7 + $0x18] sm:$0xff] }
 0x268   : > { %v1966_v25 = vmax.f32 %v1927_v54, 0.0  ;;  %2593 = vmatpush.bf16.msrb.mxu3 %v3952_v6 }
 0x26c   : > { %v1833_v22 = vpop.f32.mrf.mxu0  ;;  %v1882_v36 = vpop.f32.mrf.mxu1 }
 0x26d   : > { %v1928_v55 = vpop.f32.mrf.mxu2  ;;  %v1834_v12 = vadd.f32 %v1833_v22, %v1785_v38 }
 0x26e   : > { %v1929_v42 = vadd.f32 %v1928_v55, %v1880_v45 }
 0x26f   : > { %2397 = vmatmul.bf16.gmra.mxu1 %v4968_v49  ;;  %v1883_v30 = vadd.f32 %v1882_v36, %v1834_v12 }
 0x270   : > { %v1968_v29 = vmax.f32 %v1929_v42, 0.0 }
 0x272   : > { %2446 = vmatmul.bf16.gmra.mxu2 %v5097_v13  ;;  %v2044_v27 = vpack.c.bf16 %v1968_v29, %v1966_v25  ;;  %v1796_v13 = vpop.f32.mrf.mxu3  ;;  %v5627_v29 = vld [vmem:[#allocation3_spill] sm:$0xff] }
 0x273   : > { %v1797_v58 = vadd.f32 %v1796_v13, %v4987_v8 }
 0x274   : > { %2247 = vmatmul.bf16.gmra.mxu0 %v2044_v27  ;;  %v1835_v62 = vpop.f32.mrf.mxu0  ;;  %v1884_v20 = vpop.f32.mrf.mxu1 }
 0x275   : > { %v1931_v18 = vpop.f32.mrf.mxu2  ;;  %v1836_v46 = vadd.f32 %v1835_v62, %v1787_v7 }
 0x276   : > { %v1932_v49 = vadd.f32 %v1931_v18, %v1883_v30 }
 0x277   : > { %v1885_v48 = vadd.f32 %v1884_v20, %v1836_v46 }
 0x278   : > { %v1970_v14 = vmax.f32 %v1932_v49, 0.0  ;;  %v3951_v49 = vld [vmem:[%s5606_s7 + $0x10] sm:$0xff] }
 0x279   : > { %2594 = vmatpush.bf16.msrb.mxu3 %v3951_v49  ;;  %v5464_v49 = vld [vmem:[%s5605_s6] ss:$0 sm:$0xff] }
 0x27a   : > { %v1799_v10 = vpop.f32.mrf.mxu3 }
 0x27b   : > { %v1800_v36 = vadd.f32 %v1799_v10, %v4987_v8 }
 0x27c   : > { %v1838_v26 = vpop.f32.mrf.mxu0  ;;  %v1887_v32 = vpop.f32.mrf.mxu1 }
 0x27d   : > { %v1933_v52 = vpop.f32.mrf.mxu2  ;;  %v1839_v60 = vadd.f32 %v1838_v26, %v1790_v24 }
 0x27e   : > { %v1934_v39 = vadd.f32 %v1933_v52, %v1885_v48 }
 0x27f   : > { %2402 = vmatmul.bf16.gmra.mxu1 %v5001_v33  ;;  %v1888_v44 = vadd.f32 %v1887_v32, %v1839_v60  ;;  %v5629_v60 = vld [vmem:[#allocation7_spill] sm:$0xff] }
 0x280   : > { %v1972_v31 = vmax.f32 %v1934_v39, 0.0 }
 0x282   : > { %2451 = vmatmul.bf16.gmra.mxu2 %v5122_v16  ;;  %v2046_v53 = vpack.c.bf16 %v1972_v31, %v1970_v14  ;;  %v1801_v37 = vpop.f32.mrf.mxu3 }
 0x283   : > { %v1802_v62 = vadd.f32 %v1801_v37, %v4987_v8 }
 0x284   : > { %2252 = vmatmul.bf16.gmra.mxu0 %v2046_v53  ;;  %v1840_v51 = vpop.f32.mrf.mxu0  ;;  %v1889_v34 = vpop.f32.mrf.mxu1 }
 0x285   : > { %v1936_v3 = vpop.f32.mrf.mxu2  ;;  %v1841_v40 = vadd.f32 %v1840_v51, %v1792_v50 }
 0x286   : > { %v1937_v33 = vadd.f32 %v1936_v3, %v1888_v44 }
 0x287   : > { %v1890_v41 = vadd.f32 %v1889_v34, %v1841_v40  ;;  %v3950_v34 = vld [vmem:[%s5606_s7 + $0x8] sm:$0xff] }
 0x288   : > { %v1974_v63 = vmax.f32 %v1937_v33, 0.0  ;;  %2595 = vmatpush.bf16.msrb.mxu3 %v3950_v34 }
 0x28a   : > { %v1804_v35 = vpop.f32.mrf.mxu3 }
 0x28b   : > { %v1805_v14 = vadd.f32 %v1804_v35, %v4987_v8  ;;  %v3949_v35 = vld [vmem:[%s5606_s7] sm:$0xff] }
 0x28c   : > { %v1843_v61 = vpop.f32.mrf.mxu0  ;;  %v1892_v11 = vpop.f32.mrf.mxu1  ;;  %2596 = vmatpush.bf16.msrb.mxu3 %v3949_v35 }
 0x28d   : > { %v1938_v16 = vpop.f32.mrf.mxu2  ;;  %v1844_v23 = vadd.f32 %v1843_v61, %v1795_v19 }
 0x28e   : > { %v1939_v15 = vadd.f32 %v1938_v16, %v1890_v41 }
 0x28f   : > { %2407 = vmatmul.bf16.gmra.mxu1 %v4979_v17  ;;  %v1893_v21 = vadd.f32 %v1892_v11, %v1844_v23 }
 0x290   : > { %v1976_v57 = vmax.f32 %v1939_v15, 0.0 }
 0x292   : > { %2456 = vmatmul.bf16.gmra.mxu2 %v5626_v0  ;;  %v2048_v47 = vpack.c.bf16 %v1976_v57, %v1974_v63  ;;  %v1806_v18 = vpop.f32.mrf.mxu3  ;;  %v5630_v0 = vld [vmem:[#allocation4_spill] sm:$0xff] }
 0x293   : > { %v1807_v10 = vadd.f32 %v1806_v18, %v4987_v8 }
 0x294   : > { %2257 = vmatmul.bf16.gmra.mxu0 %v2048_v47  ;;  %v1845_v28 = vpop.f32.mrf.mxu0  ;;  %v1894_v43 = vpop.f32.mrf.mxu1 }
 0x295   : > { %v1941_v1 = vpop.f32.mrf.mxu2  ;;  %v1846_v5 = vadd.f32 %v1845_v28, %v1797_v58 }
 0x296   : > { %v1942_v54 = vadd.f32 %v1941_v1, %v1893_v21 }
 0x297   : > { %v1895_v17 = vadd.f32 %v1894_v43, %v1846_v5 }
 0x298   : > { %v1978_v38 = vmax.f32 %v1942_v54, 0.0 }
 0x29a   : > { %v1809_v24 = vpop.f32.mrf.mxu3 }
 0x29b   : > { %v1810_v63 = vadd.f32 %v1809_v24, %v4987_v8 }
 0x29c   : > { %v1848_v42 = vpop.f32.mrf.mxu0  ;;  %v1897_v22 = vpop.f32.mrf.mxu1 }
 0x29d   : > { %v1943_v45 = vpop.f32.mrf.mxu2  ;;  %v1849_v12 = vadd.f32 %v1848_v42, %v1800_v36 }
 0x29e   : > { %v1944_v55 = vadd.f32 %v1943_v45, %v1895_v17 }
 0x29f   : > { %2412 = vmatmul.bf16.gmra.mxu1 %v5627_v29  ;;  %v1898_v46 = vadd.f32 %v1897_v22, %v1849_v12 }
 0x2a0   : > { %v1980_v25 = vmax.f32 %v1944_v55, 0.0 }
 0x2a2   : > { %v2050_v27 = vpack.c.bf16 %v1980_v25, %v1978_v38  ;;  %2461 = vmatmul.bf16.gmra.mxu2 %v5628_v9  ;;  %v1811_v41 = vpop.f32.mrf.mxu3 }
 0x2a3   : > { %v1812_v28 = vadd.f32 %v1811_v41, %v4987_v8 }
 0x2a4   : > { %2262 = vmatmul.bf16.gmra.mxu0 %v2050_v27  ;;  %v1850_v20 = vpop.f32.mrf.mxu0  ;;  %v1899_v30 = vpop.f32.mrf.mxu1 }
 0x2a5   : > { %v1946_v7 = vpop.f32.mrf.mxu2  ;;  %v1851_v59 = vadd.f32 %v1850_v20, %v1802_v62 }
 0x2a6   : > { %v1947_v48 = vadd.f32 %v1946_v7, %v1898_v46 }
 0x2a7   : > { %v1900_v13 = vadd.f32 %v1899_v30, %v1851_v59 }
 0x2a8   : > { %v1982_v31 = vmax.f32 %v1947_v48, 0.0 }
 0x2aa   : > { %v2194_v23 = vpop.f32.mrf.mxu3 }
 0x2ac   : > { %v1853_v26 = vpop.f32.mrf.mxu0  ;;  %v1902_v32 = vpop.f32.mrf.mxu1 }
 0x2ad   : > { %v1948_v52 = vpop.f32.mrf.mxu2  ;;  %v1854_v50 = vadd.f32 %v1853_v26, %v1805_v14 }
 0x2ae   : > { %v1949_v39 = vadd.f32 %v1948_v52, %v1900_v13 }
 0x2af   : > { %2417 = vmatmul.bf16.gmra.mxu1 %v5629_v60  ;;  %v1903_v4 = vadd.f32 %v1902_v32, %v1854_v50 }
 0x2b0   : > { %v1984_v53 = vmax.f32 %v1949_v39, 0.0 }
 0x2b2   : > { %v2052_v3 = vpack.c.bf16 %v1984_v53, %v1982_v31  ;;  %2466 = vmatmul.bf16.gmra.mxu2 %v5228_v56  ;;  %v2196_v45 = vpop.f32.mrf.mxu3 }
 0x2b4   : > { %2267 = vmatmul.bf16.gmra.mxu0 %v2052_v3  ;;  %v1855_v44 = vpop.f32.mrf.mxu0  ;;  %v1904_v40 = vpop.f32.mrf.mxu1 }
 0x2b5   : > { %v1951_v51 = vpop.f32.mrf.mxu2  ;;  %v1856_v33 = vadd.f32 %v1855_v44, %v1807_v10 }
 0x2b6   : > { %v1952_v16 = vadd.f32 %v1951_v51, %v1903_v4 }
 0x2b7   : > { %v1905_v15 = vadd.f32 %v1904_v40, %v1856_v33 }
 0x2b8   : > { %v1986_v57 = vmax.f32 %v1952_v16, 0.0 }
 0x2ba   : > { %v2199_v29 = vpop.f32.mrf.mxu3 }
 0x2bc   : > { %v1858_v56 = vpop.f32.mrf.mxu0  ;;  %v1907_v19 = vpop.f32.mrf.mxu1 }
 0x2bd   : > { %v1953_v61 = vpop.f32.mrf.mxu2  ;;  %v1859_v1 = vadd.f32 %v1858_v56, %v1810_v63 }
 0x2be   : > { %v1954_v11 = vadd.f32 %v1953_v61, %v1905_v15 }
 0x2bf   : > { %2422 = vmatmul.bf16.gmra.mxu1 %v5630_v0  ;;  %v1908_v5 = vadd.f32 %v1907_v19, %v1859_v1 }
 0x2c0   : > { %v1988_v37 = vmax.f32 %v1954_v11, 0.0 }
 0x2c2   : > { %v2054_v47 = vpack.c.bf16 %v1988_v37, %v1986_v57  ;;  %2471 = vmatmul.bf16.gmra.mxu2 %v5251_v2  ;;  %v2201_v12 = vpop.f32.mrf.mxu3 }
 0x2c4   : > { %2272 = vmatmul.bf16.gmra.mxu0 %v2054_v47  ;;  %v1860_v43 = vpop.f32.mrf.mxu0  ;;  %v1909_v21 = vpop.f32.mrf.mxu1 }
 0x2c5   : > { %v1956_v58 = vpop.f32.mrf.mxu2  ;;  %v1861_v6 = vadd.f32 %v1860_v43, %v1812_v28 }
 0x2c6   : > { %v1957_v54 = vadd.f32 %v1956_v58, %v1908_v5 }
 0x2c7   : > { %v1910_v17 = vadd.f32 %v1909_v21, %v1861_v6 }
 0x2c8   : > { %v1990_v22 = vmax.f32 %v1957_v54, 0.0 }
 0x2ca   : > { %v2204_v13 = vpop.f32.mrf.mxu3 }
 0x2cc   : > { %v2388_v42 = vpop.f32.mrf.mxu1 }
 0x2cd   : > { %v1958_v55 = vpop.f32.mrf.mxu2 }
 0x2ce   : > { %v1959_v2 = vadd.f32 %v1958_v55, %v1910_v17 }
 0x2d0   : > { %v1992_v36 = vmax.f32 %v1959_v2, 0.0 }
 0x2d2   : > { %v2056_v38 = vpack.c.bf16 %v1992_v36, %v1990_v22  ;;  %v2206_v51 = vpop.f32.mrf.mxu3 }
 0x2d4   : > { %2277 = vmatmul.bf16.gmra.mxu0 %v2056_v38  ;;  %v2390_v25 = vpop.f32.mrf.mxu1 }
 0x2d5   : > { %v2437_v8 = vpop.f32.mrf.mxu2 }
 0x2da   : > { %v2209_v11 = vpop.f32.mrf.mxu3 }
 0x2dc   : > { %v2393_v9 = vpop.f32.mrf.mxu1 }
 0x2dd   : > { %v2439_v27 = vpop.f32.mrf.mxu2 }
 0x2e1   : > { %v2243_v18 = vpop.f32.mrf.mxu0 }
 0x2e2   : > { %v2244_v7 = vadd.f32 %v2243_v18, %v2194_v23  ;;  %v2211_v58 = vpop.f32.mrf.mxu3 }
 0x2e4   : > { %v2389_v20 = vadd.f32 %v2388_v42, %v2244_v7  ;;  %v2395_v30 = vpop.f32.mrf.mxu1 }
 0x2e5   : > { %v2442_v62 = vpop.f32.mrf.mxu2 }
 0x2e6   : > { %v2438_v59 = vadd.f32 %v2437_v8, %v2389_v20 }
 0x2e8   : > { %v2481_v26 = vadd.f32 %v5464_v49, %v2438_v59 }
 0x2e9   : > { %v2245_v46 = vpop.f32.mrf.mxu0 }
 0x2ea   : > { %v2246_v48 = vadd.f32 %v2245_v46, %v2196_v45  ;;  %v2497_v53 = vmax.f32 %v2481_v26, 0.0  ;;  %v2214_v36 = vpop.f32.mrf.mxu3 }
 0x2ec   : > { %v2391_v52 = vadd.f32 %v2390_v25, %v2246_v48  ;;  %v2398_v24 = vpop.f32.mrf.mxu1 }
 0x2ed   : > { %v2444_v39 = vpop.f32.mrf.mxu2 }
 0x2ee   : > { %v2440_v32 = vadd.f32 %v2439_v27, %v2391_v52 }
 0x2f0   : > { %v2482_v14 = vadd.f32 %v5464_v49, %v2440_v32 }
 0x2f1   : > { %v2248_v31 = vpop.f32.mrf.mxu0 }
 0x2f2   : > { %v2498_v60 = vmax.f32 %v2482_v14, 0.0  ;;  %v2249_v3 = vadd.f32 %v2248_v31, %v2199_v29  ;;  %v2216_v7 = vpop.f32.mrf.mxu3 }
 0x2f4   : > { %v2513_v50 = vpack.c.bf16 %v2498_v60, %v2497_v53  ;;  %v2394_v10 = vadd.f32 %v2393_v9, %v2249_v3  ;;  %v2400_v44 = vpop.f32.mrf.mxu1 }
 0x2f5   : > { %v2447_v34 = vpop.f32.mrf.mxu2 }
 0x2f6   : > { %2597 = vmatmul.bf16.vlgmr.msrb.gmra.mxu3 %v2513_v50  ;;  %v2443_v4 = vadd.f32 %v2442_v62, %v2394_v10 }
 0x2f8   : > { %v2483_v61 = vadd.f32 %v5464_v49, %v2443_v4 }
 0x2f9   : > { %v2250_v40 = vpop.f32.mrf.mxu0 }
 0x2fa   : > { %v2251_v33 = vadd.f32 %v2250_v40, %v2201_v12  ;;  %v2499_v37 = vmax.f32 %v2483_v61, 0.0 }
 0x2fc   : > { %v2396_v41 = vadd.f32 %v2395_v30, %v2251_v33  ;;  %v2403_v19 = vpop.f32.mrf.mxu1 }
 0x2fd   : > { %v2449_v16 = vpop.f32.mrf.mxu2 }
 0x2fe   : > { %v2445_v15 = vadd.f32 %v2444_v39, %v2396_v41 }
 0x300   : > { %v2484_v56 = vadd.f32 %v5464_v49, %v2445_v15 }
 0x301   : > { %v2253_v63 = vpop.f32.mrf.mxu0 }
 0x302   : > { %v2254_v57 = vadd.f32 %v2253_v63, %v2204_v13  ;;  %v2500_v0 = vmax.f32 %v2484_v56, 0.0 }
 0x304   : > { %v2514_v47 = vpack.c.bf16 %v2500_v0, %v2499_v37  ;;  %v2399_v1 = vadd.f32 %v2398_v24, %v2254_v57  ;;  %v2405_v5 = vpop.f32.mrf.mxu1  ;;  %v2219_v24 = vpop.f32.mrf.mxu3 }
 0x305   : > { %v2452_v23 = vpop.f32.mrf.mxu2 }
 0x306   : > { %2602 = vmatmul.bf16.gmra.mxu3 %v2514_v47  ;;  %v2448_v43 = vadd.f32 %v2447_v34, %v2399_v1 }
 0x308   : > { %v2485_v17 = vadd.f32 %v5464_v49, %v2448_v43 }
 0x309   : > { %v2255_v28 = vpop.f32.mrf.mxu0 }
 0x30a   : > { %v2256_v21 = vadd.f32 %v2255_v28, %v2206_v51  ;;  %v2501_v42 = vmax.f32 %v2485_v17, 0.0 }
 0x30c   : > { %v2401_v6 = vadd.f32 %v2400_v44, %v2256_v21  ;;  %v2408_v8 = vpop.f32.mrf.mxu1  ;;  %v2221_v44 = vpop.f32.mrf.mxu3 }
 0x30d   : > { %v2454_v35 = vpop.f32.mrf.mxu2 }
 0x30e   : > { %v2450_v54 = vadd.f32 %v2449_v16, %v2401_v6 }
 0x310   : > { %v2486_v45 = vadd.f32 %v5464_v49, %v2450_v54 }
 0x311   : > { %v2258_v55 = vpop.f32.mrf.mxu0 }
 0x312   : > { %v2259_v2 = vadd.f32 %v2258_v55, %v2209_v11  ;;  %v2502_v22 = vmax.f32 %v2486_v45, 0.0 }
 0x314   : > { %v2515_v38 = vpack.c.bf16 %v2502_v22, %v2501_v42  ;;  %v2404_v25 = vadd.f32 %v2403_v19, %v2259_v2  ;;  %v2410_v30 = vpop.f32.mrf.mxu1  ;;  %v2224_v57 = vpop.f32.mrf.mxu3 }
 0x315   : > { %v2457_v29 = vpop.f32.mrf.mxu2 }
 0x316   : > { %2607 = vmatmul.bf16.gmra.mxu3 %v2515_v38  ;;  %v2453_v9 = vadd.f32 %v2452_v23, %v2404_v25 }
 0x318   : > { %v2487_v20 = vadd.f32 %v5464_v49, %v2453_v9 }
 0x319   : > { %v2260_v27 = vpop.f32.mrf.mxu0 }
 0x31a   : > { %v2261_v12 = vadd.f32 %v2260_v27, %v2211_v58  ;;  %v2503_v52 = vmax.f32 %v2487_v20, 0.0 }
 0x31c   : > { %v2406_v18 = vadd.f32 %v2405_v5, %v2261_v12  ;;  %v2413_v14 = vpop.f32.mrf.mxu1 }
 0x31d   : > { %v2459_v59 = vpop.f32.mrf.mxu2 }
 0x31e   : > { %v2455_v62 = vadd.f32 %v2454_v35, %v2406_v18  ;;  %v2226_v35 = vpop.f32.mrf.mxu3 }
 0x320   : > { %v2488_v46 = vadd.f32 %v5464_v49, %v2455_v62 }
 0x321   : > { %v2263_v48 = vpop.f32.mrf.mxu0 }
 0x322   : > { %v2264_v13 = vadd.f32 %v2263_v48, %v2214_v36  ;;  %v2504_v39 = vmax.f32 %v2488_v46, 0.0 }
 0x324   : > { %v2516_v26 = vpack.c.bf16 %v2504_v39, %v2503_v52  ;;  %v2409_v32 = vadd.f32 %v2408_v8, %v2264_v13  ;;  %v2415_v16 = vpop.f32.mrf.mxu1 }
 0x325   : > { %v2462_v3 = vpop.f32.mrf.mxu2 }
 0x326   : > { %2612 = vmatmul.bf16.gmra.mxu3 %v2516_v26  ;;  %v2458_v53 = vadd.f32 %v2457_v29, %v2409_v32  ;;  %v2229_v8 = vpop.f32.mrf.mxu3 }
 0x328   : > { %v2489_v34 = vadd.f32 %v5464_v49, %v2458_v53 }
 0x329   : > { %v2265_v31 = vpop.f32.mrf.mxu0 }
 0x32a   : > { %v2266_v60 = vadd.f32 %v2265_v31, %v2216_v7  ;;  %v2505_v33 = vmax.f32 %v2489_v34, 0.0 }
 0x32c   : > { %v2411_v50 = vadd.f32 %v2410_v30, %v2266_v60  ;;  %v2418_v0 = vpop.f32.mrf.mxu1  ;;  %v5485_v60 = vld [vmem:[%s5607_s8] ss:$0 sm:$0xff] }
 0x32d   : > { %v2464_v61 = vpop.f32.mrf.mxu2 }
 0x32e   : > { %v2460_v51 = vadd.f32 %v2459_v59, %v2411_v50  ;;  %v2231_v30 = vpop.f32.mrf.mxu3 }
 0x330   : > { %v2490_v10 = vadd.f32 %v5464_v49, %v2460_v51  ;;  %v5491_v51 = vld [vmem:[%s5608_s9] ss:$0 sm:$0xff] }
 0x331   : > { %v2268_v40 = vpop.f32.mrf.mxu0 }
 0x332   : > { %v2269_v4 = vadd.f32 %v2268_v40, %v2219_v24  ;;  %v2506_v41 = vmax.f32 %v2490_v10, 0.0 }
 0x334   : > { %v2517_v15 = vpack.c.bf16 %v2506_v41, %v2505_v33  ;;  %v2414_v11 = vadd.f32 %v2413_v14, %v2269_v4  ;;  %v2420_v17 = vpop.f32.mrf.mxu1 }
 0x335   : > { %v2467_v1 = vpop.f32.mrf.mxu2 }
 0x336   : > { %2617 = vmatmul.bf16.gmra.mxu3 %v2517_v15  ;;  %v2463_v19 = vadd.f32 %v2462_v3, %v2414_v11 }
 0x338   : > { %v2491_v23 = vadd.f32 %v5464_v49, %v2463_v19 }
 0x339   : > { %v2270_v56 = vpop.f32.mrf.mxu0 }
 0x33a   : > { %v2271_v63 = vadd.f32 %v2270_v56, %v2221_v44  ;;  %v2507_v21 = vmax.f32 %v2491_v23, 0.0 }
 0x33c   : > { %v2416_v37 = vadd.f32 %v2415_v16, %v2271_v63  ;;  %v2423_v29 = vpop.f32.mrf.mxu1 }
 0x33d   : > { %v2469_v45 = vpop.f32.mrf.mxu2 }
 0x33e   : > { %v2465_v47 = vadd.f32 %v2464_v61, %v2416_v37 }
 0x340   : > { %v2492_v58 = vadd.f32 %v5464_v49, %v2465_v47 }
 0x341   : > { %v2273_v28 = vpop.f32.mrf.mxu0 }
 0x342   : > { %v2274_v43 = vadd.f32 %v2273_v28, %v2224_v57  ;;  %v2508_v5 = vmax.f32 %v2492_v58, 0.0 }
 0x344   : > { %v2518_v6 = vpack.c.bf16 %v2508_v5, %v2507_v21  ;;  %v2419_v54 = vadd.f32 %v2418_v0, %v2274_v43  ;;  %v2425_v13 = vpop.f32.mrf.mxu1 }
 0x345   : > { %v2472_v7 = vpop.f32.mrf.mxu2 }
 0x346   : > { %2622 = vmatmul.bf16.gmra.mxu3 %v2518_v6  ;;  %v2468_v2 = vadd.f32 %v2467_v1, %v2419_v54 }
 0x348   : > { %v2493_v38 = vadd.f32 %v5464_v49, %v2468_v2 }
 0x349   : > { %v2275_v55 = vpop.f32.mrf.mxu0 }
 0x34a   : > { %v2276_v42 = vadd.f32 %v2275_v55, %v2226_v35  ;;  %v2509_v12 = vmax.f32 %v2493_v38, 0.0 }
 0x34c   : > { %v2421_v22 = vadd.f32 %v2420_v17, %v2276_v42 }
 0x34d   : > { %v2474_v39 = vpop.f32.mrf.mxu2 }
 0x34e   : > { %v2470_v36 = vadd.f32 %v2469_v45, %v2421_v22 }
 0x350   : > { %v2494_v25 = vadd.f32 %v5464_v49, %v2470_v36 }
 0x351   : > { %v2278_v27 = vpop.f32.mrf.mxu0 }
 0x352   : > { %v2279_v9 = vadd.f32 %v2278_v27, %v2229_v8  ;;  %v2510_v18 = vmax.f32 %v2494_v25, 0.0 }
 0x354   : > { %v2519_v62 = vpack.c.bf16 %v2510_v18, %v2509_v12  ;;  %v2424_v20 = vadd.f32 %v2423_v29, %v2279_v9 }
 0x356   : > { %2627 = vmatmul.bf16.gmra.mxu3 %v2519_v62  ;;  %v2473_v59 = vadd.f32 %v2472_v7, %v2424_v20 }
 0x358   : > { %v2495_v32 = vadd.f32 %v5464_v49, %v2473_v59 }
 0x359   : > { %v2280_v46 = vpop.f32.mrf.mxu0 }
 0x35a   : > { %v2281_v48 = vadd.f32 %v2280_v46, %v2231_v30  ;;  %v2511_v14 = vmax.f32 %v2495_v32, 0.0 }
 0x35c   : > { %v2426_v52 = vadd.f32 %v2425_v13, %v2281_v48 }
 0x35e   : > { %v2475_v26 = vadd.f32 %v2474_v39, %v2426_v52 }
 0x360   : > { %v2496_v24 = vadd.f32 %v5464_v49, %v2475_v26 }
 0x362   : > { %v2512_v31 = vmax.f32 %v2496_v24, 0.0 }
 0x364   : > { %v2520_v53 = vpack.c.bf16 %v2512_v31, %v2511_v14 }
 0x366   : > { %2632 = vmatmul.bf16.gmra.mxu3 %v2520_v53 }
 0x379   : > { %v2598_v3 = vpop.f32.mrf.mxu3 }
 0x37a   : > { %v2599_v50 = vadd.f32 %v5485_v60, %v2598_v3 }
 0x37c   : > { %v2638_v34 = vmax.f32 %v2599_v50, 0.0 }
 0x37e   : > { %v2658_v49 = vmul.f32 %v5491_v51, %v2638_v34 }
 0x380   : > { %v2675_v10 = vsel %vm2674_vm2, %v2658_v49, 0.0 }
 0x381   : > { %v2600_v44 = vpop.f32.mrf.mxu3  ;;  %2676 = vadd.xlane.f32.xlu0 %v2675_v10 }
 0x382   : > { %v2601_v40 = vadd.f32 %v5485_v60, %v2600_v44 }
 0x384   : > { %v2639_v4 = vmax.f32 %v2601_v40, 0.0 }
 0x386   : > { %v2659_v33 = vmul.f32 %v5491_v51, %v2639_v4 }
 0x388   : > { %v2678_v41 = vsel %vm2674_vm2, %v2659_v33, 0.0 }
 0x389   : > { %v2603_v16 = vpop.f32.mrf.mxu3  ;;  %2679 = vadd.xlane.f32.xlu0 %v2678_v41 }
 0x38a   : > { %v2604_v15 = vadd.f32 %v5485_v60, %v2603_v16 }
 0x38c   : > { %v2640_v61 = vmax.f32 %v2604_v15, 0.0 }
 0x38e   : > { %v2660_v11 = vmul.f32 %v5491_v51, %v2640_v61 }
 0x390   : > { %v2681_v56 = vsel %vm2674_vm2, %v2660_v11, 0.0 }
 0x391   : > { %v2605_v19 = vpop.f32.mrf.mxu3  ;;  %2682 = vadd.xlane.f32.xlu1 %v2681_v56  ;;  %v5537_v56 = vld [vmem:[#allocation2] ss:$0 sm:$0xff] }
 0x392   : > { %v2606_v63 = vadd.f32 %v5485_v60, %v2605_v19 }
 0x394   : > { %v2641_v57 = vmax.f32 %v2606_v63, 0.0 }
 0x396   : > { %v2661_v37 = vmul.f32 %v5491_v51, %v2641_v57 }
 0x398   : > { %v2684_v0 = vsel %vm2674_vm2, %v2661_v37, 0.0 }
 0x399   : > { %v2608_v47 = vpop.f32.mrf.mxu3  ;;  %2685 = vadd.xlane.f32.xlu1 %v2684_v0 }
 0x39a   : > { %v2609_v23 = vadd.f32 %v5485_v60, %v2608_v47 }
 0x39c   : > { %v2642_v1 = vmax.f32 %v2609_v23, 0.0 }
 0x39e   : > { %v2662_v58 = vmul.f32 %v5491_v51, %v2642_v1 }
 0x3a0   : > { %v2687_v28 = vsel %vm2674_vm2, %v2662_v58, 0.0 }
 0x3a1   : > { %v2610_v43 = vpop.f32.mrf.mxu3  ;;  %2688 = vadd.xlane.f32.xlu2 %v2687_v28 }
 0x3a2   : > { %v2611_v21 = vadd.f32 %v5485_v60, %v2610_v43 }
 0x3a4   : > { %v2643_v5 = vmax.f32 %v2611_v21, 0.0 }
 0x3a6   : > { %v2663_v6 = vmul.f32 %v5491_v51, %v2643_v5 }
 0x3a8   : > { %v2690_v35 = vsel %vm2674_vm2, %v2663_v6, 0.0 }
 0x3a9   : > { %v2613_v54 = vpop.f32.mrf.mxu3  ;;  %2691 = vadd.xlane.f32.xlu2 %v2690_v35 }
 0x3aa   : > { %v2614_v17 = vadd.f32 %v5485_v60, %v2613_v54 }
 0x3ac   : > { %v2644_v45 = vmax.f32 %v2614_v17, 0.0 }
 0x3ae   : > { %v2664_v55 = vmul.f32 %v5491_v51, %v2644_v45 }
 0x3b0   : > { %v2693_v2 = vsel %vm2674_vm2, %v2664_v55, 0.0 }
 0x3b1   : > { %v2615_v42 = vpop.f32.mrf.mxu3  ;;  %2694 = vadd.xlane.f32.xlu0 %v2693_v2 }
 0x3b2   : > { %v2616_v22 = vadd.f32 %v5485_v60, %v2615_v42 }
 0x3b4   : > { %v2645_v36 = vmax.f32 %v2616_v22, 0.0 }
 0x3b6   : > { %v2665_v38 = vmul.f32 %v5491_v51, %v2645_v36 }
 0x3b8   : > { %v2696_v8 = vsel %vm2674_vm2, %v2665_v38, 0.0 }
 0x3b9   : > { %v2618_v25 = vpop.f32.mrf.mxu3  ;;  %2697 = vadd.xlane.f32.xlu1 %v2696_v8 }
 0x3ba   : > { %v2619_v29 = vadd.f32 %v5485_v60, %v2618_v25 }
 0x3bc   : > { %v2646_v27 = vmax.f32 %v2619_v29, 0.0 }
 0x3be   : > { %v2666_v9 = vmul.f32 %v5491_v51, %v2646_v27 }
 0x3c0   : > { %v2699_v12 = vsel %vm2674_vm2, %v2666_v9, 0.0 }
 0x3c1   : > { %v2620_v18 = vpop.f32.mrf.mxu3  ;;  %2700 = vadd.xlane.f32.xlu2 %v2699_v12 }
 0x3c2   : > { %v2621_v7 = vadd.f32 %v5485_v60, %v2620_v18 }
 0x3c4   : > { %v2647_v62 = vmax.f32 %v2621_v7, 0.0 }
 0x3c6   : > { %v2667_v20 = vmul.f32 %v5491_v51, %v2647_v62 }
 0x3c8   : > { %v2702_v30 = vsel %vm2674_vm2, %v2667_v20, 0.0 }
 0x3c9   : > { %v2623_v46 = vpop.f32.mrf.mxu3  ;;  %2703 = vadd.xlane.f32.xlu0 %v2702_v30 }
 0x3ca   : > { %v2624_v59 = vadd.f32 %v5485_v60, %v2623_v46 }
 0x3cc   : > { %v2648_v48 = vmax.f32 %v2624_v59, 0.0 }
 0x3ce   : > { %v2668_v13 = vmul.f32 %v5491_v51, %v2648_v48 }
 0x3d0   : > { %v2705_v52 = vsel %vm2674_vm2, %v2668_v13, 0.0 }
 0x3d1   : > { %v2625_v39 = vpop.f32.mrf.mxu3  ;;  %2706 = vadd.xlane.f32.xlu1 %v2705_v52 }
 0x3d2   : > { %v2626_v26 = vadd.f32 %v5485_v60, %v2625_v39 }
 0x3d4   : > { %v2649_v32 = vmax.f32 %v2626_v26, 0.0 }
 0x3d6   : > { %v2669_v24 = vmul.f32 %v5491_v51, %v2649_v32 }
 0x3d8   : > { %v2708_v14 = vsel %vm2674_vm2, %v2669_v24, 0.0 }
 0x3d9   : > { %v2628_v31 = vpop.f32.mrf.mxu3  ;;  %2709 = vadd.xlane.f32.xlu2 %v2708_v14 }
 0x3da   : > { %v2629_v53 = vadd.f32 %v5485_v60, %v2628_v31 }
 0x3dc   : > { %v2650_v3 = vmax.f32 %v2629_v53, 0.0 }
 0x3de   : > { %v2670_v50 = vmul.f32 %v5491_v51, %v2650_v3 }
 0x3e0   : > { %v2711_v34 = vsel %vm2674_vm2, %v2670_v50, 0.0 }
 0x3e1   : > { %v2630_v49 = vpop.f32.mrf.mxu3  ;;  %2712 = vadd.xlane.f32.xlu0 %v2711_v34 }
 0x3e2   : > { %v2631_v10 = vadd.f32 %v5485_v60, %v2630_v49 }
 0x3e4   : > { %v2651_v44 = vmax.f32 %v2631_v10, 0.0 }
 0x3e6   : > { %v2671_v40 = vmul.f32 %v5491_v51, %v2651_v44 }
 0x3e8   : > { %v2714_v4 = vsel %vm2674_vm2, %v2671_v40, 0.0 }
 0x3e9   : > { %v2633_v33 = vpop.f32.mrf.mxu3  ;;  %2715 = vadd.xlane.f32.xlu1 %v2714_v4 }
 0x3ea   : > { %v2634_v41 = vadd.f32 %v5485_v60, %v2633_v33 }
 0x3ec   : > { %v2652_v16 = vmax.f32 %v2634_v41, 0.0 }
 0x3ee   : > { %v2672_v15 = vmul.f32 %v5491_v51, %v2652_v16 }
 0x3f0   : > { %v2717_v61 = vsel %vm2674_vm2, %v2672_v15, 0.0 }
 0x3f1   : > { %v2635_v11 = vpop.f32.mrf.mxu3  ;;  %2718 = vadd.xlane.f32.xlu2 %v2717_v61 }
 0x3f2   : > { %v2636_v19 = vadd.f32 %v5485_v60, %v2635_v11 }
 0x3f4   : > { %v2653_v63 = vmax.f32 %v2636_v19, 0.0  ;;  %v2677_v57 = vpop.xlane.xlu0 %2676 }
 0x3f5   : > { %v2727_v37 = vadd.f32 %v5537_v56, %v2677_v57 }
 0x3f6   : > { %v2673_v0 = vmul.f32 %v5491_v51, %v2653_v63 }
 0x3f7   : > { %v3785_v47 = vmul.f32 -1.442695, %v2727_v37 }
 0x3f8   : > { %v2720_v23 = vsel %vm2674_vm2, %v2673_v0, 0.0 }
 0x3f9   : > { %3979 = vpow2.f32 %v3785_v47  ;;  %2721 = vadd.xlane.f32.xlu0 %v2720_v23 }
 0x3fc   : > { %v2680_v1 = vpop.xlane.xlu0 %2679 }
 0x3fd   : > { %v2728_v58 = vadd.f32 %v5537_v56, %v2680_v1 }
 0x3ff   : > { %v3980_v28 = vpop.eup %3979  ;;  %v3786_v43 = vmul.f32 -1.442695, %v2728_v58 }
 0x400   : > { %v2791_v21 = vadd.f32 1.0, %v3980_v28 }
 0x401   : > { %3981 = vpow2.f32 %v3786_v43 }
 0x402   : > { %3983 = vrcp.f32 %v2791_v21  ;;  %v2818_v55 = vand.u32 2147483648, %v2791_v21  ;;  %v2816_v22 = vand.u32 2147483647, %v2791_v21  ;;  %vm2812_vm4 = vweird.f32 %v2791_v21 }
 0x404   : > { %v2683_v60 = vpop.xlane.xlu1 %2682  ;;  %v2819_v27 = vor.u32 1.1754944e-38, %v2818_v55  ;;  %vm2817_vm7 = vcmp.eq.f32.partialorder %v2816_v22, 8.507059e+37 }
 0x405   : > { %v2729_v5 = vadd.f32 %v5537_v56, %v2683_v60 }
 0x407   : > { %v3982_v6 = vpop.eup %3981  ;;  %v3787_v35 = vmul.f32 -1.442695, %v2729_v5 }
 0x408   : > { %v3984_v51 = vpop.eup %3983  ;;  %v2792_v54 = vadd.f32 1.0, %v3982_v6 }
 0x409   : > { %v2808_v17 = vmul.f32 %v3984_v51, %v2791_v21  ;;  %3985 = vpow2.f32 %v3787_v35  ;;  %vm2813_vm3 = vweird.f32 %v3984_v51 }
 0x40a   : > { %3987 = vrcp.f32 %v2792_v54  ;;  %vm2814_vm6 = vmor %vm2812_vm4, %vm2813_vm3  ;;  %v2833_v20 = vand.u32 2147483648, %v2792_v54  ;;  %v2831_v59 = vand.u32 2147483647, %v2792_v54  ;;  %vm2827_vm9 = vweird.f32 %v2792_v54 }
 0x40b   : > { %v2809_v45 = vsub.f32 1.0, %v2808_v17 }
 0x40c   : > { %v2686_v2 = vpop.xlane.xlu1 %2685  ;;  %v2834_v32 = vor.u32 1.1754944e-38, %v2833_v20  ;;  %vm2832_vm11 = vcmp.eq.f32.partialorder %v2831_v59, 8.507059e+37 }
 0x40d   : > { %v2810_v42 = vmul.f32 %v3984_v51, %v2809_v45  ;;  %v2730_v36 = vadd.f32 %v5537_v56, %v2686_v2 }
 0x40f   : > { %v3986_v38 = vpop.eup %3985  ;;  %v2811_v8 = vadd.f32 %v3984_v51, %v2810_v42  ;;  %v3788_v25 = vmul.f32 -1.442695, %v2730_v36 }
 0x410   : > { %v3988_v29 = vpop.eup %3987  ;;  %v2793_v9 = vadd.f32 1.0, %v3986_v38 }
 0x411   : > { %v2815_v12 = vsel %vm2814_vm6, %v3984_v51, %v2811_v8  ;;  %v2823_v18 = vmul.f32 %v3988_v29, %v2792_v54  ;;  %3989 = vpow2.f32 %v3788_v25  ;;  %vm2828_vm8 = vweird.f32 %v3988_v29 }
 0x412   : > { %v2820_v7 = vsel %vm2817_vm7, %v2819_v27, %v2815_v12  ;;  %3991 = vrcp.f32 %v2793_v9  ;;  %vm2829_vm10 = vmor %vm2827_vm9, %vm2828_vm8  ;;  %v2848_v50 = vand.u32 2147483648, %v2793_v9  ;;  %v2846_v10 = vand.u32 2147483647, %v2793_v9 }
 0x413   : > { %3048 = vst.msk [vmem:[%s5550_s22] sm:$0xff] %vm3047_vm5, %v2820_v7  ;;  %v2824_v62 = vsub.f32 1.0, %v2823_v18  ;;  %vm2842_vm13 = vweird.f32 %v2793_v9 }
 0x414   : > { %v2689_v30 = vpop.xlane.xlu2 %2688  ;;  %v2849_v16 = vor.u32 1.1754944e-38, %v2848_v50  ;;  %vm2847_vm15 = vcmp.eq.f32.partialorder %v2846_v10, 8.507059e+37 }
 0x415   : > { %v2825_v46 = vmul.f32 %v3988_v29, %v2824_v62  ;;  %v2731_v48 = vadd.f32 %v5537_v56, %v2689_v30 }
 0x417   : > { %v3990_v13 = vpop.eup %3989  ;;  %v2826_v52 = vadd.f32 %v3988_v29, %v2825_v46  ;;  %v3789_v39 = vmul.f32 -1.442695, %v2731_v48 }
 0x418   : > { %v3992_v26 = vpop.eup %3991  ;;  %v2794_v24 = vadd.f32 1.0, %v3990_v13 }
 0x419   : > { %v2830_v14 = vsel %vm2829_vm10, %v3988_v29, %v2826_v52  ;;  %v2838_v31 = vmul.f32 %v3992_v26, %v2793_v9  ;;  %3993 = vpow2.f32 %v3789_v39  ;;  %vm2843_vm12 = vweird.f32 %v3992_v26 }
 0x41a   : > { %v2835_v53 = vsel %vm2832_vm11, %v2834_v32, %v2830_v14  ;;  %3995 = vrcp.f32 %v2794_v24  ;;  %vm2844_vm14 = vmor %vm2842_vm13, %vm2843_vm12  ;;  %v2863_v57 = vand.u32 2147483648, %v2794_v24  ;;  %v2861_v47 = vand.u32 2147483647, %v2794_v24 }
 0x41b   : > { %3049 = vst.msk [vmem:[%s5550_s22 + $0x8] sm:$0xff] %vm3047_vm5, %v2835_v53  ;;  %v2839_v3 = vsub.f32 1.0, %v2838_v31  ;;  %vm2857_vm1 = vweird.f32 %v2794_v24 }
 0x41c   : > { %v2692_v34 = vpop.xlane.xlu2 %2691  ;;  %v2864_v21 = vor.u32 1.1754944e-38, %v2863_v57  ;;  %vm2862_vm3 = vcmp.eq.f32.partialorder %v2861_v47, 8.507059e+37 }
 0x41d   : > { %v2840_v49 = vmul.f32 %v3992_v26, %v2839_v3  ;;  %v2732_v44 = vadd.f32 %v5537_v56, %v2692_v34 }
 0x41f   : > { %v3994_v40 = vpop.eup %3993  ;;  %v2841_v4 = vadd.f32 %v3992_v26, %v2840_v49  ;;  %v3790_v33 = vmul.f32 -1.442695, %v2732_v44 }
 0x420   : > { %v3996_v41 = vpop.eup %3995  ;;  %v2795_v15 = vadd.f32 1.0, %v3994_v40 }
 0x421   : > { %v2845_v61 = vsel %vm2844_vm14, %v3992_v26, %v2841_v4  ;;  %v2853_v11 = vmul.f32 %v3996_v41, %v2794_v24  ;;  %3997 = vpow2.f32 %v3790_v33  ;;  %vm2858_vm0 = vweird.f32 %v3996_v41 }
 0x422   : > { %v2850_v19 = vsel %vm2847_vm15, %v2849_v16, %v2845_v61  ;;  %3999 = vrcp.f32 %v2795_v15  ;;  %vm2859_vm2 = vmor %vm2857_vm1, %vm2858_vm0  ;;  %v2878_v54 = vand.u32 2147483648, %v2795_v15  ;;  %v2876_v55 = vand.u32 2147483647, %v2795_v15 }
 0x423   : > { %3050 = vst.msk [vmem:[%s5550_s22 + $0x10] sm:$0xff] %vm3047_vm5, %v2850_v19  ;;  %v2854_v63 = vsub.f32 1.0, %v2853_v11  ;;  %vm2872_vm6 = vweird.f32 %v2795_v15 }
 0x424   : > { %v2695_v37 = vpop.xlane.xlu0 %2694  ;;  %v2879_v8 = vor.u32 1.1754944e-38, %v2878_v54  ;;  %vm2877_vm8 = vcmp.eq.f32.partialorder %v2876_v55, 8.507059e+37 }
 0x425   : > { %v2855_v0 = vmul.f32 %v3996_v41, %v2854_v63  ;;  %v2733_v23 = vadd.f32 %v5537_v56, %v2695_v37 }
 0x427   : > { %v3998_v1 = vpop.eup %3997  ;;  %v2856_v58 = vadd.f32 %v3996_v41, %v2855_v0  ;;  %v3791_v28 = vmul.f32 -1.442695, %v2733_v23 }
 0x428   : > { %v4000_v43 = vpop.eup %3999  ;;  %v2796_v60 = vadd.f32 1.0, %v3998_v1 }
 0x429   : > { %v2860_v5 = vsel %vm2859_vm2, %v3996_v41, %v2856_v58  ;;  %v2868_v6 = vmul.f32 %v4000_v43, %v2795_v15  ;;  %4001 = vpow2.f32 %v3791_v28  ;;  %vm2873_vm4 = vweird.f32 %v4000_v43 }
 0x42a   : > { %v2865_v35 = vsel %vm2862_vm3, %v2864_v21, %v2860_v5  ;;  %4003 = vrcp.f32 %v2796_v60  ;;  %vm2874_vm7 = vmor %vm2872_vm6, %vm2873_vm4  ;;  %v2893_v18 = vand.u32 2147483648, %v2796_v60  ;;  %v2891_v20 = vand.u32 2147483647, %v2796_v60 }
 0x42b   : > { %3051 = vst.msk [vmem:[%s5550_s22 + $0x18] sm:$0xff] %vm3047_vm5, %v2865_v35  ;;  %v2869_v51 = vsub.f32 1.0, %v2868_v6  ;;  %vm2887_vm10 = vweird.f32 %v2796_v60 }
 0x42c   : > { %v2698_v17 = vpop.xlane.xlu1 %2697  ;;  %v2894_v52 = vor.u32 1.1754944e-38, %v2893_v18  ;;  %vm2892_vm12 = vcmp.eq.f32.partialorder %v2891_v20, 8.507059e+37 }
 0x42d   : > { %v2870_v45 = vmul.f32 %v4000_v43, %v2869_v51  ;;  %v2734_v2 = vadd.f32 %v5537_v56, %v2698_v17 }
 0x42f   : > { %v4002_v42 = vpop.eup %4001  ;;  %v2871_v22 = vadd.f32 %v4000_v43, %v2870_v45  ;;  %v3792_v36 = vmul.f32 -1.442695, %v2734_v2 }
 0x430   : > { %v4004_v38 = vpop.eup %4003  ;;  %v2797_v25 = vadd.f32 1.0, %v4002_v42 }
 0x431   : > { %v2875_v29 = vsel %vm2874_vm7, %v4000_v43, %v2871_v22  ;;  %v2883_v27 = vmul.f32 %v4004_v38, %v2796_v60  ;;  %4005 = vpow2.f32 %v3792_v36  ;;  %vm2888_vm9 = vweird.f32 %v4004_v38 }
 0x432   : > { %v2880_v9 = vsel %vm2877_vm8, %v2879_v8, %v2875_v29  ;;  %4007 = vrcp.f32 %v2797_v25  ;;  %vm2889_vm11 = vmor %vm2887_vm10, %vm2888_vm9  ;;  %v2908_v31 = vand.u32 2147483648, %v2797_v25  ;;  %v2906_v50 = vand.u32 2147483647, %v2797_v25 }
 0x433   : > { %3052 = vst.msk [vmem:[%s5550_s22 + $0x20] sm:$0xff] %vm3047_vm5, %v2880_v9  ;;  %v2884_v12 = vsub.f32 1.0, %v2883_v27  ;;  %vm2902_vm14 = vweird.f32 %v2797_v25 }
 0x434   : > { %v2701_v7 = vpop.xlane.xlu2 %2700  ;;  %v2909_v4 = vor.u32 1.1754944e-38, %v2908_v31  ;;  %vm2907_vm0 = vcmp.eq.f32.partialorder %v2906_v50, 8.507059e+37 }
 0x435   : > { %v2885_v62 = vmul.f32 %v4004_v38, %v2884_v12  ;;  %v2735_v30 = vadd.f32 %v5537_v56, %v2701_v7 }
 0x437   : > { %v4006_v46 = vpop.eup %4005  ;;  %v2886_v59 = vadd.f32 %v4004_v38, %v2885_v62  ;;  %v3793_v48 = vmul.f32 -1.442695, %v2735_v30 }
 0x438   : > { %v4008_v13 = vpop.eup %4007  ;;  %v2798_v39 = vadd.f32 1.0, %v4006_v46 }
 0x439   : > { %v2890_v26 = vsel %vm2889_vm11, %v4004_v38, %v2886_v59  ;;  %v2898_v32 = vmul.f32 %v4008_v13, %v2797_v25  ;;  %4009 = vpow2.f32 %v3793_v48  ;;  %vm2903_vm13 = vweird.f32 %v4008_v13 }
 0x43a   : > { %v2895_v24 = vsel %vm2892_vm12, %v2894_v52, %v2890_v26  ;;  %4011 = vrcp.f32 %v2798_v39  ;;  %vm2904_vm15 = vmor %vm2902_vm14, %vm2903_vm13  ;;  %v2923_v11 = vand.u32 2147483648, %v2798_v39  ;;  %v2921_v57 = vand.u32 2147483647, %v2798_v39 }
 0x43b   : > { %3053 = vst.msk [vmem:[%s5550_s22 + $0x28] sm:$0xff] %vm3047_vm5, %v2895_v24  ;;  %v2899_v14 = vsub.f32 1.0, %v2898_v32  ;;  %vm2917_vm2 = vweird.f32 %v2798_v39 }
 0x43c   : > { %v2704_v53 = vpop.xlane.xlu0 %2703  ;;  %v2924_v58 = vor.u32 1.1754944e-38, %v2923_v11  ;;  %vm2922_vm4 = vcmp.eq.f32.partialorder %v2921_v57, 8.507059e+37 }
 0x43d   : > { %v2900_v3 = vmul.f32 %v4008_v13, %v2899_v14  ;;  %v2736_v34 = vadd.f32 %v5537_v56, %v2704_v53 }
 0x43f   : > { %v4010_v49 = vpop.eup %4009  ;;  %v2901_v10 = vadd.f32 %v4008_v13, %v2900_v3  ;;  %v3794_v44 = vmul.f32 -1.442695, %v2736_v34 }
 0x440   : > { %v4012_v40 = vpop.eup %4011  ;;  %v2799_v33 = vadd.f32 1.0, %v4010_v49 }
 0x441   : > { %v2905_v41 = vsel %vm2904_vm15, %v4008_v13, %v2901_v10  ;;  %v2913_v16 = vmul.f32 %v4012_v40, %v2798_v39  ;;  %4013 = vpow2.f32 %v3794_v44  ;;  %vm2918_vm1 = vweird.f32 %v4012_v40 }
 0x442   : > { %v2910_v15 = vsel %vm2907_vm0, %v2909_v4, %v2905_v41  ;;  %4015 = vrcp.f32 %v2799_v33  ;;  %vm2919_vm3 = vmor %vm2917_vm2, %vm2918_vm1  ;;  %v2938_v6 = vand.u32 2147483648, %v2799_v33  ;;  %v2936_v54 = vand.u32 2147483647, %v2799_v33 }
 0x443   : > { %3054 = vst.msk [vmem:[%s5550_s22 + $0x30] sm:$0xff] %vm3047_vm5, %v2910_v15  ;;  %v2914_v61 = vsub.f32 1.0, %v2913_v16  ;;  %vm2932_vm7 = vweird.f32 %v2799_v33 }
 0x444   : > { %v2707_v19 = vpop.xlane.xlu1 %2706  ;;  %v2939_v22 = vor.u32 1.1754944e-38, %v2938_v6  ;;  %vm2937_vm9 = vcmp.eq.f32.partialorder %v2936_v54, 8.507059e+37 }
 0x445   : > { %v2915_v63 = vmul.f32 %v4012_v40, %v2914_v61  ;;  %v2737_v37 = vadd.f32 %v5537_v56, %v2707_v19 }
 0x447   : > { %v4014_v0 = vpop.eup %4013  ;;  %v2916_v47 = vadd.f32 %v4012_v40, %v2915_v63  ;;  %v3795_v23 = vmul.f32 -1.442695, %v2737_v37 }
 0x448   : > { %v4016_v1 = vpop.eup %4015  ;;  %v2800_v28 = vadd.f32 1.0, %v4014_v0 }
 0x449   : > { %v2920_v43 = vsel %vm2919_vm3, %v4012_v40, %v2916_v47  ;;  %v2928_v21 = vmul.f32 %v4016_v1, %v2799_v33  ;;  %4017 = vpow2.f32 %v3795_v23  ;;  %vm2933_vm6 = vweird.f32 %v4016_v1 }
 0x44a   : > { %v2925_v60 = vsel %vm2922_vm4, %v2924_v58, %v2920_v43  ;;  %4019 = vrcp.f32 %v2800_v28  ;;  %vm2934_vm8 = vmor %vm2932_vm7, %vm2933_vm6  ;;  %v2953_v27 = vand.u32 2147483648, %v2800_v28  ;;  %v2951_v18 = vand.u32 2147483647, %v2800_v28 }
 0x44b   : > { %3055 = vst.msk [vmem:[%s5550_s22 + $0x38] sm:$0xff] %vm3047_vm5, %v2925_v60  ;;  %v2929_v5 = vsub.f32 1.0, %v2928_v21  ;;  %vm2947_vm11 = vweird.f32 %v2800_v28 }
 0x44c   : > { %v2710_v35 = vpop.xlane.xlu2 %2709  ;;  %v2954_v59 = vor.u32 1.1754944e-38, %v2953_v27  ;;  %vm2952_vm13 = vcmp.eq.f32.partialorder %v2951_v18, 8.507059e+37 }
 0x44d   : > { %v2930_v51 = vmul.f32 %v4016_v1, %v2929_v5  ;;  %v2738_v17 = vadd.f32 %v5537_v56, %v2710_v35 }
 0x44f   : > { %v4018_v45 = vpop.eup %4017  ;;  %v2931_v55 = vadd.f32 %v4016_v1, %v2930_v51  ;;  %v3796_v2 = vmul.f32 -1.442695, %v2738_v17 }
 0x450   : > { %v4020_v42 = vpop.eup %4019  ;;  %v2801_v36 = vadd.f32 1.0, %v4018_v45 }
 0x451   : > { %v2935_v38 = vsel %vm2934_vm8, %v4016_v1, %v2931_v55  ;;  %v2943_v8 = vmul.f32 %v4020_v42, %v2800_v28  ;;  %4021 = vpow2.f32 %v3796_v2  ;;  %vm2948_vm10 = vweird.f32 %v4020_v42 }
 0x452   : > { %v2940_v25 = vsel %vm2937_vm9, %v2939_v22, %v2935_v38  ;;  %4023 = vrcp.f32 %v2801_v36  ;;  %vm2949_vm12 = vmor %vm2947_vm11, %vm2948_vm10  ;;  %v2968_v32 = vand.u32 2147483648, %v2801_v36  ;;  %v2966_v31 = vand.u32 2147483647, %v2801_v36 }
 0x453   : > { %3056 = vst.msk [vmem:[%s5550_s22 + $0x40] sm:$0xff] %vm3047_vm5, %v2940_v25  ;;  %v2944_v29 = vsub.f32 1.0, %v2943_v8  ;;  %vm2962_vm15 = vweird.f32 %v2801_v36 }
 0x454   : > { %v2713_v9 = vpop.xlane.xlu0 %2712  ;;  %v2969_v10 = vor.u32 1.1754944e-38, %v2968_v32  ;;  %vm2967_vm1 = vcmp.eq.f32.partialorder %v2966_v31, 8.507059e+37 }
 0x455   : > { %v2945_v12 = vmul.f32 %v4020_v42, %v2944_v29  ;;  %v2739_v7 = vadd.f32 %v5537_v56, %v2713_v9 }
 0x457   : > { %v4022_v62 = vpop.eup %4021  ;;  %v2946_v20 = vadd.f32 %v4020_v42, %v2945_v12  ;;  %v3797_v30 = vmul.f32 -1.442695, %v2739_v7 }
 0x458   : > { %v4024_v46 = vpop.eup %4023  ;;  %v2802_v48 = vadd.f32 1.0, %v4022_v62 }
 0x459   : > { %v2950_v13 = vsel %vm2949_vm12, %v4020_v42, %v2946_v20  ;;  %v2958_v52 = vmul.f32 %v4024_v46, %v2801_v36  ;;  %4025 = vpow2.f32 %v3797_v30  ;;  %vm2963_vm14 = vweird.f32 %v4024_v46 }
 0x45a   : > { %v2955_v39 = vsel %vm2952_vm13, %v2954_v59, %v2950_v13  ;;  %4027 = vrcp.f32 %v2802_v48  ;;  %vm2964_vm0 = vmor %vm2962_vm15, %vm2963_vm14  ;;  %v2983_v16 = vand.u32 2147483648, %v2802_v48  ;;  %v2981_v11 = vand.u32 2147483647, %v2802_v48 }
 0x45b   : > { %3057 = vst.msk [vmem:[%s5550_s22 + $0x48] sm:$0xff] %vm3047_vm5, %v2955_v39  ;;  %v2959_v26 = vsub.f32 1.0, %v2958_v52  ;;  %vm2977_vm3 = vweird.f32 %v2802_v48 }
 0x45c   : > { %v2716_v24 = vpop.xlane.xlu1 %2715  ;;  %v2984_v47 = vor.u32 1.1754944e-38, %v2983_v16  ;;  %vm2982_vm6 = vcmp.eq.f32.partialorder %v2981_v11, 8.507059e+37 }
 0x45d   : > { %v2960_v14 = vmul.f32 %v4024_v46, %v2959_v26  ;;  %v2740_v53 = vadd.f32 %v5537_v56, %v2716_v24 }
 0x45f   : > { %v4026_v3 = vpop.eup %4025  ;;  %v2961_v50 = vadd.f32 %v4024_v46, %v2960_v14  ;;  %v3798_v34 = vmul.f32 -1.442695, %v2740_v53 }
 0x460   : > { %v4028_v49 = vpop.eup %4027  ;;  %v2803_v44 = vadd.f32 1.0, %v4026_v3 }
 0x461   : > { %v2965_v40 = vsel %vm2964_vm0, %v4024_v46, %v2961_v50  ;;  %v2973_v4 = vmul.f32 %v4028_v49, %v2802_v48  ;;  %4029 = vpow2.f32 %v3798_v34  ;;  %vm2978_vm2 = vweird.f32 %v4028_v49 }
 0x462   : > { %v2970_v33 = vsel %vm2967_vm1, %v2969_v10, %v2965_v40  ;;  %4031 = vrcp.f32 %v2803_v44  ;;  %vm2979_vm4 = vmor %vm2977_vm3, %vm2978_vm2  ;;  %v2998_v21 = vand.u32 2147483648, %v2803_v44  ;;  %v2996_v6 = vand.u32 2147483647, %v2803_v44 }
 0x463   : > { %3058 = vst.msk [vmem:[%s5550_s22 + $0x50] sm:$0xff] %vm3047_vm5, %v2970_v33  ;;  %v2974_v41 = vsub.f32 1.0, %v2973_v4  ;;  %vm2992_vm8 = vweird.f32 %v2803_v44 }
 0x464   : > { %v2719_v15 = vpop.xlane.xlu2 %2718  ;;  %v2999_v55 = vor.u32 1.1754944e-38, %v2998_v21  ;;  %vm2997_vm10 = vcmp.eq.f32.partialorder %v2996_v6, 8.507059e+37 }
 0x465   : > { %v2975_v61 = vmul.f32 %v4028_v49, %v2974_v41  ;;  %v2741_v19 = vadd.f32 %v5537_v56, %v2719_v15 }
 0x467   : > { %v4030_v63 = vpop.eup %4029  ;;  %v2976_v57 = vadd.f32 %v4028_v49, %v2975_v61  ;;  %v3799_v37 = vmul.f32 -1.442695, %v2741_v19 }
 0x468   : > { %v4032_v0 = vpop.eup %4031  ;;  %v2804_v23 = vadd.f32 1.0, %v4030_v63 }
 0x469   : > { %v2980_v1 = vsel %vm2979_vm4, %v4028_v49, %v2976_v57  ;;  %v2988_v58 = vmul.f32 %v4032_v0, %v2803_v44  ;;  %4033 = vpow2.f32 %v3799_v37  ;;  %vm2993_vm7 = vweird.f32 %v4032_v0 }
 0x46a   : > { %v2985_v28 = vsel %vm2982_vm6, %v2984_v47, %v2980_v1  ;;  %4035 = vrcp.f32 %v2804_v23  ;;  %vm2994_vm9 = vmor %vm2992_vm8, %vm2993_vm7  ;;  %v3013_v8 = vand.u32 2147483648, %v2804_v23  ;;  %v3011_v25 = vand.u32 2147483647, %v2804_v23 }
 0x46b   : > { %3059 = vst.msk [vmem:[%s5550_s22 + $0x58] sm:$0xff] %vm3047_vm5, %v2985_v28  ;;  %v2989_v43 = vsub.f32 1.0, %v2988_v58  ;;  %vm3007_vm12 = vweird.f32 %v2804_v23 }
 0x46c   : > { %v2722_v60 = vpop.xlane.xlu0 %2721  ;;  %v3014_v12 = vor.u32 1.1754944e-38, %v3013_v8  ;;  %vm3012_vm14 = vcmp.eq.f32.partialorder %v3011_v25, 8.507059e+37 }
 0x46d   : > { %v2990_v5 = vmul.f32 %v4032_v0, %v2989_v43  ;;  %v2742_v35 = vadd.f32 %v5537_v56, %v2722_v60 }
 0x46f   : > { %v4034_v51 = vpop.eup %4033  ;;  %v2991_v54 = vadd.f32 %v4032_v0, %v2990_v5  ;;  %v3800_v17 = vmul.f32 -1.442695, %v2742_v35 }
 0x470   : > { %v4036_v45 = vpop.eup %4035  ;;  %v2805_v2 = vadd.f32 1.0, %v4034_v51 }
 0x471   : > { %v2995_v42 = vsel %vm2994_vm9, %v4032_v0, %v2991_v54  ;;  %v3003_v22 = vmul.f32 %v4036_v45, %v2804_v23  ;;  %4037 = vpow2.f32 %v3800_v17  ;;  %vm3008_vm11 = vweird.f32 %v4036_v45 }
 0x472   : > { %v3000_v36 = vsel %vm2997_vm10, %v2999_v55, %v2995_v42  ;;  %4039 = vrcp.f32 %v2805_v2  ;;  %vm3009_vm13 = vmor %vm3007_vm12, %vm3008_vm11  ;;  %v3028_v46 = vand.u32 2147483648, %v2805_v2  ;;  %v3026_v48 = vand.u32 2147483647, %v2805_v2 }
 0x473   : > { %3060 = vst.msk [vmem:[%s5550_s22 + $0x60] sm:$0xff] %vm3047_vm5, %v3000_v36  ;;  %v3004_v38 = vsub.f32 1.0, %v3003_v22  ;;  %vm3022_vm0 = vweird.f32 %v2805_v2 }
 0x474   : > { %v3029_v39 = vor.u32 1.1754944e-38, %v3028_v46  ;;  %vm3027_vm2 = vcmp.eq.f32.partialorder %v3026_v48, 8.507059e+37 }
 0x475   : > { %v3005_v56 = vmul.f32 %v4036_v45, %v3004_v38 }
 0x477   : > { %v4038_v29 = vpop.eup %4037  ;;  %v3006_v27 = vadd.f32 %v4036_v45, %v3005_v56 }
 0x478   : > { %v4040_v9 = vpop.eup %4039  ;;  %v2806_v18 = vadd.f32 1.0, %v4038_v29 }
 0x479   : > { %v3010_v7 = vsel %vm3009_vm13, %v4036_v45, %v3006_v27  ;;  %v3018_v62 = vmul.f32 %v4040_v9, %v2805_v2  ;;  %vm3023_vm15 = vweird.f32 %v4040_v9 }
 0x47a   : > { %v3015_v20 = vsel %vm3012_vm14, %v3014_v12, %v3010_v7  ;;  %4041 = vrcp.f32 %v2806_v18  ;;  %vm3024_vm1 = vmor %vm3022_vm0, %vm3023_vm15  ;;  %v3043_v31 = vand.u32 2147483648, %v2806_v18  ;;  %v3041_v3 = vand.u32 2147483647, %v2806_v18 }
 0x47b   : > { %3061 = vst.msk [vmem:[%s5550_s22 + $0x68] sm:$0xff] %vm3047_vm5, %v3015_v20  ;;  %v3019_v30 = vsub.f32 1.0, %v3018_v62  ;;  %vm3037_vm4 = vweird.f32 %v2806_v18 }
 0x47c   : > { %v3044_v34 = vor.u32 1.1754944e-38, %v3043_v31  ;;  %vm3042_vm7 = vcmp.eq.f32.partialorder %v3041_v3, 8.507059e+37 }
 0x47d   : > { %v3020_v59 = vmul.f32 %v4040_v9, %v3019_v30 }
 0x47f   : > { %v3021_v13 = vadd.f32 %v4040_v9, %v3020_v59 }
 0x480   : > { %v4042_v52 = vpop.eup %4041 }
 0x481   : > { %v3025_v26 = vsel %vm3024_vm1, %v4040_v9, %v3021_v13  ;;  %v3033_v32 = vmul.f32 %v4042_v52, %v2806_v18  ;;  %vm3038_vm3 = vweird.f32 %v4042_v52 }
 0x482   : > { %v3030_v24 = vsel %vm3027_vm2, %v3029_v39, %v3025_v26  ;;  %vm3039_vm6 = vmor %vm3037_vm4, %vm3038_vm3 }
 0x483   : > { %3062 = vst.msk [vmem:[%s5550_s22 + $0x70] sm:$0xff] %vm3047_vm5, %v3030_v24  ;;  %v3034_v14 = vsub.f32 1.0, %v3033_v32 }
 0x485   : > { %v3035_v53 = vmul.f32 %v4042_v52, %v3034_v14 }
 0x487   : > { %v3036_v50 = vadd.f32 %v4042_v52, %v3035_v53 }
 0x489   : > { %v3040_v49 = vsel %vm3039_vm6, %v4042_v52, %v3036_v50 }
 0x48a   : > { %v3045_v10 = vsel %vm3042_vm7, %v3044_v34, %v3040_v49 }
 0x48b   : > { %3063 = vst.msk [vmem:[%s5550_s22 + $0x78] sm:$0xff] %vm3047_vm5, %v3045_v10 }
 0x48c PF: > { %s23_s19 = sadd.s32 1, %s4049_s19  }
 0x48d   : > { %p20_p4 = scmp.ge.s32.totalorder %s23_s19, 6  }
 0x48f   :  { %22 = sbr.rel (!%p20_p4) target bundleno = 3 (0x3), region = 97 }

</bundles_post_ra>
